<compile_context>
chip_gen: v6e
topology: v6e:2x2x1
jax: 0.10.0
libtpu: 0.0.40
codegen_flags: <defaults>
</compile_context>

<pallas_src>
import functools

import jax
import jax.numpy as jnp
from jax.experimental import pallas as pl
from jax.experimental.pallas import tpu as pltpu


def _round_up(x, m):
    return ((x + m - 1) // m) * m


# ----------------------------------------------------------------------------
# Fused Block kernel (one image per grid step)
# ----------------------------------------------------------------------------
def _block_kernel(x_ref, w1_ref, s1_ref, b1_ref, w2_ref, s2_ref, b2_ref,
                  o_ref, hpad_ref, acc_ref, *, H, W, row0):
    HW = H * W
    x = x_ref[0]                                             # (HW, Cin) f32

    # ---- conv1 (1x1) + BN1 + LeakyReLU(0.1): pure channel matmul ----------
    h = jnp.dot(x.astype(jnp.bfloat16), w1_ref[...],
                preferred_element_type=jnp.float32)          # (HW, Cmid) f32
    h = h * s1_ref[...] + b1_ref[...]
    h = jnp.where(h >= 0, h, 0.1 * h)

    # ---- stage h into a row-padded VMEM buffer (in-VMEM implicit im2col) ---
    # Buffer rows [row0, row0+HW) hold h in (i*W + j) flattened order; all
    # other rows are zero and provide the vertical zero padding of the 3x3.
    hpad_ref[...] = jnp.zeros_like(hpad_ref)
    hpad_ref[pl.ds(row0, HW), :] = h

    # ---- conv2 (3x3, pad=1) as 9 shifted bf16 matmuls, f32 accumulation ----
    acc_ref[...] = jnp.zeros_like(acc_ref)
    cmid = hpad_ref.shape[1]
    col = jax.lax.broadcasted_iota(jnp.int32, (HW, cmid), 0) % W
    for dh in range(3):
        for dw in range(3):
            off = row0 + (dh - 1) * W + (dw - 1)
            win = hpad_ref[pl.ds(off, HW), :]                # (HW, Cmid) f32
            if dw == 0:      # tap reads column j-1: invalid where j == 0
                win = jnp.where(col == 0, jnp.zeros_like(win), win)
            elif dw == 2:    # tap reads column j+1: invalid where j == W-1
                win = jnp.where(col == W - 1, jnp.zeros_like(win), win)
            acc_ref[...] += jnp.dot(win.astype(jnp.bfloat16),
                                    w2_ref[dh * 3 + dw],
                                    preferred_element_type=jnp.float32)

    # ---- BN2 + LeakyReLU(0.1) + residual (f32 epilogue) --------------------
    y = acc_ref[...] * s2_ref[...] + b2_ref[...]
    y = jnp.where(y >= 0, y, 0.1 * y)
    o_ref[0] = (y + x).astype(o_ref.dtype)                   # residual AFTER act


# ----------------------------------------------------------------------------
# Wrapper
# ----------------------------------------------------------------------------
def block_forward(x_nchw, params):
    p = params
    N, C, H, W = x_nchw.shape
    assert C == p["cin"] == p["cout"], "Block requires Cin == Cout"
    HW = H * W
    cin_p, cmid_p, cout_p = p["cin_p"], p["cmid_p"], p["cout_p"]

    # NCHW -> (N, H*W, C); channel-pad once to the 128-lane width.
    x = jnp.transpose(x_nchw, (0, 2, 3, 1)).reshape(N, HW, C)
    if cin_p != C:
        x = jnp.pad(x, ((0, 0), (0, 0), (0, cin_p - C)))

    row0 = _round_up(W + 1, 8)                      # aligned start of h rows
    nrows = _round_up(row0 + HW + W + 1, 8)         # zero tail for bottom pad

    kernel = functools.partial(_block_kernel, H=H, W=W, row0=row0)

    out = pl.pallas_call(
        kernel,
        out_shape=jax.ShapeDtypeStruct((N, HW, cout_p), jnp.float32),
        grid_spec=pltpu.PrefetchScalarGridSpec(
            num_scalar_prefetch=0,
            grid=(N,),
            in_specs=[
                pl.BlockSpec((1, HW, cin_p), lambda n: (n, 0, 0)),       # x
                pl.BlockSpec((cin_p, cmid_p), lambda n: (0, 0)),         # w1
                pl.BlockSpec((1, cmid_p), lambda n: (0, 0)),             # s1
                pl.BlockSpec((1, cmid_p), lambda n: (0, 0)),             # b1
                pl.BlockSpec((9, cmid_p, cout_p), lambda n: (0, 0, 0)),  # w2
                pl.BlockSpec((1, cout_p), lambda n: (0, 0)),             # s2
                pl.BlockSpec((1, cout_p), lambda n: (0, 0)),             # b2
            ],
            out_specs=pl.BlockSpec((1, HW, cout_p), lambda n: (n, 0, 0)),
            scratch_shapes=[
                pltpu.VMEM((nrows, cmid_p), jnp.float32),   # padded h staging
                pltpu.VMEM((HW, cout_p), jnp.float32),      # conv2 accumulator
            ],
        ),
        compiler_params=pltpu.CompilerParams(
            dimension_semantics=("parallel",)),
    )(x, p["w1p"], p["s1p"], p["b1p"], p["w2p"], p["s2p"], p["b2p"])

    out = out[:, :, :C].reshape(N, H, W, C)
    return jnp.transpose(out, (0, 3, 1, 2))                  # NHWC -> NCHW


# ----------------------------------------------------------------------------
# Deterministic parameter init (matches nn.Module shapes, BN folded for eval)
# ----------------------------------------------------------------------------
def init_block_params(key, in_channels):
    cin, cmid, cout = in_channels, in_channels // 2, in_channels
    ks = jax.random.split(key, 10)
    w1 = jax.random.normal(ks[0], (1, 1, cin, cmid), jnp.float32)
    w1 = w1 / jnp.sqrt(jnp.float32(cin))
    w2 = jax.random.normal(ks[1], (3, 3, cmid, cout), jnp.float32)
    w2 = w2 / jnp.sqrt(jnp.float32(9 * cmid))

    def fold_bn(kk, c):
        g = 1.0 + 0.1 * jax.random.normal(kk[0], (c,), jnp.float32)
        b = 0.1 * jax.random.normal(kk[1], (c,), jnp.float32)
        m = 0.1 * jax.random.normal(kk[2], (c,), jnp.float32)
        v = 1.0 + 0.1 * jnp.abs(jax.random.normal(kk[3], (c,), jnp.float32))
        s = g / jnp.sqrt(v + 1e-5)
        return s, b - m * s

    s1, b1 = fold_bn(ks[2:6], cmid)
    s2, b2 = fold_bn(ks[6:10], cout)

    # One-time channel padding to 128-lane multiples + bf16 cast of the MXU
    # operands, so the per-call path does no weight pad/slice/cast.
    cin_p, cmid_p, cout_p = (_round_up(c, 128) for c in (cin, cmid, cout))
    w1p = jnp.zeros((cin_p, cmid_p), jnp.bfloat16)
    w1p = w1p.at[:cin, :cmid].set(w1.reshape(cin, cmid).astype(jnp.bfloat16))
    w2p = jnp.zeros((9, cmid_p, cout_p), jnp.bfloat16)
    w2p = w2p.at[:, :cmid, :cout].set(w2.reshape(9, cmid, cout).astype(jnp.bfloat16))
    pad_vec = lambda v, cp: jnp.zeros((1, cp), jnp.float32).at[0, :v.shape[0]].set(v)

    return {
        "cin": cin, "cmid": cmid, "cout": cout,
        "cin_p": cin_p, "cmid_p": cmid_p, "cout_p": cout_p,
        "w1p": w1p, "w2p": w2p,
        "s1p": pad_vec(s1, cmid_p), "b1p": pad_vec(b1, cmid_p),
        "s2p": pad_vec(s2, cout_p), "b2p": pad_vec(b2, cout_p),
        # unpadded f32 copies for the pure-JAX reference
        "w1": w1, "w2": w2, "s1": s1, "b1": b1, "s2": s2, "b2": b2,
    }


# ----------------------------------------------------------------------------
# Pure-JAX reference (f32, mirrors the PyTorch Block.forward)
# ----------------------------------------------------------------------------
def block_reference(x_nchw, p):
    dn = ("NHWC", "HWIO", "NHWC")
    hi = jax.lax.Precision.HIGHEST
    x = jnp.transpose(x_nchw, (0, 2, 3, 1))
    h = jax.lax.conv_general_dilated(x, p["w1"], (1, 1), "VALID",
                                     dimension_numbers=dn, precision=hi)
    h = h * p["s1"] + p["b1"]
    h = jnp.where(h >= 0, h, 0.1 * h)
    y = jax.lax.conv_general_dilated(h, p["w2"], (1, 1), "SAME",
                                     dimension_numbers=dn, precision=hi)
    y = y * p["s2"] + p["b2"]
    y = jnp.where(y >= 0, y, 0.1 * y)
    y = y + x
    return jnp.transpose(y, (0, 3, 1, 2))


# ----------------------------------------------------------------------------
if __name__ == "__main__":
    key = jax.random.PRNGKey(0)
    kx, kp = jax.random.split(key)

    batch, in_channels, spatial = 2, 256, 16
    x = jax.random.normal(kx, (batch, in_channels, spatial, spatial),
                          jnp.float32)
    params = init_block_params(kp, in_channels)

    fwd = jax.jit(functools.partial(block_forward, params=params))
    out = fwd(x)
    jax.block_until_ready(out)

    assert out.shape == x.shape
    assert out.dtype == jnp.float32

    ref = block_reference(x, params)
    max_err = float(jnp.max(jnp.abs(out - ref)))
    # bf16 MXU operands with f32 accumulation -> small numeric difference.
    assert max_err < 0.25, f"max abs error vs f32 reference: {max_err}"

    print("KERNEL_OK")
</pallas_src>

<mosaic_0001>
module attributes {stable_mosaic.version = 11 : i64} {
  func.func @_block_kernel(%arg0: i32, %arg1: memref<1x256x256xf32, #tpu.memory_space<vmem>>, %arg2: memref<256x128xbf16, #tpu.memory_space<vmem>>, %arg3: memref<1x128xf32, #tpu.memory_space<vmem>>, %arg4: memref<1x128xf32, #tpu.memory_space<vmem>>, %arg5: memref<9x128x256xbf16, #tpu.memory_space<vmem>>, %arg6: memref<1x256xf32, #tpu.memory_space<vmem>>, %arg7: memref<1x256xf32, #tpu.memory_space<vmem>>, %arg8: memref<1x256x256xf32, #tpu.memory_space<vmem>>, %arg9: memref<304x128xf32, #tpu.memory_space<vmem>>, %arg10: memref<256x256xf32, #tpu.memory_space<vmem>>) attributes {dimension_semantics = [#tpu.dimension_semantics<parallel>], iteration_bounds = array<i64: 2>, scalar_prefetch = 0 : i64, scratch_operands = 2 : i64, tpu.core_type = #tpu.core_type<tc>, window_params = [{transform_indices = @transform_0, window_bounds = array<i64: 1, 256, 256>}, {pipeline_mode = #tpu.pipeline_mode<synchronous>, transform_indices = @transform_1, window_bounds = array<i64: 256, 128>}, {pipeline_mode = #tpu.pipeline_mode<synchronous>, transform_indices = @transform_2, window_bounds = array<i64: 1, 128>}, {pipeline_mode = #tpu.pipeline_mode<synchronous>, transform_indices = @transform_3, window_bounds = array<i64: 1, 128>}, {pipeline_mode = #tpu.pipeline_mode<synchronous>, transform_indices = @transform_4, window_bounds = array<i64: 9, 128, 256>}, {pipeline_mode = #tpu.pipeline_mode<synchronous>, transform_indices = @transform_5, window_bounds = array<i64: 1, 256>}, {pipeline_mode = #tpu.pipeline_mode<synchronous>, transform_indices = @transform_6, window_bounds = array<i64: 1, 256>}, {transform_indices = @transform_7, window_bounds = array<i64: 1, 256, 256>}]} {
    %c0 = arith.constant 0 : index
    %c0_0 = arith.constant 0 : index
    %c0_1 = arith.constant 0 : index
    %0 = vector.load %arg1[%c0, %c0_0, %c0_1] : memref<1x256x256xf32, #tpu.memory_space<vmem>>, vector<1x256x256xf32>
    %1 = vector.shape_cast %0 : vector<1x256x256xf32> to vector<256x256xf32>
    %2 = arith.truncf %1 : vector<256x256xf32> to vector<256x256xbf16>
    %c0_2 = arith.constant 0 : index
    %c0_3 = arith.constant 0 : index
    %3 = vector.load %arg2[%c0_2, %c0_3] : memref<256x128xbf16, #tpu.memory_space<vmem>>, vector<256x128xbf16>
    %cst = arith.constant dense<0.000000e+00> : vector<256x128xf32>
    %4 = tpu.matmul %2, %3, %cst {dimension_numbers = #tpu.dot_dimension_numbers<[1], [0], [0], [1], [0, 0, 1, 1], [], []>} : vector<256x256xbf16>, vector<256x128xbf16>, vector<256x128xf32> -> vector<256x128xf32>
    %c0_4 = arith.constant 0 : index
    %c0_5 = arith.constant 0 : index
    %5 = vector.load %arg3[%c0_4, %c0_5] : memref<1x128xf32, #tpu.memory_space<vmem>>, vector<1x128xf32>
    %6 = vector.broadcast %5 : vector<1x128xf32> to vector<256x128xf32>
    %7 = arith.mulf %4, %6 : vector<256x128xf32>
    %c0_6 = arith.constant 0 : index
    %c0_7 = arith.constant 0 : index
    %8 = vector.load %arg4[%c0_6, %c0_7] : memref<1x128xf32, #tpu.memory_space<vmem>>, vector<1x128xf32>
    %9 = vector.broadcast %8 : vector<1x128xf32> to vector<256x128xf32>
    %10 = arith.addf %7, %9 : vector<256x128xf32>
    %cst_8 = arith.constant 0.000000e+00 : f32
    %11 = vector.broadcast %cst_8 : f32 to vector<256x128xf32>
    %12 = arith.cmpf oge, %10, %11 : vector<256x128xf32>
    %cst_9 = arith.constant 1.000000e-01 : f32
    %13 = vector.broadcast %cst_9 : f32 to vector<256x128xf32>
    %14 = arith.mulf %13, %10 : vector<256x128xf32>
    %15 = arith.select %12, %10, %14 : vector<256x128xi1>, vector<256x128xf32>
    %cst_10 = arith.constant 0.000000e+00 : f32
    %16 = vector.broadcast %cst_10 : f32 to vector<304x128xf32>
    %c0_11 = arith.constant 0 : index
    %c0_12 = arith.constant 0 : index
    %17 = vector.load %arg9[%c0_11, %c0_12] : memref<304x128xf32, #tpu.memory_space<vmem>>, vector<304x128xf32>
    tpu.vector_store %arg9[%c0_11, %c0_12], %16 {strides = array<i32>} : memref<304x128xf32, #tpu.memory_space<vmem>>, vector<304x128xf32>,
    %c24 = arith.constant 24 : index
    %c0_13 = arith.constant 0 : index
    %18 = vector.load %arg9[%c24, %c0_13] : memref<304x128xf32, #tpu.memory_space<vmem>>, vector<256x128xf32>
    tpu.vector_store %arg9[%c24, %c0_13], %15 {strides = array<i32>} : memref<304x128xf32, #tpu.memory_space<vmem>>, vector<256x128xf32>,
    %cst_14 = arith.constant 0.000000e+00 : f32
    %19 = vector.broadcast %cst_14 : f32 to vector<256x256xf32>
    %c0_15 = arith.constant 0 : index
    %c0_16 = arith.constant 0 : index
    %20 = vector.load %arg10[%c0_15, %c0_16] : memref<256x256xf32, #tpu.memory_space<vmem>>, vector<256x256xf32>
    tpu.vector_store %arg10[%c0_15, %c0_16], %19 {strides = array<i32>} : memref<256x256xf32, #tpu.memory_space<vmem>>, vector<256x256xf32>,
    %21 = tpu.iota {dimensions = array<i32: 0>} : vector<256x128xi32>
    %c16_i32 = arith.constant 16 : i32
    %c0_i32 = arith.constant 0 : i32
    %22 = arith.cmpi eq, %c16_i32, %c0_i32 : i32
    %c1_i32 = arith.constant 1 : i32
    %23 = arith.select %22, %c1_i32, %c16_i32 : i32
    %24 = vector.broadcast %23 : i32 to vector<256x128xi32>
    %25 = arith.remsi %21, %24 : vector<256x128xi32>
    %c0_i32_17 = arith.constant 0 : i32
    %26 = vector.broadcast %c0_i32_17 : i32 to vector<256x128xi32>
    %27 = arith.cmpi ne, %25, %26 : vector<256x128xi32>
    %c0_i32_18 = arith.constant 0 : i32
    %28 = vector.broadcast %c0_i32_18 : i32 to vector<256x128xi32>
    %29 = arith.cmpi slt, %25, %28 : vector<256x128xi32>
    %c0_i32_19 = arith.constant 0 : i32
    %30 = arith.cmpi slt, %23, %c0_i32_19 : i32
    %31 = vector.broadcast %30 : i1 to vector<256x128xi1>
    %32 = vector.broadcast %31 : vector<256x128xi1> to vector<256x128xi1>
    %33 = arith.xori %29, %32 : vector<256x128xi1>
    %34 = arith.andi %33, %27 : vector<256x128xi1>
    %35 = vector.broadcast %23 : i32 to vector<256x128xi32>
    %36 = arith.addi %25, %35 : vector<256x128xi32>
    %37 = arith.select %34, %36, %25 : vector<256x128xi1>, vector<256x128xi32>
    %c7 = arith.constant 7 : index
    %c0_20 = arith.constant 0 : index
    %38 = vector.load %arg9[%c7, %c0_20] : memref<304x128xf32, #tpu.memory_space<vmem>>, vector<256x128xf32>
    %c0_i32_21 = arith.constant 0 : i32
    %39 = vector.broadcast %c0_i32_21 : i32 to vector<256x128xi32>
    %40 = arith.cmpi eq, %37, %39 : vector<256x128xi32>
    %cst_22 = arith.constant 0.000000e+00 : f32
    %41 = vector.broadcast %cst_22 : f32 to vector<256x128xf32>
    %42 = arith.select %40, %41, %38 : vector<256x128xi1>, vector<256x128xf32>
    %c0_23 = arith.constant 0 : index
    %c0_24 = arith.constant 0 : index
    %43 = vector.load %arg10[%c0_23, %c0_24] : memref<256x256xf32, #tpu.memory_space<vmem>>, vector<256x256xf32>
    %44 = arith.truncf %42 : vector<256x128xf32> to vector<256x128xbf16>
    %c0_25 = arith.constant 0 : index
    %c0_26 = arith.constant 0 : index
    %c0_27 = arith.constant 0 : index
    %45 = vector.load %arg5[%c0_25, %c0_26, %c0_27] : memref<9x128x256xbf16, #tpu.memory_space<vmem>>, vector<1x128x256xbf16>
    %46 = vector.shape_cast %45 : vector<1x128x256xbf16> to vector<128x256xbf16>
    %cst_28 = arith.constant dense<0.000000e+00> : vector<256x256xf32>
    %47 = tpu.matmul %44, %46, %cst_28 {dimension_numbers = #tpu.dot_dimension_numbers<[1], [0], [0], [1], [0, 0, 1, 1], [], []>} : vector<256x128xbf16>, vector<128x256xbf16>, vector<256x256xf32> -> vector<256x256xf32>
    %48 = arith.addf %43, %47 : vector<256x256xf32>
    %c0_29 = arith.constant 0 : index
    %c0_30 = arith.constant 0 : index
    %49 = vector.load %arg10[%c0_29, %c0_30] : memref<256x256xf32, #tpu.memory_space<vmem>>, vector<256x256xf32>
    tpu.vector_store %arg10[%c0_29, %c0_30], %48 {strides = array<i32>} : memref<256x256xf32, #tpu.memory_space<vmem>>, vector<256x256xf32>,
    %c8 = arith.constant 8 : index
    %c0_31 = arith.constant 0 : index
    %50 = vector.load %arg9[%c8, %c0_31] : memref<304x128xf32, #tpu.memory_space<vmem>>, vector<256x128xf32>
    %c0_32 = arith.constant 0 : index
    %c0_33 = arith.constant 0 : index
    %51 = vector.load %arg10[%c0_32, %c0_33] : memref<256x256xf32, #tpu.memory_space<vmem>>, vector<256x256xf32>
    %52 = arith.truncf %50 : vector<256x128xf32> to vector<256x128xbf16>
    %c1 = arith.constant 1 : index
    %c0_34 = arith.constant 0 : index
    %c0_35 = arith.constant 0 : index
    %53 = vector.load %arg5[%c1, %c0_34, %c0_35] : memref<9x128x256xbf16, #tpu.memory_space<vmem>>, vector<1x128x256xbf16>
    %54 = vector.shape_cast %53 : vector<1x128x256xbf16> to vector<128x256xbf16>
    %cst_36 = arith.constant dense<0.000000e+00> : vector<256x256xf32>
    %55 = tpu.matmul %52, %54, %cst_36 {dimension_numbers = #tpu.dot_dimension_numbers<[1], [0], [0], [1], [0, 0, 1, 1], [], []>} : vector<256x128xbf16>, vector<128x256xbf16>, vector<256x256xf32> -> vector<256x256xf32>
    %56 = arith.addf %51, %55 : vector<256x256xf32>
    %c0_37 = arith.constant 0 : index
    %c0_38 = arith.constant 0 : index
    %57 = vector.load %arg10[%c0_37, %c0_38] : memref<256x256xf32, #tpu.memory_space<vmem>>, vector<256x256xf32>
    tpu.vector_store %arg10[%c0_37, %c0_38], %56 {strides = array<i32>} : memref<256x256xf32, #tpu.memory_space<vmem>>, vector<256x256xf32>,
    %c9 = arith.constant 9 : index
    %c0_39 = arith.constant 0 : index
    %58 = vector.load %arg9[%c9, %c0_39] : memref<304x128xf32, #tpu.memory_space<vmem>>, vector<256x128xf32>
    %c15_i32 = arith.constant 15 : i32
    %59 = vector.broadcast %c15_i32 : i32 to vector<256x128xi32>
    %60 = arith.cmpi eq, %37, %59 : vector<256x128xi32>
    %cst_40 = arith.constant 0.000000e+00 : f32
    %61 = vector.broadcast %cst_40 : f32 to vector<256x128xf32>
    %62 = arith.select %60, %61, %58 : vector<256x128xi1>, vector<256x128xf32>
    %c0_41 = arith.constant 0 : index
    %c0_42 = arith.constant 0 : index
    %63 = vector.load %arg10[%c0_41, %c0_42] : memref<256x256xf32, #tpu.memory_space<vmem>>, vector<256x256xf32>
    %64 = arith.truncf %62 : vector<256x128xf32> to vector<256x128xbf16>
    %c2 = arith.constant 2 : index
    %c0_43 = arith.constant 0 : index
    %c0_44 = arith.constant 0 : index
    %65 = vector.load %arg5[%c2, %c0_43, %c0_44] : memref<9x128x256xbf16, #tpu.memory_space<vmem>>, vector<1x128x256xbf16>
    %66 = vector.shape_cast %65 : vector<1x128x256xbf16> to vector<128x256xbf16>
    %cst_45 = arith.constant dense<0.000000e+00> : vector<256x256xf32>
    %67 = tpu.matmul %64, %66, %cst_45 {dimension_numbers = #tpu.dot_dimension_numbers<[1], [0], [0], [1], [0, 0, 1, 1], [], []>} : vector<256x128xbf16>, vector<128x256xbf16>, vector<256x256xf32> -> vector<256x256xf32>
    %68 = arith.addf %63, %67 : vector<256x256xf32>
    %c0_46 = arith.constant 0 : index
    %c0_47 = arith.constant 0 : index
    %69 = vector.load %arg10[%c0_46, %c0_47] : memref<256x256xf32, #tpu.memory_space<vmem>>, vector<256x256xf32>
    tpu.vector_store %arg10[%c0_46, %c0_47], %68 {strides = array<i32>} : memref<256x256xf32, #tpu.memory_space<vmem>>, vector<256x256xf32>,
    %c23 = arith.constant 23 : index
    %c0_48 = arith.constant 0 : index
    %70 = vector.load %arg9[%c23, %c0_48] : memref<304x128xf32, #tpu.memory_space<vmem>>, vector<256x128xf32>
    %c0_i32_49 = arith.constant 0 : i32
    %71 = vector.broadcast %c0_i32_49 : i32 to vector<256x128xi32>
    %72 = arith.cmpi eq, %37, %71 : vector<256x128xi32>
    %cst_50 = arith.constant 0.000000e+00 : f32
    %73 = vector.broadcast %cst_50 : f32 to vector<256x128xf32>
    %74 = arith.select %72, %73, %70 : vector<256x128xi1>, vector<256x128xf32>
    %c0_51 = arith.constant 0 : index
    %c0_52 = arith.constant 0 : index
    %75 = vector.load %arg10[%c0_51, %c0_52] : memref<256x256xf32, #tpu.memory_space<vmem>>, vector<256x256xf32>
    %76 = arith.truncf %74 : vector<256x128xf32> to vector<256x128xbf16>
    %c3 = arith.constant 3 : index
    %c0_53 = arith.constant 0 : index
    %c0_54 = arith.constant 0 : index
    %77 = vector.load %arg5[%c3, %c0_53, %c0_54] : memref<9x128x256xbf16, #tpu.memory_space<vmem>>, vector<1x128x256xbf16>
    %78 = vector.shape_cast %77 : vector<1x128x256xbf16> to vector<128x256xbf16>
    %cst_55 = arith.constant dense<0.000000e+00> : vector<256x256xf32>
    %79 = tpu.matmul %76, %78, %cst_55 {dimension_numbers = #tpu.dot_dimension_numbers<[1], [0], [0], [1], [0, 0, 1, 1], [], []>} : vector<256x128xbf16>, vector<128x256xbf16>, vector<256x256xf32> -> vector<256x256xf32>
    %80 = arith.addf %75, %79 : vector<256x256xf32>
    %c0_56 = arith.constant 0 : index
    %c0_57 = arith.constant 0 : index
    %81 = vector.load %arg10[%c0_56, %c0_57] : memref<256x256xf32, #tpu.memory_space<vmem>>, vector<256x256xf32>
    tpu.vector_store %arg10[%c0_56, %c0_57], %80 {strides = array<i32>} : memref<256x256xf32, #tpu.memory_space<vmem>>, vector<256x256xf32>,
    %c24_58 = arith.constant 24 : index
    %c0_59 = arith.constant 0 : index
    %82 = vector.load %arg9[%c24_58, %c0_59] : memref<304x128xf32, #tpu.memory_space<vmem>>, vector<256x128xf32>
    %c0_60 = arith.constant 0 : index
    %c0_61 = arith.constant 0 : index
    %83 = vector.load %arg10[%c0_60, %c0_61] : memref<256x256xf32, #tpu.memory_space<vmem>>, vector<256x256xf32>
    %84 = arith.truncf %82 : vector<256x128xf32> to vector<256x128xbf16>
    %c4 = arith.constant 4 : index
    %c0_62 = arith.constant 0 : index
    %c0_63 = arith.constant 0 : index
    %85 = vector.load %arg5[%c4, %c0_62, %c0_63] : memref<9x128x256xbf16, #tpu.memory_space<vmem>>, vector<1x128x256xbf16>
    %86 = vector.shape_cast %85 : vector<1x128x256xbf16> to vector<128x256xbf16>
    %cst_64 = arith.constant dense<0.000000e+00> : vector<256x256xf32>
    %87 = tpu.matmul %84, %86, %cst_64 {dimension_numbers = #tpu.dot_dimension_numbers<[1], [0], [0], [1], [0, 0, 1, 1], [], []>} : vector<256x128xbf16>, vector<128x256xbf16>, vector<256x256xf32> -> vector<256x256xf32>
    %88 = arith.addf %83, %87 : vector<256x256xf32>
    %c0_65 = arith.constant 0 : index
    %c0_66 = arith.constant 0 : index
    %89 = vector.load %arg10[%c0_65, %c0_66] : memref<256x256xf32, #tpu.memory_space<vmem>>, vector<256x256xf32>
    tpu.vector_store %arg10[%c0_65, %c0_66], %88 {strides = array<i32>} : memref<256x256xf32, #tpu.memory_space<vmem>>, vector<256x256xf32>,
    %c25 = arith.constant 25 : index
    %c0_67 = arith.constant 0 : index
    %90 = vector.load %arg9[%c25, %c0_67] : memref<304x128xf32, #tpu.memory_space<vmem>>, vector<256x128xf32>
    %c15_i32_68 = arith.constant 15 : i32
    %91 = vector.broadcast %c15_i32_68 : i32 to vector<256x128xi32>
    %92 = arith.cmpi eq, %37, %91 : vector<256x128xi32>
    %cst_69 = arith.constant 0.000000e+00 : f32
    %93 = vector.broadcast %cst_69 : f32 to vector<256x128xf32>
    %94 = arith.select %92, %93, %90 : vector<256x128xi1>, vector<256x128xf32>
    %c0_70 = arith.constant 0 : index
    %c0_71 = arith.constant 0 : index
    %95 = vector.load %arg10[%c0_70, %c0_71] : memref<256x256xf32, #tpu.memory_space<vmem>>, vector<256x256xf32>
    %96 = arith.truncf %94 : vector<256x128xf32> to vector<256x128xbf16>
    %c5 = arith.constant 5 : index
    %c0_72 = arith.constant 0 : index
    %c0_73 = arith.constant 0 : index
    %97 = vector.load %arg5[%c5, %c0_72, %c0_73] : memref<9x128x256xbf16, #tpu.memory_space<vmem>>, vector<1x128x256xbf16>
    %98 = vector.shape_cast %97 : vector<1x128x256xbf16> to vector<128x256xbf16>
    %cst_74 = arith.constant dense<0.000000e+00> : vector<256x256xf32>
    %99 = tpu.matmul %96, %98, %cst_74 {dimension_numbers = #tpu.dot_dimension_numbers<[1], [0], [0], [1], [0, 0, 1, 1], [], []>} : vector<256x128xbf16>, vector<128x256xbf16>, vector<256x256xf32> -> vector<256x256xf32>
    %100 = arith.addf %95, %99 : vector<256x256xf32>
    %c0_75 = arith.constant 0 : index
    %c0_76 = arith.constant 0 : index
    %101 = vector.load %arg10[%c0_75, %c0_76] : memref<256x256xf32, #tpu.memory_space<vmem>>, vector<256x256xf32>
    tpu.vector_store %arg10[%c0_75, %c0_76], %100 {strides = array<i32>} : memref<256x256xf32, #tpu.memory_space<vmem>>, vector<256x256xf32>,
    %c39 = arith.constant 39 : index
    %c0_77 = arith.constant 0 : index
    %102 = vector.load %arg9[%c39, %c0_77] : memref<304x128xf32, #tpu.memory_space<vmem>>, vector<256x128xf32>
    %c0_i32_78 = arith.constant 0 : i32
    %103 = vector.broadcast %c0_i32_78 : i32 to vector<256x128xi32>
    %104 = arith.cmpi eq, %37, %103 : vector<256x128xi32>
    %cst_79 = arith.constant 0.000000e+00 : f32
    %105 = vector.broadcast %cst_79 : f32 to vector<256x128xf32>
    %106 = arith.select %104, %105, %102 : vector<256x128xi1>, vector<256x128xf32>
    %c0_80 = arith.constant 0 : index
    %c0_81 = arith.constant 0 : index
    %107 = vector.load %arg10[%c0_80, %c0_81] : memref<256x256xf32, #tpu.memory_space<vmem>>, vector<256x256xf32>
    %108 = arith.truncf %106 : vector<256x128xf32> to vector<256x128xbf16>
    %c6 = arith.constant 6 : index
    %c0_82 = arith.constant 0 : index
    %c0_83 = arith.constant 0 : index
    %109 = vector.load %arg5[%c6, %c0_82, %c0_83] : memref<9x128x256xbf16, #tpu.memory_space<vmem>>, vector<1x128x256xbf16>
    %110 = vector.shape_cast %109 : vector<1x128x256xbf16> to vector<128x256xbf16>
    %cst_84 = arith.constant dense<0.000000e+00> : vector<256x256xf32>
    %111 = tpu.matmul %108, %110, %cst_84 {dimension_numbers = #tpu.dot_dimension_numbers<[1], [0], [0], [1], [0, 0, 1, 1], [], []>} : vector<256x128xbf16>, vector<128x256xbf16>, vector<256x256xf32> -> vector<256x256xf32>
    %112 = arith.addf %107, %111 : vector<256x256xf32>
    %c0_85 = arith.constant 0 : index
    %c0_86 = arith.constant 0 : index
    %113 = vector.load %arg10[%c0_85, %c0_86] : memref<256x256xf32, #tpu.memory_space<vmem>>, vector<256x256xf32>
    tpu.vector_store %arg10[%c0_85, %c0_86], %112 {strides = array<i32>} : memref<256x256xf32, #tpu.memory_space<vmem>>, vector<256x256xf32>,
    %c40 = arith.constant 40 : index
    %c0_87 = arith.constant 0 : index
    %114 = vector.load %arg9[%c40, %c0_87] : memref<304x128xf32, #tpu.memory_space<vmem>>, vector<256x128xf32>
    %c0_88 = arith.constant 0 : index
    %c0_89 = arith.constant 0 : index
    %115 = vector.load %arg10[%c0_88, %c0_89] : memref<256x256xf32, #tpu.memory_space<vmem>>, vector<256x256xf32>
    %116 = arith.truncf %114 : vector<256x128xf32> to vector<256x128xbf16>
    %c7_90 = arith.constant 7 : index
    %c0_91 = arith.constant 0 : index
    %c0_92 = arith.constant 0 : index
    %117 = vector.load %arg5[%c7_90, %c0_91, %c0_92] : memref<9x128x256xbf16, #tpu.memory_space<vmem>>, vector<1x128x256xbf16>
    %118 = vector.shape_cast %117 : vector<1x128x256xbf16> to vector<128x256xbf16>
    %cst_93 = arith.constant dense<0.000000e+00> : vector<256x256xf32>
    %119 = tpu.matmul %116, %118, %cst_93 {dimension_numbers = #tpu.dot_dimension_numbers<[1], [0], [0], [1], [0, 0, 1, 1], [], []>} : vector<256x128xbf16>, vector<128x256xbf16>, vector<256x256xf32> -> vector<256x256xf32>
    %120 = arith.addf %115, %119 : vector<256x256xf32>
    %c0_94 = arith.constant 0 : index
    %c0_95 = arith.constant 0 : index
    %121 = vector.load %arg10[%c0_94, %c0_95] : memref<256x256xf32, #tpu.memory_space<vmem>>, vector<256x256xf32>
    tpu.vector_store %arg10[%c0_94, %c0_95], %120 {strides = array<i32>} : memref<256x256xf32, #tpu.memory_space<vmem>>, vector<256x256xf32>,
    %c41 = arith.constant 41 : index
    %c0_96 = arith.constant 0 : index
    %122 = vector.load %arg9[%c41, %c0_96] : memref<304x128xf32, #tpu.memory_space<vmem>>, vector<256x128xf32>
    %c15_i32_97 = arith.constant 15 : i32
    %123 = vector.broadcast %c15_i32_97 : i32 to vector<256x128xi32>
    %124 = arith.cmpi eq, %37, %123 : vector<256x128xi32>
    %cst_98 = arith.constant 0.000000e+00 : f32
    %125 = vector.broadcast %cst_98 : f32 to vector<256x128xf32>
    %126 = arith.select %124, %125, %122 : vector<256x128xi1>, vector<256x128xf32>
    %c0_99 = arith.constant 0 : index
    %c0_100 = arith.constant 0 : index
    %127 = vector.load %arg10[%c0_99, %c0_100] : memref<256x256xf32, #tpu.memory_space<vmem>>, vector<256x256xf32>
    %128 = arith.truncf %126 : vector<256x128xf32> to vector<256x128xbf16>
    %c8_101 = arith.constant 8 : index
    %c0_102 = arith.constant 0 : index
    %c0_103 = arith.constant 0 : index
    %129 = vector.load %arg5[%c8_101, %c0_102, %c0_103] : memref<9x128x256xbf16, #tpu.memory_space<vmem>>, vector<1x128x256xbf16>
    %130 = vector.shape_cast %129 : vector<1x128x256xbf16> to vector<128x256xbf16>
    %cst_104 = arith.constant dense<0.000000e+00> : vector<256x256xf32>
    %131 = tpu.matmul %128, %130, %cst_104 {dimension_numbers = #tpu.dot_dimension_numbers<[1], [0], [0], [1], [0, 0, 1, 1], [], []>} : vector<256x128xbf16>, vector<128x256xbf16>, vector<256x256xf32> -> vector<256x256xf32>
    %132 = arith.addf %127, %131 : vector<256x256xf32>
    %c0_105 = arith.constant 0 : index
    %c0_106 = arith.constant 0 : index
    %133 = vector.load %arg10[%c0_105, %c0_106] : memref<256x256xf32, #tpu.memory_space<vmem>>, vector<256x256xf32>
    tpu.vector_store %arg10[%c0_105, %c0_106], %132 {strides = array<i32>} : memref<256x256xf32, #tpu.memory_space<vmem>>, vector<256x256xf32>,
    %c0_107 = arith.constant 0 : index
    %c0_108 = arith.constant 0 : index
    %134 = vector.load %arg10[%c0_107, %c0_108] : memref<256x256xf32, #tpu.memory_space<vmem>>, vector<256x256xf32>
    %c0_109 = arith.constant 0 : index
    %c0_110 = arith.constant 0 : index
    %135 = vector.load %arg6[%c0_109, %c0_110] : memref<1x256xf32, #tpu.memory_space<vmem>>, vector<1x256xf32>
    %136 = vector.broadcast %135 : vector<1x256xf32> to vector<256x256xf32>
    %137 = arith.mulf %134, %136 : vector<256x256xf32>
    %c0_111 = arith.constant 0 : index
    %c0_112 = arith.constant 0 : index
    %138 = vector.load %arg7[%c0_111, %c0_112] : memref<1x256xf32, #tpu.memory_space<vmem>>, vector<1x256xf32>
    %139 = vector.broadcast %138 : vector<1x256xf32> to vector<256x256xf32>
    %140 = arith.addf %137, %139 : vector<256x256xf32>
    %cst_113 = arith.constant 0.000000e+00 : f32
    %141 = vector.broadcast %cst_113 : f32 to vector<256x256xf32>
    %142 = arith.cmpf oge, %140, %141 : vector<256x256xf32>
    %cst_114 = arith.constant 1.000000e-01 : f32
    %143 = vector.broadcast %cst_114 : f32 to vector<256x256xf32>
    %144 = arith.mulf %143, %140 : vector<256x256xf32>
    %145 = arith.select %142, %140, %144 : vector<256x256xi1>, vector<256x256xf32>
    %146 = arith.addf %145, %1 : vector<256x256xf32>
    %c0_115 = arith.constant 0 : index
    %c0_116 = arith.constant 0 : index
    %c0_117 = arith.constant 0 : index
    %147 = vector.load %arg8[%c0_115, %c0_116, %c0_117] : memref<1x256x256xf32, #tpu.memory_space<vmem>>, vector<1x256x256xf32>
    %148 = vector.shape_cast %147 : vector<1x256x256xf32> to vector<256x256xf32>
    %149 = vector.shape_cast %146 : vector<256x256xf32> to vector<1x256x256xf32>
    tpu.vector_store %arg8[%c0_115, %c0_116, %c0_117], %149 {strides = array<i32>} : memref<1x256x256xf32, #tpu.memory_space<vmem>>, vector<1x256x256xf32>,
    return
  }
  func.func @transform_0(%arg0: i32) -> (i32, i32, i32) {
    %c0_i32 = arith.constant 0 : i32
    %c0_i32_0 = arith.constant 0 : i32
    %c0_i32_1 = arith.constant 0 : i32
    return %arg0, %c0_i32, %c0_i32_0 : i32, i32, i32
  }
  func.func @transform_1(%arg0: i32) -> (i32, i32) {
    %c0_i32 = arith.constant 0 : i32
    %c0_i32_0 = arith.constant 0 : i32
    %c0_i32_1 = arith.constant 0 : i32
    return %c0_i32, %c0_i32_0 : i32, i32
  }
  func.func @transform_2(%arg0: i32) -> (i32, i32) {
    %c0_i32 = arith.constant 0 : i32
    %c0_i32_0 = arith.constant 0 : i32
    %c0_i32_1 = arith.constant 0 : i32
    return %c0_i32, %c0_i32_0 : i32, i32
  }
  func.func @transform_3(%arg0: i32) -> (i32, i32) {
    %c0_i32 = arith.constant 0 : i32
    %c0_i32_0 = arith.constant 0 : i32
    %c0_i32_1 = arith.constant 0 : i32
    return %c0_i32, %c0_i32_0 : i32, i32
  }
  func.func @transform_4(%arg0: i32) -> (i32, i32, i32) {
    %c0_i32 = arith.constant 0 : i32
    %c0_i32_0 = arith.constant 0 : i32
    %c0_i32_1 = arith.constant 0 : i32
    %c0_i32_2 = arith.constant 0 : i32
    return %c0_i32, %c0_i32_0, %c0_i32_1 : i32, i32, i32
  }
  func.func @transform_5(%arg0: i32) -> (i32, i32) {
    %c0_i32 = arith.constant 0 : i32
    %c0_i32_0 = arith.constant 0 : i32
    %c0_i32_1 = arith.constant 0 : i32
    return %c0_i32, %c0_i32_0 : i32, i32
  }
  func.func @transform_6(%arg0: i32) -> (i32, i32) {
    %c0_i32 = arith.constant 0 : i32
    %c0_i32_0 = arith.constant 0 : i32
    %c0_i32_1 = arith.constant 0 : i32
    return %c0_i32, %c0_i32_0 : i32, i32
  }
  func.func @transform_7(%arg0: i32) -> (i32, i32, i32) {
    %c0_i32 = arith.constant 0 : i32
    %c0_i32_0 = arith.constant 0 : i32
    %c0_i32_1 = arith.constant 0 : i32
    return %arg0, %c0_i32, %c0_i32_0 : i32, i32, i32
  }
}

</mosaic_0001>

<bundles_post_ra>
// kernel: block_forward.1
= control target key start
LH: loop header
LB: loop body
LE: loop exit
PB: predicated region body
PF: predicated region fallthrough
CT: control target
= control target key end

     0   :  { %s10724_s0 = inlined_call_operand.hbm [shape: f32[2,256,256], index: 0, kind: input, shape index: {}]   ;;  %s10725_s1 = inlined_call_operand.hbm [shape: bf16[256,128], index: 1, kind: input, shape index: {}]   ;;  %s10726_s2 = inlined_call_operand.hbm [shape: f32[1,128], index: 2, kind: input, shape index: {}]   ;;  %s10727_s3 = inlined_call_operand.vmem [shape: f32[1,128], index: 3, kind: input, shape index: {}]   ;;  %s10728_s4 = inlined_call_operand.hbm [shape: bf16[9,128,256], index: 4, kind: input, shape index: {}]   ;;  %s10729_s5 = inlined_call_operand.vmem [shape: f32[1,256], index: 5, kind: input, shape index: {}]   ;;  %s10730_s6 = inlined_call_operand.vmem [shape: f32[1,256], index: 6, kind: input, shape index: {}]   ;;  %s10731_s7 = inlined_call_operand.hbm [shape: f32[2,256,256], index: 7, kind: output, shape index: {}]  }
   0x1   :  { %10803 = sst [smem:[#allocation90_spill]] %s10725_s1 }
   0x2   :  { %12 = vsyncpa [#allocation5], 0 }
   0x3   :  { %14 = vsyncpa [#allocation5 + $0x1], 0 }
   0x4   :  { %15 = vsyncpa [#allocation8], 0 }
   0x5   :  { %16 = vsyncpa [#allocation11], 0 }
   0x6   :  { %17 = vsyncpa [#allocation6], 0 }
   0x7   :  { %19 = vsyncpa [#allocation6 + $0x1], 0  ;;  %s8461_s24 = smov 0   ;;  %s8463_s25 = smov 0  }
   0x8   :  { %s8465_s26 = smov 0   ;;  %s8467_s27 = smov 0  }
   0x9 LB: > { %s8482_s28 = sadd.s32 4294967295, %s8402_s27   ;;  %s7127_s29 = sadd.s32 4294967294, %s8402_s27   ;;  %s8402_s27 = sphi %s8467_s27, %s11257_s27   ;;  %s8398_s26 = sphi %s8465_s26, %s11256_s26   ;;  %s8394_s25 = sphi %s8463_s25, %s11255_s25   ;;  %s8390_s24 = sphi %s8461_s24, %s11254_s24  }
   0xa   : > { %p45_p0 = scmp.ne.s32.totalorder %s8394_s25, %s8390_s24  ;;  %p10732_p1 = scmp.eq.s32.totalorder %s8482_s28, 0 }
   0xb   : > { %p201_p3 = scmp.eq.s32.totalorder %s7127_s29, 1  ;;  %p7128_p5 = scmp.ge.s32.totalorder %s8402_s27, 1 }
   0xc   : > { %p8491_p4 = por %p10732_p1, %p45_p0  ;;  %p208_p7 = scmp.lt.s32.totalorder %s8402_s27, 3 }
   0xd   : > { %p8496_p6 = por %p201_p3, %p45_p0  ;;  %s8404_s10 = smov [#allocation7]  }
   0xe   : > { %s10804_s30 = scalar_select %p8491_p4, 1, 0 }
   0xf   : > { %s10805_s8 = scalar_select %p8496_p6, 1, 0 }
  0x10   : > { %p8501_p8 = pnand %p7128_p5, %p208_p7  ;;  %s220_s11 = sshll.u32 %s8404_s10, 4  ;;  %s221_s11 = int_to_ptr.vmem [resolvable:$true] %s220_s11 }
  0x11   : > { %s8405_s13 = smov [#allocation9]   ;;  %s8406_s15 = smov [#allocation10]  }
  0x12   : > { %s10806_s9 = scalar_select %p8501_p8, 1, 0 }
  0x13   : > { %p7855_p9 = pneg %p8501_p8  ;;  %s234_s14 = sshll.u32 %s8405_s13, 4  ;;  %s235_s14 = int_to_ptr.vmem [resolvable:$true] %s234_s14 }
  0x14   : > { %s247_s16 = sshll.u32 %s8406_s15, 4  ;;  %s8235_s17 = scalar_lea.vmem %s221_s11, 2048  ;;  %s248_s16 = int_to_ptr.vmem [resolvable:$true] %s247_s16 }
  0x15   : > { %p8510_p11 = pnand %p7855_p9, %p10732_p1  ;;  %p8236_p13 = scmp.ne.s32.totalorder %s221_s11, %s8235_s17 }
  0x16   : > { %p8243_p5 = scmp.lt.s32.totalorder %s221_s11, %s221_s11  ;;  %p8244_p7 = scmp.lt.s32.totalorder %s8235_s17, %s8235_s17 }
  0x17   : > { %p8226_p12 = pneg %p8510_p11 }
  0x18   : > { %p8245_p9 = por %p8244_p7, %p8243_p5 }
  0x19   : > { %p8238_p0 = pnand %p8236_p13, %p8226_p12 }
  0x1b   : > { %p8239_p3 = pneg %p8238_p0 }
  0x1d   : > { %p8246_p10 = pnand %p8245_p9, %p8239_p3 }
  0x1f   : > { %8249 = shalt.err (!%p8246_p10)
}
  0x20   : > { %s8407_s18 = smov 64   ;;  %s8408_s19 = smov 4  }
  0x21   : > { %s10808_s1 = sld [smem:[#allocation90_spill]]  ;;  %s8261_s22 = scalar_lea.vmem %s235_s14, 16 }
  0x22   : > { %p8262_p1 = scmp.ne.s32.totalorder %s235_s14, %s8261_s22  ;;  %s8268_s23 = scalar_lea.vmem %s235_s14, 32 }
  0x23   : > { %p8269_p2 = scmp.lt.s32.totalorder %s235_s14, %s235_s14  ;;  %p8270_p5 = scmp.lt.s32.totalorder %s8268_s23, %s8261_s22 }
  0x24   : > { %p8264_p13 = pnand %p8262_p1, %p8226_p12 }
  0x25   : > { %p8271_p3 = por %p8270_p5, %p8269_p2 }
  0x26   : > { %p8265_p0 = pneg %p8264_p13 }
  0x27   : > { %7858 = dma.hbm_to_vmem [thread:$0]  (!%p8510_p11), %s10808_s1, 2048, %s221_s11, [#allocation8], %s8407_s18, %s8407_s18, %s8408_s19  }
  0x28   : > { %p8272_p10 = pnand %p8271_p3, %p8265_p0 }
  0x2a   : > { %8275 = shalt.err (!%p8272_p10)
}
  0x2b   : > { %7861 = dma.hbm_to_vmem [thread:$0]  (!%p8510_p11), %s10726_s2, 16, %s235_s14, [#allocation8]  }
  0x2c   : > { %s8287_s11 = scalar_lea.vmem %s248_s16, 18432  ;;  %p8295_p13 = scmp.lt.s32.totalorder %s248_s16, %s248_s16 }
  0x2d   : > { %p8288_p7 = scmp.ne.s32.totalorder %s248_s16, %s8287_s11  ;;  %p8296_p6 = scmp.lt.s32.totalorder %s8287_s11, %s8287_s11 }
  0x2f   : > { %p8290_p1 = pnand %p8288_p7, %p8226_p12  ;;  %p8297_p4 = por %p8296_p6, %p8295_p13 }
  0x31   : > { %p8291_p9 = pneg %p8290_p1 }
  0x33   : > { %p8298_p2 = pnand %p8297_p4, %p8291_p9 }
  0x35   : > { %8301 = shalt.err (!%p8298_p2)
}
  0x36   : > { %s8409_s13 = smov 128   ;;  %s8410_s14 = smov 8  }
  0x37   : > { %7864 = dma.hbm_to_vmem [thread:$0]  (!%p8510_p11), %s10728_s4, 18432, %s248_s16, [#allocation11], %s8409_s13, %s8409_s13, %s8410_s14  }
  0x38   : > { %s8541_s18 = sadd.s32 1, %s8402_s27   ;;  %s32_s20 = sadd.s32 1, %s8398_s26 }
  0x39   : > { %s29_s19 = ssub.s32 %s8402_s27, %s8541_s18  ;;  %p39_p6 = scmp.ne.s32.totalorder %s8398_s26, %s8394_s25 }
  0x3a   : > { %p30_p4 = scmp.eq.s32.totalorder %s29_s19, 0  ;;  %p40_p12 = scmp.eq.s32.totalorder %s8402_s27, 0 }
  0x3b   : > { %p7876_p0 = scmp.lt.s32.totalorder %s8402_s27, 2  ;;  %p10809_p3 = scmp.eq.s32.totalorder %s8482_s28, 1 }
  0x3c   : > { %s8551_s21 = scalar_select %p30_p4, %s8398_s26, %s32_s20  }
  0x3d   : > { %p41_p5 = por %p40_p12, %p39_p6  ;;  %p8555_p10 = por %p10809_p3, %p39_p6 }
  0x3e   : > { %s267_s12 = sand.u32 1, %s8398_s26   ;;  %s7693_s23 = sshll.u32 %s8402_s27, 13 }
  0x3f   : > { %s10810_s22 = scalar_select %p8555_p10, 1, 0 }
  0x40   : > { %s7133_s16 = sshll.u32 %s267_s12, 9  ;;  %s8564_s11 = scalar_lea.hbm %s10724_s0, %s7693_s23 }
  0x41   : > { %s271_s13 = scalar_lea.vmem [#allocation4], %s7133_s16  ;;  %p8566_p11 = pnand %p7876_p0, %p41_p5 }
  0x42   : > { %s278_s14 = sshll.u32 %s271_s13, 4  ;;  %s8572_s17 = scalar_lea.sflag [#allocation5], %s267_s12  ;;  %s8570_s14 = int_to_ptr.vmem [resolvable:$true] %s278_s14 }
  0x43   : > { %s8302_s19 = scalar_lea.hbm %s8564_s11, 8192  ;;  %p8304_p1 = pneg %p8566_p11 }
  0x44   : > { %p8303_p7 = scmp.ne.s32.totalorder %s8564_s11, %s8302_s19  ;;  %s8307_s16 = scalar_lea.hbm %s10724_s0, 16384 }
  0x45   : > { %p8308_p2 = scmp.lt.s32.totalorder %s8564_s11, %s10724_s0  ;;  %p8309_p4 = scmp.lt.s32.totalorder %s8307_s16, %s8302_s19 }
  0x46   : > { %p8305_p9 = pnand %p8304_p1, %p8303_p7 }
  0x47   : > { %p8310_p6 = por %p8309_p4, %p8308_p2 }
  0x48   : > { %p8306_p13 = pneg %p8305_p9 }
  0x4a   : > { %p8311_p12 = pnand %p8310_p6, %p8306_p13 }
  0x4c   : > { %8314 = shalt.err (!%p8311_p12)
}
  0x4d   : > { %s8315_s12 = scalar_lea.vmem %s8570_s14, 8192  ;;  %s8411_s13 = smov [#allocation4]  }
  0x4e   : > { %p8316_p0 = scmp.ne.s32.totalorder %s8570_s14, %s8315_s12  ;;  %s8320_s1 = sshll.u32 %s8411_s13, 4  ;;  %s8321_s1 = int_to_ptr.vmem [resolvable:$false] %s8320_s1 }
  0x4f   : > { %s8322_s20 = scalar_lea.vmem %s8321_s1, 16384  ;;  %p8323_p7 = scmp.lt.s32.totalorder %s8570_s14, %s8321_s1 }
  0x50   : > { %p8318_p5 = pnand %p8316_p0, %p8304_p1  ;;  %p8324_p9 = scmp.lt.s32.totalorder %s8322_s20, %s8315_s12 }
  0x52   : > { %p8319_p3 = pneg %p8318_p5  ;;  %p8325_p10 = por %p8324_p9, %p8323_p7 }
  0x54   : > { %p8326_p8 = pnand %p8325_p10, %p8319_p3 }
  0x56   : > { %8329 = shalt.err (!%p8326_p8)
}
  0x57   : > { %s8412_s19 = smov 256   ;;  %s8413_s23 = smov 16  }
  0x58   : > { %7868 = dma.hbm_to_vmem [thread:$0]  (!%p8566_p11), %s8564_s11, 8192, %s8570_s14, %s8572_s17, %s8412_s19, %s8412_s19, %s8413_s23  }
  0x59   : > { %p10812_p1 = scmp.ne.s32.totalorder %s10806_s9, 0 }
  0x5b   : > { %290 = sbr.rel (%p10812_p1) target bundleno = 1206 (0x4b6), region = 48 }
  0x60   : > { %s8596_s16 = sand.u32 1, %s8394_s25   ;;  %p10813_p8 = scmp.ne.s32.totalorder %s10804_s30, 0 }
  0x61   : > { %s7137_s1 = sshll.u32 %s8596_s16, 9  ;;  %s293_s29 = scalar_lea.sflag [#allocation5], %s8596_s16 }
  0x62   : > { %s8602_s10 = scalar_lea.vmem [#allocation4], %s7137_s1 }
  0x63   : > { %8373 = dma.done.wait (%p10813_p8), %s293_s29, 8192  }
  0x64   : > { %8375 = vsyncadd (%p10813_p8), %s293_s29, 4294959104  ;;  %p10814_p10 = scmp.eq.s32.totalorder %s8482_s28, 0 }
  0x66   : > { %8377 = dma.done.wait (%p10814_p10), [#allocation8], 2064   ;;  %p10815_p11 = pmov %p10814_p10 }
  0x67   : > { %p10816_p13 = pmov %p10814_p10 }
  0x68   : > { %8379 = vsyncadd (%p10815_p11), [#allocation8], 4294965232 }
  0x69   : > { %8381 = dma.done.wait (%p10816_p13), [#allocation11], 18432   ;;  %p10817_p2 = pmov %p10814_p10 }
  0x6a   : > { %v7927_v0 = vld [vmem:[#allocation7 + $0x78] sm:$0xff]   ;;  %v7929_v2 = vld [vmem:[#allocation7 + $0x70] sm:$0xff]   ;;  %v7931_v4 = vld [vmem:[#allocation7 + $0x68] sm:$0xff]   ;;  %vm10762_vm1 = vmmov 1   ;;  %s10272_s12 = scalar_lea.vmem [#allocation12], %s7137_s1  ;;  %s7694_s13 = sshll.u32 %s8482_s28, 13 }
  0x6b   : > { %8383 = vsyncadd (%p10817_p2), [#allocation11], 4294948864  ;;  %v7928_v1 = vld [vmem:[#allocation7 + $0x38] sm:$0xff]   ;;  %7727 = vmatprep.subr.bf16.mxu0 %v7927_v0  ;;  %v7930_v3 = vld [vmem:[#allocation7 + $0x30] sm:$0xff]   ;;  %s7025_s20 = sshll.u32 %s10272_s12, 4  ;;  %s10676_s1 = scalar_lea.hbm %s10731_s7, %s7694_s13  ;;  %s10678_s20 = int_to_ptr.vmem [resolvable:$true] %s7025_s20 }
  0x6c   : > { %7728 = vmatpush3.bf16.msra.mxu0 %v7928_v1  ;;  %v7932_v5 = vld [vmem:[#allocation7 + $0x28] sm:$0xff]   ;;  %v7933_v6 = vld [vmem:[#allocation7 + $0x60] sm:$0xff]   ;;  %v7935_v8 = vld [vmem:[#allocation7 + $0x58] sm:$0xff]   ;;  %s7012_s28 = scalar_lea.sflag [#allocation6], %s8596_s16  ;;  %s8330_s29 = scalar_lea.vmem %s10678_s20, 8192 }
  0x6d   : > { %7729 = vmatprep.subr.bf16.mxu0 %v7929_v2  ;;  %v7934_v7 = vld [vmem:[#allocation7 + $0x20] sm:$0xff]   ;;  %v7936_v9 = vld [vmem:[#allocation7 + $0x18] sm:$0xff]   ;;  %v7937_v10 = vld [vmem:[#allocation7 + $0x50] sm:$0xff]   ;;  %p8331_p4 = scmp.ne.s32.totalorder %s10678_s20, %s8330_s29  ;;  %p11251_p6 = scmp.ne.s32.totalorder %s10810_s22, 0 }
  0x6e   : > { %v341_v11 = vld [vmem:[%s8602_s10 + $0x8] sm:$0xff]  ;;  %v343_v12 = vld [vmem:[%s8602_s10 + $0x18] sm:$0xff]  ;;  %v7938_v14 = vld [vmem:[#allocation7 + $0x10] sm:$0xff]   ;;  %s8418_s30 = smov [#allocation12]  }
  0x6f   : > { %v405_v13 = vpack.c.bf16 %v343_v12, %v341_v11  ;;  %v7939_v15 = vld [vmem:[#allocation7 + $0x48] sm:$0xff]   ;;  %v7941_v17 = vld [vmem:[#allocation7 + $0x40] sm:$0xff]   ;;  %v342_v20 = vld [vmem:[%s8602_s10 + $0x10] sm:$0xff]  ;;  %p8332_p12 = pnand %p8331_p4, %p11251_p6  ;;  %s8334_s9 = sshll.u32 %s8418_s30, 4  ;;  %s8335_s9 = int_to_ptr.vmem [resolvable:$false] %s8334_s9 }
  0x70   : > { %7730 = vmatpush3.bf16.msra.mxu0 %v7930_v3  ;;  %v7940_v16 = vld [vmem:[#allocation7 + $0x8] sm:$0xff]   ;;  %v7942_v18 = vld [vmem:[#allocation7] sm:$0xff]   ;;  %v347_v22 = vld [vmem:[%s8602_s10 + $0x38] sm:$0xff]  ;;  %s8336_s11 = scalar_lea.vmem %s8335_s9, 16384  ;;  %p8337_p5 = scmp.lt.s32.totalorder %s10678_s20, %s8335_s9 }
  0x71   : > { %7731 = vmatprep.subr.bf16.mxu0 %v7931_v4  ;;  %596 = vmatprep.mubr.bf16.mxu0 %v405_v13  ;;  %v340_v19 = vld [vmem:[%s8602_s10] sm:$0xff]  ;;  %v345_v21 = vld [vmem:[%s8602_s10 + $0x28] sm:$0xff]  ;;  %v346_v26 = vld [vmem:[%s8602_s10 + $0x30] sm:$0xff]  ;;  %p8333_p0 = pneg %p8332_p12  ;;  %p8338_p3 = scmp.lt.s32.totalorder %s8336_s11, %s8330_s29 }
  0x72   : > { %v404_v23 = vpack.c.bf16 %v342_v20, %v340_v19  ;;  %v407_v24 = vpack.c.bf16 %v347_v22, %v345_v21  ;;  %v344_v25 = vld [vmem:[%s8602_s10 + $0x20] sm:$0xff]  ;;  %v349_v27 = vld [vmem:[%s8602_s10 + $0x48] sm:$0xff]  ;;  %v351_v28 = vld [vmem:[%s8602_s10 + $0x58] sm:$0xff] }
  0x73   : > { %v406_v29 = vpack.c.bf16 %v346_v26, %v344_v25  ;;  %v7943_v30 = vld [vmem:[#allocation10 + $0x74] ss:$8 sps:$4 sm:$0xff]   ;;  %v409_v31 = vpack.c.bf16 %v351_v28, %v349_v27  ;;  %v7945_v32 = vld [vmem:[#allocation10 + $0xf0] ss:$8 sps:$4 sm:$0xff]   ;;  %v7949_v35 = vld [vmem:[#allocation10 + $0x64] ss:$8 sps:$4 sm:$0xff]   ;;  %p8339_p7 = por %p8338_p3, %p8337_p5 }
  0x74   : > { %7732 = vmatpush3.bf16.msra.mxu0 %v7932_v5  ;;  %v7947_v33 = vld [vmem:[#allocation10 + $0xf4] ss:$8 sps:$4 sm:$0xff]   ;;  %v7948_v34 = vld [vmem:[#allocation10 + $0x70] ss:$8 sps:$4 sm:$0xff]   ;;  %1722 = vmatprep.subr.bf16.mxu1 %v7943_v30  ;;  %v7951_v38 = vld [vmem:[#allocation10 + $0xe0] ss:$8 sps:$4 sm:$0xff]  }
  0x75   : > { %7733 = vmatprep.subr.bf16.mxu0 %v7933_v6  ;;  %v348_v36 = vld [vmem:[%s8602_s10 + $0x40] sm:$0xff]  ;;  %v350_v37 = vld [vmem:[%s8602_s10 + $0x50] sm:$0xff]  ;;  %1723 = vmatpush1.bf16.msra.mxu1 %v7948_v34  ;;  %v353_v39 = vld [vmem:[%s8602_s10 + $0x68] sm:$0xff]  ;;  %p8340_p9 = pnand %p8339_p7, %p8333_p0 }
  0x76   : > { %1724 = vmatprep.subr.bf16.mxu1 %v7949_v35  ;;  %v7953_v40 = vld [vmem:[#allocation10 + $0xe4] ss:$8 sps:$4 sm:$0xff]   ;;  %v7954_v41 = vld [vmem:[#allocation10 + $0x60] ss:$8 sps:$4 sm:$0xff]   ;;  %v7955_v42 = vld [vmem:[#allocation10 + $0x54] ss:$8 sps:$4 sm:$0xff]   ;;  %v408_v46 = vpack.c.bf16 %v350_v37, %v348_v36 }
  0x77   : > { %v355_v43 = vld [vmem:[%s8602_s10 + $0x78] sm:$0xff]  ;;  %v7961_v47 = vld [vmem:[#allocation10 + $0x44] ss:$8 sps:$4 sm:$0xff]   ;;  %v7963_v53 = vld [vmem:[#allocation10 + $0xc0] ss:$8 sps:$4 sm:$0xff]  }
  0x78   : > { %7734 = vmatpush3.bf16.msra.mxu0 %v7934_v7  ;;  %v7959_v44 = vld [vmem:[#allocation10 + $0xd4] ss:$8 sps:$4 sm:$0xff]   ;;  %v7960_v45 = vld [vmem:[#allocation10 + $0x50] ss:$8 sps:$4 sm:$0xff]   ;;  %v411_v48 = vpack.c.bf16 %v355_v43, %v353_v39  ;;  %v7965_v50 = vld [vmem:[#allocation10 + $0xc4] ss:$8 sps:$4 sm:$0xff]  }
  0x79   : > { %7735 = vmatprep.subr.bf16.mxu0 %v7935_v8  ;;  %1725 = vmatpush1.bf16.msra.mxu1 %v7954_v41  ;;  %v7957_v49 = vld [vmem:[#allocation10 + $0xd0] ss:$8 sps:$4 sm:$0xff]   ;;  %v352_v51 = vld [vmem:[%s8602_s10 + $0x60] sm:$0xff]  ;;  %v357_v55 = vld [vmem:[%s8602_s10 + $0x88] sm:$0xff]  ;;  %v8414_v39 = vmov 0.0  }
  0x7a   : > { %1726 = vmatprep.subr.bf16.mxu1 %v7955_v42  ;;  %v354_v52 = vld [vmem:[%s8602_s10 + $0x70] sm:$0xff]  ;;  %v7966_v54 = vld [vmem:[#allocation10 + $0x40] ss:$8 sps:$4 sm:$0xff]   ;;  %v359_v56 = vld [vmem:[%s8602_s10 + $0x98] sm:$0xff]  ;;  %899 = vst [vmem:[#allocation2] sm:$0xff] %v8414_v39 }
  0x7b   : > { %v7967_v57 = vld [vmem:[#allocation10 + $0x34] ss:$8 sps:$4 sm:$0xff]   ;;  %v7972_v59 = vld [vmem:[#allocation10 + $0x30] ss:$8 sps:$4 sm:$0xff]   ;;  %v410_v61 = vpack.c.bf16 %v354_v52, %v352_v51  ;;  %v413_v62 = vpack.c.bf16 %v359_v56, %v357_v55  ;;  %v361_v1 = vld [vmem:[%s8602_s10 + $0xa8] sm:$0xff]  ;;  %900 = vst [vmem:[#allocation2 + $0x8] sm:$0xff] %v8414_v39 }
  0x7c   : > { %7736 = vmatpush3.bf16.msra.mxu0 %v7936_v9  ;;  %v7971_v58 = vld [vmem:[#allocation10 + $0xb4] ss:$8 sps:$4 sm:$0xff]   ;;  %v7969_v60 = vld [vmem:[#allocation10 + $0xb0] ss:$8 sps:$4 sm:$0xff]   ;;  %v365_v7 = vld [vmem:[%s8602_s10 + $0xc8] sm:$0xff]  ;;  %901 = vst [vmem:[#allocation2 + $0x10] sm:$0xff] %v8414_v39 }
  0x7d   : > { %7737 = vmatprep.subr.bf16.mxu0 %v7937_v10  ;;  %1727 = vmatpush1.bf16.msra.mxu1 %v7960_v45  ;;  %v356_v63 = vld [vmem:[%s8602_s10 + $0x80] sm:$0xff]  ;;  %v358_v0 = vld [vmem:[%s8602_s10 + $0x90] sm:$0xff]  ;;  %v363_v2 = vld [vmem:[%s8602_s10 + $0xb8] sm:$0xff]  ;;  %934 = vst [vmem:[#allocation2 + $0x118] sm:$0xff] %v8414_v39 }
  0x7e   : > { %1728 = vmatprep.subr.bf16.mxu1 %v7961_v47  ;;  %v412_v3 = vpack.c.bf16 %v358_v0, %v356_v63  ;;  %v415_v4 = vpack.c.bf16 %v363_v2, %v361_v1  ;;  %v360_v5 = vld [vmem:[%s8602_s10 + $0xa0] sm:$0xff]  ;;  %v362_v6 = vld [vmem:[%s8602_s10 + $0xb0] sm:$0xff]  ;;  %v367_v8 = vld [vmem:[%s8602_s10 + $0xd8] sm:$0xff]  ;;  %935 = vst [vmem:[#allocation2 + $0x120] sm:$0xff] %v8414_v39 }
  0x7f   : > { %v414_v9 = vpack.c.bf16 %v362_v6, %v360_v5  ;;  %v417_v10 = vpack.c.bf16 %v367_v8, %v365_v7  ;;  %v364_v11 = vld [vmem:[%s8602_s10 + $0xc0] sm:$0xff]  ;;  %v366_v12 = vld [vmem:[%s8602_s10 + $0xd0] sm:$0xff]  ;;  %v369_v13 = vld [vmem:[%s8602_s10 + $0xe8] sm:$0xff]  ;;  %936 = vst [vmem:[#allocation2 + $0x128] sm:$0xff] %v8414_v39 }
  0x80   : > { %7738 = vmatpush3.bf16.msra.mxu0 %v7938_v14  ;;  %v371_v14 = vld [vmem:[%s8602_s10 + $0xf8] sm:$0xff]  ;;  %v373_v19 = vld [vmem:[%s8602_s10 + $0x108] sm:$0xff]  ;;  %v376_v34 = vld [vmem:[%s8602_s10 + $0x120] sm:$0xff] }
  0x81   : > { %7739 = vmatprep.subr.bf16.mxu0 %v7939_v15  ;;  %1729 = vmatpush1.bf16.msra.mxu1 %v7966_v54  ;;  %v416_v15 = vpack.c.bf16 %v366_v12, %v364_v11  ;;  %v375_v20 = vld [vmem:[%s8602_s10 + $0x118] sm:$0xff]  ;;  %v377_v25 = vld [vmem:[%s8602_s10 + $0x128] sm:$0xff]  ;;  %v378_v35 = vld [vmem:[%s8602_s10 + $0x130] sm:$0xff] }
  0x82   : > { %1730 = vmatprep.subr.bf16.mxu1 %v7967_v57  ;;  %v421_v22 = vpack.c.bf16 %v375_v20, %v373_v19  ;;  %v379_v26 = vld [vmem:[%s8602_s10 + $0x138] sm:$0xff]  ;;  %v7977_v28 = vld [vmem:[#allocation10 + $0xa4] ss:$8 sps:$4 sm:$0xff]   ;;  %v7975_v30 = vld [vmem:[#allocation10 + $0xa0] ss:$8 sps:$4 sm:$0xff]   ;;  %v422_v42 = vpack.c.bf16 %v378_v35, %v376_v34  ;;  %v10752_v57 = vmov 0  }
  0x83   : > { %v7981_v36 = vld [vmem:[#allocation10 + $0x90] ss:$8 sps:$4 sm:$0xff]   ;;  %v381_v37 = vld [vmem:[%s8602_s10 + $0x148] sm:$0xff]  ;;  %v1451_v54 = vld [vmem:[#allocation2 + $0xf] sm:$0xff]  ;;  %1754 = vmatprep.mubr.bf16.mxu1 %v10752_v57 }
  0x84   : > { %7740 = vmatpush3.bf16.msra.mxu0 %v7940_v16  ;;  %v419_v16 = vpack.c.bf16 %v371_v14, %v369_v13  ;;  %v7984_v41 = vld [vmem:[#allocation10 + $0x10] ss:$8 sps:$4 sm:$0xff]   ;;  %v7989_v43 = vld [vmem:[#allocation10 + $0x84] ss:$8 sps:$4 sm:$0xff]   ;;  %v7993_v5 = vld [vmem:[#allocation10 + $0x174] ss:$8 sps:$4 sm:$0xff]  }
  0x85   : > { %7741 = vmatprep.subr.bf16.mxu0 %v7941_v17  ;;  %1731 = vmatpush1.bf16.msra.mxu1 %v7972_v59  ;;  %v368_v17 = vld [vmem:[%s8602_s10 + $0xe0] sm:$0xff]  ;;  %v382_v52 = vld [vmem:[%s8602_s10 + $0x150] sm:$0xff]  ;;  %v385_v55 = vld [vmem:[%s8602_s10 + $0x168] sm:$0xff]  ;;  %v10819_v59 = vmov 0 }
  0x86   : > { %v7985_v47 = vld [vmem:[#allocation10 + $0x4] ss:$8 sps:$4 sm:$0xff]   ;;  %v387_v56 = vld [vmem:[%s8602_s10 + $0x178] sm:$0xff] }
  0x87   : > { %v386_v63 = vld [vmem:[%s8602_s10 + $0x170] sm:$0xff]  ;;  %v389_v0 = vld [vmem:[%s8602_s10 + $0x188] sm:$0xff]  ;;  %v391_v1 = vld [vmem:[%s8602_s10 + $0x198] sm:$0xff] }
  0x88   : > { %7742 = vmatpush3.bf16.msra.mxu0 %v7942_v18  ;;  %v370_v18 = vld [vmem:[%s8602_s10 + $0xf0] sm:$0xff]  ;;  %v388_v6 = vld [vmem:[%s8602_s10 + $0x180] sm:$0xff]  ;;  %v393_v8 = vld [vmem:[%s8602_s10 + $0x1a8] sm:$0xff] }
  0x89   : > { %2252 = vmatprep.subr.bf16.mxu0 %v7947_v33  ;;  %v418_v21 = vpack.c.bf16 %v370_v18, %v368_v17  ;;  %v7983_v33 = vld [vmem:[#allocation10 + $0x94] ss:$8 sps:$4 sm:$0xff]   ;;  %v397_v14 = vld [vmem:[%s8602_s10 + $0x1c8] sm:$0xff]  ;;  %v8003_v34 = vld [vmem:[#allocation10 + $0x130] ss:$8 sps:$4 sm:$0xff]  }
  0x8a   : > { %v390_v7 = vld [vmem:[%s8602_s10 + $0x190] sm:$0xff]  ;;  %v392_v12 = vld [vmem:[%s8602_s10 + $0x1a0] sm:$0xff] }
  0x8b   : > { %597 = vmatmul.mubr.bf16.vlgmr.msra.gmra.mxu0 %v404_v23  ;;  %v372_v23 = vld [vmem:[%s8602_s10 + $0x100] sm:$0xff]  ;;  %v394_v13 = vld [vmem:[%s8602_s10 + $0x1b0] sm:$0xff] }
  0x8c   : > { %604 = vmatprep.mubr.bf16.mxu0 %v407_v24  ;;  %2253 = vmatpush1.bf16.msra.mxu0 %v7945_v32  ;;  %v374_v24 = vld [vmem:[%s8602_s10 + $0x110] sm:$0xff]  ;;  %v7978_v32 = vld [vmem:[#allocation10 + $0x20] ss:$8 sps:$4 sm:$0xff]  }
  0x8d   : > { %2254 = vmatprep.subr.bf16.mxu0 %v7953_v40  ;;  %v420_v27 = vpack.c.bf16 %v374_v24, %v372_v23  ;;  %v7979_v40 = vld [vmem:[#allocation10 + $0x14] ss:$8 sps:$4 sm:$0xff]   ;;  %v7994_v18 = vld [vmem:[#allocation10 + $0x160] ss:$8 sps:$4 sm:$0xff]   ;;  %v7996_v19 = vld [vmem:[#allocation10 + $0x164] ss:$8 sps:$4 sm:$0xff]  }
  0x8e   : > { %v396_v20 = vld [vmem:[%s8602_s10 + $0x1c0] sm:$0xff]  ;;  %v403_v23 = vld [vmem:[%s8602_s10 + $0x1f8] sm:$0xff] }
  0x8f   : > { %v8005_v35 = vld [vmem:[#allocation10 + $0x134] ss:$8 sps:$4 sm:$0xff]  }
  0x90   : > { %2255 = vmatpush1.bf16.msra.mxu0 %v7951_v38  ;;  %v383_v38 = vld [vmem:[%s8602_s10 + $0x158] sm:$0xff] }
  0x91   : > { %2256 = vmatprep.subr.bf16.mxu0 %v7959_v44  ;;  %v1033_v44 = vlaneseq  ;;  %v425_v45 = vpack.c.bf16 %v383_v38, %v381_v37  ;;  %v8008_v37 = vld [vmem:[#allocation10 + $0x124] ss:$8 sps:$4 sm:$0xff]   ;;  %v8012_v38 = vld [vmem:[#allocation10 + $0x1f0] ss:$8 sps:$4 sm:$0xff]   ;;  %v8014_v39 = vld [vmem:[#allocation10 + $0x1f4] ss:$8 sps:$4 sm:$0xff]  }
  0x93   : > { %605 = vmatmul.mubr.bf16.gmra.mxu0 %v406_v29  ;;  %v423_v29 = vpack.c.bf16 %v379_v26, %v377_v25  ;;  %v400_v26 = vld [vmem:[%s8602_s10 + $0x1e0] sm:$0xff] }
  0x94   : > { %612 = vmatprep.mubr.bf16.mxu0 %v409_v31  ;;  %2257 = vmatpush1.bf16.msra.mxu0 %v7957_v49  ;;  %v7973_v31 = vld [vmem:[#allocation10 + $0x24] ss:$8 sps:$4 sm:$0xff]   ;;  %v7990_v49 = vld [vmem:[#allocation10] ss:$8 sps:$4 sm:$0xff]  }
  0x95   : > { %2258 = vmatprep.subr.bf16.mxu0 %v7965_v50  ;;  %1732 = vmatprep.subr.bf16.mxu1 %v7973_v31  ;;  %v380_v50 = vld [vmem:[%s8602_s10 + $0x140] sm:$0xff]  ;;  %v8417_v31 = vmov 0.0|0.0  }
  0x96   : > { %1733 = vmatpush1.bf16.msra.mxu1 %v7978_v32  ;;  %v8000_v32 = vld [vmem:[#allocation10 + $0x140] ss:$8 sps:$4 sm:$0xff]  }
  0x97   : > { %1734 = vmatprep.subr.bf16.mxu1 %v7979_v40  ;;  %v8017_v40 = vld [vmem:[#allocation10 + $0x1e4] ss:$8 sps:$4 sm:$0xff]  }
  0x98   : > { %2259 = vmatpush1.bf16.msra.mxu0 %v7963_v53  ;;  %v1450_v53 = vld [vmem:[#allocation2 + $0x7] sm:$0xff] }
  0x99   : > { %2260 = vmatprep.subr.bf16.mxu0 %v7971_v58  ;;  %v7178_v58 = vpack.c.bf16 %v1451_v54, %v1450_v53  ;;  %v8035_v54 = vld [vmem:[#allocation10 + $0x194] ss:$8 sps:$4 sm:$0xff]  }
  0x9a   : > { %1735 = vmatpush1.bf16.msra.mxu1 %v7984_v41  ;;  %v8015_v41 = vld [vmem:[#allocation10 + $0x1e0] ss:$8 sps:$4 sm:$0xff]  }
  0x9b   : > { %613 = vmatmul.mubr.bf16.gmra.mxu0 %v408_v46  ;;  %v7987_v46 = vld [vmem:[#allocation10 + $0x80] ss:$8 sps:$4 sm:$0xff]   ;;  %1736 = vmatprep.subr.bf16.mxu1 %v7985_v47  ;;  %v8011_v47 = vld [vmem:[#allocation10 + $0x114] ss:$8 sps:$4 sm:$0xff]  }
  0x9c   : > { %620 = vmatprep.mubr.bf16.mxu0 %v411_v48  ;;  %2261 = vmatpush1.bf16.msra.mxu0 %v7969_v60  ;;  %v8658_v48 = vshrl.u32 %v1033_v44, 7  ;;  %v424_v60 = vpack.c.bf16 %v382_v52, %v380_v50  ;;  %v8023_v44 = vld [vmem:[#allocation10 + $0x1c4] ss:$8 sps:$4 sm:$0xff]   ;;  %v8029_v50 = vld [vmem:[#allocation10 + $0x1b4] ss:$8 sps:$4 sm:$0xff]  }
  0x9d   : > { %2262 = vmatprep.subr.bf16.mxu0 %v7977_v28  ;;  %v8030_v52 = vld [vmem:[#allocation10 + $0x1a0] ss:$8 sps:$4 sm:$0xff]  }
  0x9e   : > { %10818 = vst [vmem:[#allocation17_spill] sm:$0xff] %v8658_v48  ;;  %v1070_v51 = vand.u32 15, %v8658_v48  ;;  %1737 = vmatpush1.bf16.msra.mxu1 %v7990_v49  ;;  %v8027_v49 = vld [vmem:[#allocation10 + $0x1b0] ss:$8 sps:$4 sm:$0xff]  }
  0x9f   : > { %2846 = vmatprep.subr.bf16.mxu1 %v7993_v5 }
  0xa0   : > { %2263 = vmatpush1.bf16.msra.mxu0 %v7975_v30  ;;  %vm7695_vm0 = vcmp.ne.s32.totalorder %v1070_v51, 0  ;;  %v7999_v30 = vld [vmem:[#allocation10 + $0x154] ss:$8 sps:$4 sm:$0xff]   ;;  %v8032_v51 = vld [vmem:[#allocation10 + $0x1a4] ss:$8 sps:$4 sm:$0xff]  }
  0xa1   : > { %2264 = vmatprep.subr.bf16.mxu0 %v7983_v33  ;;  %vm8667_vm2 = vmpackc.low %vm10762_vm1, %vm7695_vm0  ;;  %v8002_v33 = vld [vmem:[#allocation10 + $0x144] ss:$8 sps:$4 sm:$0xff]  }
  0xa2   : > { %v10820_v59 = vsel %vm8667_vm2, 4294967295, %v10819_v59  ;;  %7179 = vmatmul.mubr.msk.bf16.vlgmr.msra.gmra.mxu1 %vm8667_vm2, %v7178_v58  ;;  %v8694_v58 = vld [vmem:[#allocation9] ss:$0 sm:$0xff] }
  0xa3   : > { %621 = vmatmul.mubr.bf16.gmra.mxu0 %v410_v61  ;;  %10821 = vst [vmem:[#allocation18_spill] sm:$0xff] %v10820_v59  ;;  %v427_v61 = vpack.c.bf16 %v387_v56, %v385_v55  ;;  %1764 = vmatprep.mubr.bf16.mxu1 %v10752_v57  ;;  %v8033_v55 = vld [vmem:[#allocation10 + $0x190] ss:$8 sps:$4 sm:$0xff]  }
  0xa4   : > { %628 = vmatprep.mubr.bf16.mxu0 %v413_v62  ;;  %2265 = vmatpush1.bf16.msra.mxu0 %v7981_v36  ;;  %v384_v62 = vld [vmem:[%s8602_s10 + $0x160] sm:$0xff] }
  0xa5   : > { %2266 = vmatprep.subr.bf16.mxu0 %v7989_v43  ;;  %v426_v2 = vpack.c.bf16 %v386_v63, %v384_v62  ;;  %v8006_v36 = vld [vmem:[#allocation10 + $0x120] ss:$8 sps:$4 sm:$0xff]   ;;  %v8018_v43 = vld [vmem:[#allocation10 + $0x1d0] ss:$8 sps:$4 sm:$0xff]   ;;  %v8038_v63 = vld [vmem:[#allocation10 + $0x184] ss:$8 sps:$4 sm:$0xff]  }
  0xa8   : > { %2267 = vmatpush1.bf16.msra.mxu0 %v7987_v46  ;;  %v8009_v46 = vld [vmem:[#allocation10 + $0x110] ss:$8 sps:$4 sm:$0xff]  }
  0xa9   : > { %3408 = vmatprep.subr.bf16.mxu0 %v8014_v39 }
  0xab   : > { %629 = vmatmul.mubr.bf16.gmra.mxu0 %v412_v3  ;;  %v429_v3 = vpack.c.bf16 %v391_v1, %v389_v0  ;;  %v8036_v1 = vld [vmem:[#allocation10 + $0x180] ss:$8 sps:$4 sm:$0xff]  }
  0xac   : > { %636 = vmatprep.mubr.bf16.mxu0 %v415_v4  ;;  %v7991_v4 = vld [vmem:[#allocation10 + $0x170] ss:$8 sps:$4 sm:$0xff]  }
  0xad   : > { %2847 = vmatpush1.bf16.msra.mxu1 %v7991_v4 }
  0xae   : > { %2848 = vmatprep.subr.bf16.mxu1 %v7996_v19 }
  0xb1   : > { %2849 = vmatpush1.bf16.msra.mxu1 %v7994_v18 }
  0xb2   : > { %2850 = vmatprep.subr.bf16.mxu1 %v7999_v30 }
  0xb3   : > { %637 = vmatmul.mubr.bf16.gmra.mxu0 %v414_v9  ;;  %v395_v9 = vld [vmem:[%s8602_s10 + $0x1b8] sm:$0xff] }
  0xb4   : > { %644 = vmatprep.mubr.bf16.mxu0 %v417_v10  ;;  %v428_v10 = vpack.c.bf16 %v390_v7, %v388_v6  ;;  %v431_v11 = vpack.c.bf16 %v395_v9, %v393_v8  ;;  %v8024_v6 = vld [vmem:[#allocation10 + $0x100] ss:$8 sps:$4 sm:$0xff]   ;;  %v8026_v7 = vld [vmem:[#allocation10 + $0x104] ss:$8 sps:$4 sm:$0xff]  }
  0xbb   : > { %645 = vmatmul.mubr.bf16.gmra.mxu0 %v416_v15  ;;  %v399_v15 = vld [vmem:[%s8602_s10 + $0x1d8] sm:$0xff] }
  0xbc   : > { %652 = vmatprep.mubr.bf16.mxu0 %v419_v16  ;;  %v430_v16 = vpack.c.bf16 %v394_v13, %v392_v12  ;;  %v433_v17 = vpack.c.bf16 %v399_v15, %v397_v14  ;;  %v8041_v14 = vld [vmem:[#allocation10 + $0x274] ss:$8 sps:$4 sm:$0xff]  }
  0xc3   : > { %653 = vmatmul.mubr.bf16.gmra.mxu0 %v418_v21  ;;  %v398_v21 = vld [vmem:[%s8602_s10 + $0x1d0] sm:$0xff] }
  0xc4   : > { %660 = vmatprep.mubr.bf16.mxu0 %v421_v22  ;;  %v401_v22 = vld [vmem:[%s8602_s10 + $0x1e8] sm:$0xff]  ;;  %v432_v24 = vpack.c.bf16 %v398_v21, %v396_v20 }
  0xc5   : > { %v435_v25 = vpack.c.bf16 %v403_v23, %v401_v22 }
  0xcb   : > { %661 = vmatmul.mubr.bf16.gmra.mxu0 %v420_v27  ;;  %v402_v27 = vld [vmem:[%s8602_s10 + $0x1f0] sm:$0xff] }
  0xcc   : > { %668 = vmatprep.mubr.bf16.mxu0 %v423_v29  ;;  %v434_v28 = vpack.c.bf16 %v402_v27, %v400_v26  ;;  %v7997_v29 = vld [vmem:[#allocation10 + $0x150] ss:$8 sps:$4 sm:$0xff]  }
  0xcd   : > { %2851 = vmatpush1.bf16.msra.mxu1 %v7997_v29 }
  0xce   : > { %2852 = vmatprep.subr.bf16.mxu1 %v8002_v33  ;;  %v1038_v33 = vadd.s32 32, %v8658_v48 }
  0xd1   : > { %2853 = vmatpush1.bf16.msra.mxu1 %v8000_v32 }
  0xd2   : > { %2854 = vmatprep.subr.bf16.mxu1 %v8005_v35 }
  0xd3   : > { %669 = vmatmul.mubr.bf16.gmra.mxu0 %v422_v42  ;;  %v8020_v42 = vld [vmem:[#allocation10 + $0x1d4] ss:$8 sps:$4 sm:$0xff]  }
  0xd4   : > { %676 = vmatprep.mubr.bf16.mxu0 %v425_v45  ;;  %v8021_v45 = vld [vmem:[#allocation10 + $0x1c0] ss:$8 sps:$4 sm:$0xff]  }
  0xd5   : > { %2855 = vmatpush1.bf16.msra.mxu1 %v8003_v34 }
  0xd6   : > { %2856 = vmatprep.subr.bf16.mxu1 %v8008_v37 }
  0xd9   : > { %2857 = vmatpush1.bf16.msra.mxu1 %v8006_v36 }
  0xda   : > { %2858 = vmatprep.subr.bf16.mxu1 %v8011_v47 }
  0xdb   : > { %677 = vmatmul.mubr.bf16.gmra.mxu0 %v424_v60 }
  0xdc   : > { %684 = vmatprep.mubr.bf16.mxu0 %v427_v61  ;;  %v8699_v61 = vld [vmem:[%s10727_s3] ss:$0 sm:$0xff] }
  0xdd   : > { %2859 = vmatpush1.bf16.msra.mxu1 %v8009_v46 }
  0xde   : > { %2860 = vmatprep.subr.bf16.mxu1 %v8026_v7 }
  0xe1   : > { %2861 = vmatpush1.bf16.msra.mxu1 %v8024_v6 }
  0xe2   : > { %3938 = vmatprep.subr.bf16.mxu1 %v8041_v14 }
  0xe3   : > { %685 = vmatmul.mubr.bf16.gmra.mxu0 %v426_v2 }
  0xe4   : > { %692 = vmatprep.mubr.bf16.mxu0 %v429_v3 }
  0xeb   : > { %693 = vmatmul.mubr.bf16.gmra.mxu0 %v428_v10 }
  0xec   : > { %700 = vmatprep.mubr.bf16.mxu0 %v431_v11 }
  0xf3   : > { %701 = vmatmul.mubr.bf16.gmra.mxu0 %v430_v16  ;;  %v1036_v16 = vadd.s32 16, %v8658_v48 }
  0xf4   : > { %708 = vmatprep.mubr.bf16.mxu0 %v433_v17 }
  0xfb   : > { %709 = vmatmul.mubr.bf16.gmra.mxu0 %v432_v24  ;;  %v1084_v24 = vand.u32 15, %v1036_v16  ;;  %v1042_v16 = vadd.s32 64, %v8658_v48 }
  0xfc   : > { %716 = vmatprep.mubr.bf16.mxu0 %v435_v25 }
  0xfd   : > { %vm7696_vm6 = vcmp.ne.s32.totalorder %v1084_v24, 0 }
  0xfe   : > { %vm8715_vm8 = vmpackc.low %vm10762_vm1, %vm7696_vm6 }
 0x103   : > { %717 = vmatmul.mubr.bf16.gmra.mxu0 %v434_v28 }
 0x104   : > { %2284 = vmatprep.mubr.bf16.mxu0 %v10752_v57 }
 0x10b   : > { %2285 = vmatmul.mubr.bf16.vlgmr.msra.gmra.mxu0 %v8417_v31 }
 0x10c   : > { %2294 = vmatprep.mubr.bf16.mxu0 %v10752_v57  ;;  %3409 = vmatpush1.bf16.msra.mxu0 %v8012_v38 }
 0x10d   : > { %3410 = vmatprep.subr.bf16.mxu0 %v8017_v40 }
 0x110   : > { %3411 = vmatpush1.bf16.msra.mxu0 %v8015_v41 }
 0x111   : > { %3412 = vmatprep.subr.bf16.mxu0 %v8020_v42  ;;  %v10822_v42 = vmov 0 }
 0x112   : > { %v10823_v42 = vsel %vm8715_vm8, 4294967295, %v10822_v42 }
 0x113   : > { %10824 = vst [vmem:[#allocation19_spill] sm:$0xff] %v10823_v42 }
 0x114   : > { %3413 = vmatpush1.bf16.msra.mxu0 %v8018_v43 }
 0x115   : > { %3414 = vmatprep.subr.bf16.mxu0 %v8023_v44 }
 0x118   : > { %3415 = vmatpush1.bf16.msra.mxu0 %v8021_v45  ;;  %v1098_v45 = vand.u32 15, %v1038_v33 }
 0x119   : > { %3416 = vmatprep.subr.bf16.mxu0 %v8029_v50 }
 0x11a   : > { %vm7697_vm10 = vcmp.ne.s32.totalorder %v1098_v45, 0 }
 0x11b   : > { %vm8729_vm12 = vmpackc.low %vm10762_vm1, %vm7697_vm10 }
 0x11c   : > { %3417 = vmatpush1.bf16.msra.mxu0 %v8027_v49 }
 0x11d   : > { %3418 = vmatprep.subr.bf16.mxu0 %v8032_v51 }
 0x120   : > { %3419 = vmatpush1.bf16.msra.mxu0 %v8030_v52 }
 0x121   : > { %3420 = vmatprep.subr.bf16.mxu0 %v8035_v54 }
 0x124   : > { %3421 = vmatpush1.bf16.msra.mxu0 %v8033_v55  ;;  %v1040_v55 = vadd.s32 48, %v8658_v48 }
 0x125   : > { %3422 = vmatprep.subr.bf16.mxu0 %v8038_v63 }
 0x126   : > { %v1112_v7 = vand.u32 15, %v1040_v55 }
 0x128   : > { %3423 = vmatpush1.bf16.msra.mxu0 %v8036_v1  ;;  %vm7698_vm14 = vcmp.ne.s32.totalorder %v1112_v7, 0 }
 0x129   : > { %vm8743_vm0 = vmpackc.low %vm10762_vm1, %vm7698_vm14 }
 0x14b   : > { %v7743_v53 = vpop.f32.mrf.mxu0 }
 0x14d   : > { %v7744_v56 = vpop.f32.mrf.mxu0 }
 0x14e   : > { %v7745_v60 = vadd.f32 %v7744_v56, %v7743_v53 }
 0x14f   : > { %v7746_v62 = vpop.f32.mrf.mxu0 }
 0x150   : > { %v732_v0 = vmul.f32 %v7745_v60, %v8694_v58 }
 0x151   : > { %v7747_v2 = vpop.f32.mrf.mxu0 }
 0x152   : > { %v771_v3 = vadd.f32 %v8699_v61, %v732_v0  ;;  %v7748_v4 = vadd.f32 %v7747_v2, %v7746_v62 }
 0x153   : > { %v7749_v5 = vpop.f32.mrf.mxu0 }
 0x154   : > { %vm803_vm3 = vcmp.ge.f32.partialorder %v771_v3, 0.0  ;;  %v835_v8 = vmul.f32 0.1, %v771_v3  ;;  %v733_v9 = vmul.f32 %v7748_v4, %v8694_v58  ;;  %v10825_v4 = vmov 0 }
 0x155   : > { %v7750_v10 = vpop.f32.mrf.mxu0  ;;  %v10826_v4 = vsel %vm8729_vm12, 4294967295, %v10825_v4 }
 0x156   : > { %v867_v11 = vsel %vm803_vm3, %v771_v3, %v835_v8  ;;  %v772_v12 = vadd.f32 %v8699_v61, %v733_v9  ;;  %v7751_v13 = vadd.f32 %v7750_v10, %v7749_v5  ;;  %10827 = vst [vmem:[#allocation20_spill] sm:$0xff] %v10826_v4 }
 0x157   : > { %937 = vst [vmem:[#allocation2 + $0x18] sm:$0xff] %v867_v11  ;;  %v7752_v15 = vpop.f32.mrf.mxu0 }
 0x158   : > { %vm804_vm4 = vcmp.ge.f32.partialorder %v772_v12, 0.0  ;;  %v836_v17 = vmul.f32 0.1, %v772_v12  ;;  %v734_v18 = vmul.f32 %v7751_v13, %v8694_v58 }
 0x159   : > { %v7753_v19 = vpop.f32.mrf.mxu0 }
 0x15a   : > { %v868_v20 = vsel %vm804_vm4, %v772_v12, %v836_v17  ;;  %v773_v21 = vadd.f32 %v8699_v61, %v734_v18  ;;  %v7754_v22 = vadd.f32 %v7753_v19, %v7752_v15 }
 0x15b   : > { %938 = vst [vmem:[#allocation2 + $0x20] sm:$0xff] %v868_v20  ;;  %v7755_v23 = vpop.f32.mrf.mxu0  ;;  %v2140_v25 = vpack.c.bf16 %v868_v20, %v867_v11 }
 0x15c   : > { %vm805_vm5 = vcmp.ge.f32.partialorder %v773_v21, 0.0  ;;  %v837_v26 = vmul.f32 0.1, %v773_v21  ;;  %v735_v27 = vmul.f32 %v7754_v22, %v8694_v58 }
 0x15d   : > { %v7756_v28 = vpop.f32.mrf.mxu0  ;;  %2295 = vmatmul.mubr.bf16.gmra.mxu0 %v2140_v25  ;;  %v10828_v25 = vmov 0 }
 0x15e   : > { %v869_v29 = vsel %vm805_vm5, %v773_v21, %v837_v26  ;;  %v774_v30 = vadd.f32 %v8699_v61, %v735_v27  ;;  %v7757_v31 = vadd.f32 %v7756_v28, %v7755_v23  ;;  %2304 = vmatprep.mubr.bf16.mxu0 %v10752_v57  ;;  %v1452_v40 = vld [vmem:[#allocation2 + $0x17] sm:$0xff]  ;;  %v10829_v25 = vsel %vm8743_vm0, 4294967295, %v10828_v25 }
 0x15f   : > { %939 = vst [vmem:[#allocation2 + $0x28] sm:$0xff] %v869_v29  ;;  %v7758_v32 = vpop.f32.mrf.mxu0  ;;  %10830 = vst [vmem:[#allocation21_spill] sm:$0xff] %v10829_v25  ;;  %v1126_v28 = vand.u32 15, %v1042_v16 }
 0x160   : > { %vm806_vm7 = vcmp.ge.f32.partialorder %v774_v30, 0.0  ;;  %v838_v34 = vmul.f32 0.1, %v774_v30  ;;  %v736_v35 = vmul.f32 %v7757_v31, %v8694_v58 }
 0x161   : > { %v7759_v36 = vpop.f32.mrf.mxu0  ;;  %vm7699_vm4 = vcmp.ne.s32.totalorder %v1126_v28, 0 }
 0x162   : > { %v870_v37 = vsel %vm806_vm7, %v774_v30, %v838_v34  ;;  %v775_v38 = vadd.f32 %v8699_v61, %v736_v35  ;;  %v7760_v39 = vadd.f32 %v7759_v36, %v7758_v32  ;;  %v1453_v41 = vld [vmem:[#allocation2 + $0x1f] sm:$0xff]  ;;  %vm8760_vm6 = vmpackc.low %vm10762_vm1, %vm7699_vm4 }
 0x163   : > { %940 = vst [vmem:[#allocation2 + $0x30] sm:$0xff] %v870_v37  ;;  %v7761_v43 = vpop.f32.mrf.mxu0  ;;  %v7182_v44 = vpack.c.bf16 %v1453_v41, %v1452_v40  ;;  %v2141_v46 = vpack.c.bf16 %v870_v37, %v869_v29  ;;  %v1044_v37 = vadd.s32 80, %v8658_v48 }
 0x164   : > { %vm807_vm9 = vcmp.ge.f32.partialorder %v775_v38, 0.0  ;;  %v839_v47 = vmul.f32 0.1, %v775_v38  ;;  %v737_v49 = vmul.f32 %v7760_v39, %v8694_v58 }
 0x165   : > { %v7762_v50 = vpop.f32.mrf.mxu0  ;;  %7183 = vmatmul.mubr.msk.bf16.gmra.mxu1 %vm8715_vm8, %v7182_v44  ;;  %2305 = vmatmul.mubr.bf16.gmra.mxu0 %v2141_v46 }
 0x166   : > { %v871_v51 = vsel %vm807_vm9, %v775_v38, %v839_v47  ;;  %v776_v52 = vadd.f32 %v8699_v61, %v737_v49  ;;  %v7763_v53 = vadd.f32 %v7762_v50, %v7761_v43  ;;  %1774 = vmatprep.mubr.bf16.mxu1 %v10752_v57  ;;  %2314 = vmatprep.mubr.bf16.mxu0 %v10752_v57  ;;  %v1454_v2 = vld [vmem:[#allocation2 + $0x27] sm:$0xff]  ;;  %v10831_v47 = vmov 0 }
 0x167   : > { %941 = vst [vmem:[#allocation2 + $0x38] sm:$0xff] %v871_v51  ;;  %v7764_v54 = vpop.f32.mrf.mxu0  ;;  %v10832_v47 = vsel %vm8760_vm6, 4294967295, %v10831_v47 }
 0x168   : > { %vm808_vm11 = vcmp.ge.f32.partialorder %v776_v52, 0.0  ;;  %v840_v56 = vmul.f32 0.1, %v776_v52  ;;  %v738_v60 = vmul.f32 %v7763_v53, %v8694_v58  ;;  %10833 = vst [vmem:[#allocation22_spill] sm:$0xff] %v10832_v47 }
 0x169   : > { %v7765_v62 = vpop.f32.mrf.mxu0 }
 0x16a   : > { %v872_v63 = vsel %vm808_vm11, %v776_v52, %v840_v56  ;;  %v777_v0 = vadd.f32 %v8699_v61, %v738_v60  ;;  %v7766_v1 = vadd.f32 %v7765_v62, %v7764_v54  ;;  %v1455_v3 = vld [vmem:[#allocation2 + $0x2f] sm:$0xff] }
 0x16b   : > { %942 = vst [vmem:[#allocation2 + $0x40] sm:$0xff] %v872_v63  ;;  %v7767_v5 = vpop.f32.mrf.mxu0  ;;  %v7186_v6 = vpack.c.bf16 %v1455_v3, %v1454_v2  ;;  %v2142_v8 = vpack.c.bf16 %v872_v63, %v871_v51  ;;  %v1140_v51 = vand.u32 15, %v1044_v37 }
 0x16c   : > { %vm809_vm13 = vcmp.ge.f32.partialorder %v777_v0, 0.0  ;;  %v841_v9 = vmul.f32 0.1, %v777_v0  ;;  %v739_v10 = vmul.f32 %v7766_v1, %v8694_v58 }
 0x16d   : > { %v7768_v11 = vpop.f32.mrf.mxu0  ;;  %7187 = vmatmul.mubr.msk.bf16.gmra.mxu1 %vm8729_vm12, %v7186_v6  ;;  %2315 = vmatmul.mubr.bf16.gmra.mxu0 %v2142_v8  ;;  %vm7700_vm9 = vcmp.ne.s32.totalorder %v1140_v51, 0 }
 0x16e   : > { %v873_v12 = vsel %vm809_vm13, %v777_v0, %v841_v9  ;;  %v778_v13 = vadd.f32 %v8699_v61, %v739_v10  ;;  %v7769_v14 = vadd.f32 %v7768_v11, %v7767_v5  ;;  %1784 = vmatprep.mubr.bf16.mxu1 %v10752_v57  ;;  %2324 = vmatprep.mubr.bf16.mxu0 %v10752_v57  ;;  %v1456_v23 = vld [vmem:[#allocation2 + $0x37] sm:$0xff]  ;;  %v1046_v0 = vadd.s32 96, %v8658_v48  ;;  %vm8777_vm11 = vmpackc.low %vm10762_vm1, %vm7700_vm9 }
 0x16f   : > { %943 = vst [vmem:[#allocation2 + $0x48] sm:$0xff] %v873_v12  ;;  %v7770_v15 = vpop.f32.mrf.mxu0  ;;  %v10834_v10 = vmov 0 }
 0x170   : > { %vm810_vm15 = vcmp.ge.f32.partialorder %v778_v13, 0.0  ;;  %v842_v17 = vmul.f32 0.1, %v778_v13  ;;  %v740_v18 = vmul.f32 %v7769_v14, %v8694_v58  ;;  %v10835_v10 = vsel %vm8777_vm11, 4294967295, %v10834_v10 }
 0x171   : > { %v7771_v19 = vpop.f32.mrf.mxu0  ;;  %10836 = vst [vmem:[#allocation23_spill] sm:$0xff] %v10835_v10 }
 0x172   : > { %v874_v20 = vsel %vm810_vm15, %v778_v13, %v842_v17  ;;  %v779_v21 = vadd.f32 %v8699_v61, %v740_v18  ;;  %v7772_v22 = vadd.f32 %v7771_v19, %v7770_v15  ;;  %v1457_v24 = vld [vmem:[#allocation2 + $0x3f] sm:$0xff]  ;;  %v1154_v13 = vand.u32 15, %v1046_v0 }
 0x173   : > { %944 = vst [vmem:[#allocation2 + $0x50] sm:$0xff] %v874_v20  ;;  %v7773_v26 = vpop.f32.mrf.mxu0  ;;  %v8747_v27 = vpack.c.bf16 %v1457_v24, %v1456_v23  ;;  %v2143_v29 = vpack.c.bf16 %v874_v20, %v873_v12 }
 0x174   : > { %vm811_vm3 = vcmp.ge.f32.partialorder %v779_v21, 0.0  ;;  %v843_v30 = vmul.f32 0.1, %v779_v21  ;;  %v741_v31 = vmul.f32 %v7772_v22, %v8694_v58  ;;  %vm7701_vm14 = vcmp.ne.s32.totalorder %v1154_v13, 0 }
 0x175   : > { %v7774_v32 = vpop.f32.mrf.mxu0  ;;  %7191 = vmatmul.mubr.msk.bf16.gmra.mxu1 %vm8743_vm0, %v8747_v27  ;;  %2325 = vmatmul.mubr.bf16.gmra.mxu0 %v2143_v29  ;;  %v1048_v22 = vadd.s32 112, %v8658_v48  ;;  %v1052_v13 = vadd.s32 144, %v8658_v48 }
 0x176   : > { %v875_v33 = vsel %vm811_vm3, %v779_v21, %v843_v30  ;;  %v780_v34 = vadd.f32 %v8699_v61, %v741_v31  ;;  %v7775_v35 = vadd.f32 %v7774_v32, %v7773_v26  ;;  %1794 = vmatprep.mubr.bf16.mxu1 %v10752_v57  ;;  %2334 = vmatprep.mubr.bf16.mxu0 %v10752_v57  ;;  %v1458_v45 = vld [vmem:[#allocation2 + $0x47] sm:$0xff]  ;;  %vm8794_vm3 = vmpackc.low %vm10762_vm1, %vm7701_vm14 }
 0x177   : > { %945 = vst [vmem:[#allocation2 + $0x58] sm:$0xff] %v875_v33  ;;  %v7776_v36 = vpop.f32.mrf.mxu0 }
 0x178   : > { %vm812_vm5 = vcmp.ge.f32.partialorder %v780_v34, 0.0  ;;  %v844_v38 = vmul.f32 0.1, %v780_v34  ;;  %v742_v39 = vmul.f32 %v7775_v35, %v8694_v58 }
 0x179   : > { %v7777_v40 = vpop.f32.mrf.mxu0 }
 0x17a   : > { %v876_v41 = vsel %vm812_vm5, %v780_v34, %v844_v38  ;;  %v781_v43 = vadd.f32 %v8699_v61, %v742_v39  ;;  %v7778_v44 = vadd.f32 %v7777_v40, %v7776_v36  ;;  %v1459_v46 = vld [vmem:[#allocation2 + $0x4f] sm:$0xff]  ;;  %v1168_v36 = vand.u32 15, %v1048_v22 }
 0x17b   : > { %946 = vst [vmem:[#allocation2 + $0x60] sm:$0xff] %v876_v41  ;;  %v7779_v49 = vpop.f32.mrf.mxu0  ;;  %v8764_v50 = vpack.c.bf16 %v1459_v46, %v1458_v45  ;;  %v2144_v52 = vpack.c.bf16 %v876_v41, %v875_v33  ;;  %v10837_v33 = vmov 0  ;;  %v1050_v46 = vadd.s32 128, %v8658_v48 }
 0x17c   : > { %vm813_vm7 = vcmp.ge.f32.partialorder %v781_v43, 0.0  ;;  %v845_v53 = vmul.f32 0.1, %v781_v43  ;;  %v743_v54 = vmul.f32 %v7778_v44, %v8694_v58  ;;  %v10838_v33 = vsel %vm8794_vm3, 4294967295, %v10837_v33 }
 0x17d   : > { %v7780_v55 = vpop.f32.mrf.mxu0  ;;  %7195 = vmatmul.mubr.msk.bf16.gmra.mxu1 %vm8760_vm6, %v8764_v50  ;;  %2335 = vmatmul.mubr.bf16.gmra.mxu0 %v2144_v52  ;;  %10839 = vst [vmem:[#allocation24_spill] sm:$0xff] %v10838_v33  ;;  %vm7702_vm5 = vcmp.ne.s32.totalorder %v1168_v36, 0  ;;  %v10843_v22 = vmov 0 }
 0x17e   : > { %v877_v56 = vsel %vm813_vm7, %v781_v43, %v845_v53  ;;  %v782_v60 = vadd.f32 %v8699_v61, %v743_v54  ;;  %v7781_v62 = vadd.f32 %v7780_v55, %v7779_v49  ;;  %1804 = vmatprep.mubr.bf16.mxu1 %v10752_v57  ;;  %2344 = vmatprep.mubr.bf16.mxu0 %v10752_v57  ;;  %v1460_v8 = vld [vmem:[#allocation2 + $0x57] sm:$0xff]  ;;  %vm8811_vm9 = vmpackc.low %vm10762_vm1, %vm7702_vm5 }
 0x17f   : > { %947 = vst [vmem:[#allocation2 + $0x68] sm:$0xff] %v877_v56  ;;  %v7782_v63 = vpop.f32.mrf.mxu0 }
 0x180   : > { %vm814_vm10 = vcmp.ge.f32.partialorder %v782_v60, 0.0  ;;  %v846_v1 = vmul.f32 0.1, %v782_v60  ;;  %v744_v2 = vmul.f32 %v7781_v62, %v8694_v58  ;;  %v10840_v62 = vmov 0 }
 0x181   : > { %v7783_v3 = vpop.f32.mrf.mxu0  ;;  %v10841_v62 = vsel %vm8811_vm9, 4294967295, %v10840_v62 }
 0x182   : > { %v878_v5 = vsel %vm814_vm10, %v782_v60, %v846_v1  ;;  %v783_v6 = vadd.f32 %v8699_v61, %v744_v2  ;;  %v7784_v7 = vadd.f32 %v7783_v3, %v7782_v63  ;;  %v1461_v9 = vld [vmem:[#allocation2 + $0x5f] sm:$0xff]  ;;  %10842 = vst [vmem:[#allocation25_spill] sm:$0xff] %v10841_v62  ;;  %v1182_v1 = vand.u32 15, %v1050_v46 }
 0x183   : > { %948 = vst [vmem:[#allocation2 + $0x70] sm:$0xff] %v878_v5  ;;  %v7785_v11 = vpop.f32.mrf.mxu0  ;;  %v8781_v12 = vpack.c.bf16 %v1461_v9, %v1460_v8  ;;  %v2145_v14 = vpack.c.bf16 %v878_v5, %v877_v56 }
 0x184   : > { %vm815_vm13 = vcmp.ge.f32.partialorder %v783_v6, 0.0  ;;  %v847_v15 = vmul.f32 0.1, %v783_v6  ;;  %v745_v16 = vmul.f32 %v7784_v7, %v8694_v58 }
 0x185   : > { %v7786_v17 = vpop.f32.mrf.mxu0  ;;  %7199 = vmatmul.mubr.msk.bf16.gmra.mxu1 %vm8777_vm11, %v8781_v12  ;;  %2345 = vmatmul.mubr.bf16.gmra.mxu0 %v2145_v14 }
 0x186   : > { %v879_v18 = vsel %vm815_vm13, %v783_v6, %v847_v15  ;;  %v784_v19 = vadd.f32 %v8699_v61, %v745_v16  ;;  %v7787_v20 = vadd.f32 %v7786_v17, %v7785_v11  ;;  %1814 = vmatprep.mubr.bf16.mxu1 %v10752_v57  ;;  %2354 = vmatprep.mubr.bf16.mxu0 %v10752_v57  ;;  %v1462_v31 = vld [vmem:[#allocation2 + $0x67] sm:$0xff]  ;;  %vm7703_vm13 = vcmp.ne.s32.totalorder %v1182_v1, 0 }
 0x187   : > { %949 = vst [vmem:[#allocation2 + $0x78] sm:$0xff] %v879_v18  ;;  %v7788_v21 = vpop.f32.mrf.mxu0 }
 0x188   : > { %vm816_vm15 = vcmp.ge.f32.partialorder %v784_v19, 0.0  ;;  %v848_v23 = vmul.f32 0.1, %v784_v19  ;;  %v746_v24 = vmul.f32 %v7787_v20, %v8694_v58 }
 0x189   : > { %v7789_v26 = vpop.f32.mrf.mxu0 }
 0x18a   : > { %v880_v28 = vsel %vm816_vm15, %v784_v19, %v848_v23  ;;  %v785_v29 = vadd.f32 %v8699_v61, %v746_v24  ;;  %v7790_v30 = vadd.f32 %v7789_v26, %v7788_v21  ;;  %v1463_v32 = vld [vmem:[#allocation2 + $0x6f] sm:$0xff]  ;;  %vm8828_vm15 = vmpackc.low %vm10762_vm1, %vm7703_vm13  ;;  %v1196_v26 = vand.u32 15, %v1052_v13 }
 0x18b   : > { %950 = vst [vmem:[#allocation2 + $0x80] sm:$0xff] %v880_v28  ;;  %v7791_v34 = vpop.f32.mrf.mxu0  ;;  %v8798_v35 = vpack.c.bf16 %v1463_v32, %v1462_v31  ;;  %v2146_v37 = vpack.c.bf16 %v880_v28, %v879_v18  ;;  %v10844_v22 = vsel %vm8828_vm15, 4294967295, %v10843_v22 }
 0x18c   : > { %vm817_vm4 = vcmp.ge.f32.partialorder %v785_v29, 0.0  ;;  %v849_v38 = vmul.f32 0.1, %v785_v29  ;;  %v747_v39 = vmul.f32 %v7790_v30, %v8694_v58  ;;  %10845 = vst [vmem:[#allocation26_spill] sm:$0xff] %v10844_v22  ;;  %vm7704_vm5 = vcmp.ne.s32.totalorder %v1196_v26, 0 }
 0x18d   : > { %v7792_v40 = vpop.f32.mrf.mxu0  ;;  %7203 = vmatmul.mubr.msk.bf16.gmra.mxu1 %vm8794_vm3, %v8798_v35  ;;  %2355 = vmatmul.mubr.bf16.gmra.mxu0 %v2146_v37 }
 0x18e   : > { %v881_v41 = vsel %vm817_vm4, %v785_v29, %v849_v38  ;;  %v786_v43 = vadd.f32 %v8699_v61, %v747_v39  ;;  %v7793_v44 = vadd.f32 %v7792_v40, %v7791_v34  ;;  %1824 = vmatprep.mubr.bf16.mxu1 %v10752_v57  ;;  %2364 = vmatprep.mubr.bf16.mxu0 %v10752_v57  ;;  %v1464_v56 = vld [vmem:[#allocation2 + $0x77] sm:$0xff]  ;;  %v1054_v38 = vadd.s32 160, %v8658_v48 }
 0x18f   : > { %951 = vst [vmem:[#allocation2 + $0x88] sm:$0xff] %v881_v41  ;;  %v7794_v45 = vpop.f32.mrf.mxu0 }
 0x190   : > { %vm818_vm7 = vcmp.ge.f32.partialorder %v786_v43, 0.0  ;;  %v850_v49 = vmul.f32 0.1, %v786_v43  ;;  %v748_v51 = vmul.f32 %v7793_v44, %v8694_v58 }
 0x191   : > { %v7795_v52 = vpop.f32.mrf.mxu0 }
 0x192   : > { %v882_v53 = vsel %vm818_vm7, %v786_v43, %v850_v49  ;;  %v787_v54 = vadd.f32 %v8699_v61, %v748_v51  ;;  %v7796_v55 = vadd.f32 %v7795_v52, %v7794_v45  ;;  %v1465_v60 = vld [vmem:[#allocation2 + $0x7f] sm:$0xff]  ;;  %v10846_v51 = vmov 0 }
 0x193   : > { %952 = vst [vmem:[#allocation2 + $0x90] sm:$0xff] %v882_v53  ;;  %v7797_v63 = vpop.f32.mrf.mxu0  ;;  %v8815_v0 = vpack.c.bf16 %v1465_v60, %v1464_v56  ;;  %v2147_v2 = vpack.c.bf16 %v882_v53, %v881_v41 }
 0x194   : > { %vm819_vm10 = vcmp.ge.f32.partialorder %v787_v54, 0.0  ;;  %v851_v3 = vmul.f32 0.1, %v787_v54  ;;  %v749_v5 = vmul.f32 %v7796_v55, %v8694_v58 }
 0x195   : > { %v7798_v6 = vpop.f32.mrf.mxu0  ;;  %7207 = vmatmul.mubr.msk.bf16.gmra.mxu1 %vm8811_vm9, %v8815_v0  ;;  %2365 = vmatmul.mubr.bf16.gmra.mxu0 %v2147_v2 }
 0x196   : > { %v883_v7 = vsel %vm819_vm10, %v787_v54, %v851_v3  ;;  %v788_v8 = vadd.f32 %v8699_v61, %v749_v5  ;;  %v7799_v9 = vadd.f32 %v7798_v6, %v7797_v63  ;;  %1834 = vmatprep.mubr.bf16.mxu1 %v10752_v57  ;;  %2374 = vmatprep.mubr.bf16.mxu0 %v10752_v57  ;;  %v1466_v20 = vld [vmem:[#allocation2 + $0x87] sm:$0xff]  ;;  %vm8845_vm10 = vmpackc.low %vm10762_vm1, %vm7704_vm5  ;;  %v1210_v54 = vand.u32 15, %v1054_v38 }
 0x197   : > { %953 = vst [vmem:[#allocation2 + $0x98] sm:$0xff] %v883_v7  ;;  %v7800_v11 = vpop.f32.mrf.mxu0  ;;  %v10847_v51 = vsel %vm8845_vm10, 4294967295, %v10846_v51  ;;  %v1056_v6 = vadd.s32 176, %v8658_v48 }
 0x198   : > { %vm820_vm14 = vcmp.ge.f32.partialorder %v788_v8, 0.0  ;;  %v852_v14 = vmul.f32 0.1, %v788_v8  ;;  %v750_v15 = vmul.f32 %v7799_v9, %v8694_v58  ;;  %10848 = vst [vmem:[#allocation27_spill] sm:$0xff] %v10847_v51 }
 0x199   : > { %v7801_v16 = vpop.f32.mrf.mxu0 }
 0x19a   : > { %v884_v17 = vsel %vm820_vm14, %v788_v8, %v852_v14  ;;  %v789_v18 = vadd.f32 %v8699_v61, %v750_v15  ;;  %v7802_v19 = vadd.f32 %v7801_v16, %v7800_v11  ;;  %v1467_v21 = vld [vmem:[#allocation2 + $0x8f] sm:$0xff]  ;;  %vm7705_vm14 = vcmp.ne.s32.totalorder %v1210_v54, 0 }
 0x19b   : > { %954 = vst [vmem:[#allocation2 + $0xa0] sm:$0xff] %v884_v17  ;;  %v7803_v23 = vpop.f32.mrf.mxu0  ;;  %v8832_v24 = vpack.c.bf16 %v1467_v21, %v1466_v20  ;;  %v2148_v28 = vpack.c.bf16 %v884_v17, %v883_v7  ;;  %vm8862_vm5 = vmpackc.low %vm10762_vm1, %vm7705_vm14  ;;  %v10849_v17 = vmov 0  ;;  %v1224_v20 = vand.u32 15, %v1056_v6 }
 0x19c   : > { %vm821_vm4 = vcmp.ge.f32.partialorder %v789_v18, 0.0  ;;  %v853_v29 = vmul.f32 0.1, %v789_v18  ;;  %v751_v30 = vmul.f32 %v7802_v19, %v8694_v58  ;;  %v10850_v17 = vsel %vm8862_vm5, 4294967295, %v10849_v17 }
 0x19d   : > { %v7804_v31 = vpop.f32.mrf.mxu0  ;;  %7211 = vmatmul.mubr.msk.bf16.gmra.mxu1 %vm8828_vm15, %v8832_v24  ;;  %2375 = vmatmul.mubr.bf16.gmra.mxu0 %v2148_v28  ;;  %10851 = vst [vmem:[#allocation28_spill] sm:$0xff] %v10850_v17  ;;  %v1060_v6 = vadd.s32 208, %v8658_v48 }
 0x19e   : > { %v885_v32 = vsel %vm821_vm4, %v789_v18, %v853_v29  ;;  %v790_v34 = vadd.f32 %v8699_v61, %v751_v30  ;;  %v7805_v36 = vadd.f32 %v7804_v31, %v7803_v23  ;;  %1844 = vmatprep.mubr.bf16.mxu1 %v10752_v57  ;;  %2384 = vmatprep.mubr.bf16.mxu0 %v10752_v57  ;;  %v1468_v46 = vld [vmem:[#allocation2 + $0x97] sm:$0xff] }
 0x19f   : > { %955 = vst [vmem:[#allocation2 + $0xa8] sm:$0xff] %v885_v32  ;;  %v7806_v37 = vpop.f32.mrf.mxu0 }
 0x1a0   : > { %vm822_vm7 = vcmp.ge.f32.partialorder %v790_v34, 0.0  ;;  %v854_v39 = vmul.f32 0.1, %v790_v34  ;;  %v752_v40 = vmul.f32 %v7805_v36, %v8694_v58 }
 0x1a1   : > { %v7807_v41 = vpop.f32.mrf.mxu0 }
 0x1a2   : > { %v886_v43 = vsel %vm822_vm7, %v790_v34, %v854_v39  ;;  %v791_v44 = vadd.f32 %v8699_v61, %v752_v40  ;;  %v7808_v45 = vadd.f32 %v7807_v41, %v7806_v37  ;;  %v1469_v49 = vld [vmem:[#allocation2 + $0x9f] sm:$0xff]  ;;  %v1058_v34 = vadd.s32 192, %v8658_v48 }
 0x1a3   : > { %956 = vst [vmem:[#allocation2 + $0xb0] sm:$0xff] %v886_v43  ;;  %v7809_v52 = vpop.f32.mrf.mxu0  ;;  %v8849_v53 = vpack.c.bf16 %v1469_v49, %v1468_v46  ;;  %v2149_v55 = vpack.c.bf16 %v886_v43, %v885_v32 }
 0x1a4   : > { %vm823_vm13 = vcmp.ge.f32.partialorder %v791_v44, 0.0  ;;  %v855_v56 = vmul.f32 0.1, %v791_v44  ;;  %v753_v60 = vmul.f32 %v7808_v45, %v8694_v58  ;;  %v10852_v45 = vmov 0 }
 0x1a5   : > { %v7810_v63 = vpop.f32.mrf.mxu0  ;;  %7215 = vmatmul.mubr.msk.bf16.gmra.mxu1 %vm8845_vm10, %v8849_v53  ;;  %2385 = vmatmul.mubr.bf16.gmra.mxu0 %v2149_v55  ;;  %v8062_v55 = vld [vmem:[#allocation10 + $0x2f4] ss:$8 sps:$4 sm:$0xff]  }
 0x1a6   : > { %v887_v1 = vsel %vm823_vm13, %v791_v44, %v855_v56  ;;  %v792_v2 = vadd.f32 %v8699_v61, %v753_v60  ;;  %v7811_v3 = vadd.f32 %v7810_v63, %v7809_v52  ;;  %1854 = vmatprep.mubr.bf16.mxu1 %v10752_v57  ;;  %2394 = vmatprep.mubr.bf16.mxu0 %v10752_v57  ;;  %v1470_v15 = vld [vmem:[#allocation2 + $0xa7] sm:$0xff]  ;;  %vm7706_vm13 = vcmp.ne.s32.totalorder %v1224_v20, 0 }
 0x1a7   : > { %957 = vst [vmem:[#allocation2 + $0xb8] sm:$0xff] %v887_v1  ;;  %v7812_v5 = vpop.f32.mrf.mxu0  ;;  %v1238_v52 = vand.u32 15, %v1058_v34  ;;  %4500 = vmatprep.subr.bf16.mxu0 %v8062_v55 }
 0x1a8   : > { %vm824_vm4 = vcmp.ge.f32.partialorder %v792_v2, 0.0  ;;  %v856_v7 = vmul.f32 0.1, %v792_v2  ;;  %v754_v8 = vmul.f32 %v7811_v3, %v8694_v58 }
 0x1a9   : > { %v7813_v9 = vpop.f32.mrf.mxu0 }
 0x1aa   : > { %v888_v11 = vsel %vm824_vm4, %v792_v2, %v856_v7  ;;  %v793_v13 = vadd.f32 %v8699_v61, %v754_v8  ;;  %v7814_v14 = vadd.f32 %v7813_v9, %v7812_v5  ;;  %v1471_v16 = vld [vmem:[#allocation2 + $0xaf] sm:$0xff]  ;;  %vm8879_vm4 = vmpackc.low %vm10762_vm1, %vm7706_vm13  ;;  %vm7707_vm13 = vcmp.ne.s32.totalorder %v1238_v52, 0 }
 0x1ab   : > { %958 = vst [vmem:[#allocation2 + $0xc0] sm:$0xff] %v888_v11  ;;  %v7815_v18 = vpop.f32.mrf.mxu0  ;;  %v8866_v19 = vpack.c.bf16 %v1471_v16, %v1470_v15  ;;  %v2150_v21 = vpack.c.bf16 %v888_v11, %v887_v1  ;;  %v10853_v45 = vsel %vm8879_vm4, 4294967295, %v10852_v45 }
 0x1ac   : > { %vm825_vm7 = vcmp.ge.f32.partialorder %v793_v13, 0.0  ;;  %v857_v23 = vmul.f32 0.1, %v793_v13  ;;  %v755_v26 = vmul.f32 %v7814_v14, %v8694_v58  ;;  %10854 = vst [vmem:[#allocation29_spill] sm:$0xff] %v10853_v45 }
 0x1ad   : > { %v7816_v28 = vpop.f32.mrf.mxu0  ;;  %7219 = vmatmul.mubr.msk.bf16.gmra.mxu1 %vm8862_vm5, %v8866_v19  ;;  %2395 = vmatmul.mubr.bf16.gmra.mxu0 %v2150_v21 }
 0x1ae   : > { %v889_v29 = vsel %vm825_vm7, %v793_v13, %v857_v23  ;;  %v794_v30 = vadd.f32 %v8699_v61, %v755_v26  ;;  %v7817_v31 = vadd.f32 %v7816_v28, %v7815_v18  ;;  %1864 = vmatprep.mubr.bf16.mxu1 %v10752_v57  ;;  %2404 = vmatprep.mubr.bf16.mxu0 %v10752_v57  ;;  %v1472_v43 = vld [vmem:[#allocation2 + $0xb7] sm:$0xff]  ;;  %v10855_v18 = vmov 0 }
 0x1af   : > { %959 = vst [vmem:[#allocation2 + $0xc8] sm:$0xff] %v889_v29  ;;  %v7818_v32 = vpop.f32.mrf.mxu0  ;;  %v1252_v23 = vand.u32 15, %v1060_v6 }
 0x1b0   : > { %vm826_vm14 = vcmp.ge.f32.partialorder %v794_v30, 0.0  ;;  %v858_v36 = vmul.f32 0.1, %v794_v30  ;;  %v756_v37 = vmul.f32 %v7817_v31, %v8694_v58 }
 0x1b1   : > { %v7819_v38 = vpop.f32.mrf.mxu0 }
 0x1b2   : > { %v890_v39 = vsel %vm826_vm14, %v794_v30, %v858_v36  ;;  %v795_v40 = vadd.f32 %v8699_v61, %v756_v37  ;;  %v7820_v41 = vadd.f32 %v7819_v38, %v7818_v32  ;;  %v1473_v44 = vld [vmem:[#allocation2 + $0xbf] sm:$0xff]  ;;  %v1062_v37 = vadd.s32 224, %v8658_v48 }
 0x1b3   : > { %960 = vst [vmem:[#allocation2 + $0xd0] sm:$0xff] %v890_v39  ;;  %v7821_v46 = vpop.f32.mrf.mxu0  ;;  %v8883_v49 = vpack.c.bf16 %v1473_v44, %v1472_v43  ;;  %v2151_v54 = vpack.c.bf16 %v890_v39, %v889_v29 }
 0x1b4   : > { %vm827_vm7 = vcmp.ge.f32.partialorder %v795_v40, 0.0  ;;  %v859_v56 = vmul.f32 0.1, %v795_v40  ;;  %v757_v60 = vmul.f32 %v7820_v41, %v8694_v58 }
 0x1b5   : > { %v7822_v63 = vpop.f32.mrf.mxu0  ;;  %7223 = vmatmul.mubr.msk.bf16.gmra.mxu1 %vm8879_vm4, %v8883_v49  ;;  %2405 = vmatmul.mubr.bf16.gmra.mxu0 %v2151_v54  ;;  %v10858_v54 = vmov 0 }
 0x1b6   : > { %v891_v1 = vsel %vm827_vm7, %v795_v40, %v859_v56  ;;  %v796_v2 = vadd.f32 %v8699_v61, %v757_v60  ;;  %v7823_v3 = vadd.f32 %v7822_v63, %v7821_v46  ;;  %1874 = vmatprep.mubr.bf16.mxu1 %v10752_v57  ;;  %2414 = vmatprep.mubr.bf16.mxu0 %v10752_v57  ;;  %v1474_v15 = vld [vmem:[#allocation2 + $0xc7] sm:$0xff]  ;;  %vm8896_vm7 = vmpackc.low %vm10762_vm1, %vm7707_vm13  ;;  %vm7708_vm13 = vcmp.ne.s32.totalorder %v1252_v23, 0 }
 0x1b7   : > { %961 = vst [vmem:[#allocation2 + $0xd8] sm:$0xff] %v891_v1  ;;  %v7824_v5 = vpop.f32.mrf.mxu0  ;;  %v10856_v18 = vsel %vm8896_vm7, 4294967295, %v10855_v18  ;;  %v1266_v60 = vand.u32 15, %v1062_v37 }
 0x1b8   : > { %vm828_vm14 = vcmp.ge.f32.partialorder %v796_v2, 0.0  ;;  %v860_v7 = vmul.f32 0.1, %v796_v2  ;;  %v758_v8 = vmul.f32 %v7823_v3, %v8694_v58  ;;  %10857 = vst [vmem:[#allocation30_spill] sm:$0xff] %v10856_v18 }
 0x1b9   : > { %v7825_v9 = vpop.f32.mrf.mxu0 }
 0x1ba   : > { %v892_v11 = vsel %vm828_vm14, %v796_v2, %v860_v7  ;;  %v797_v13 = vadd.f32 %v8699_v61, %v758_v8  ;;  %v7826_v14 = vadd.f32 %v7825_v9, %v7824_v5  ;;  %v1475_v16 = vld [vmem:[#allocation2 + $0xcf] sm:$0xff]  ;;  %v1064_v8 = vadd.s32 240, %v8658_v48 }
 0x1bb   : > { %962 = vst [vmem:[#allocation2 + $0xe0] sm:$0xff] %v892_v11  ;;  %v7827_v20 = vpop.f32.mrf.mxu0  ;;  %v8900_v21 = vpack.c.bf16 %v1475_v16, %v1474_v15  ;;  %v2152_v26 = vpack.c.bf16 %v892_v11, %v891_v1  ;;  %v1756_v11 = vpop.f32.mrf.mxu1 }
 0x1bc   : > { %vm829_vm4 = vcmp.ge.f32.partialorder %v797_v13, 0.0  ;;  %v861_v28 = vmul.f32 0.1, %v797_v13  ;;  %v759_v29 = vmul.f32 %v7826_v14, %v8694_v58 }
 0x1bd   : > { %v7828_v30 = vpop.f32.mrf.mxu0  ;;  %7227 = vmatmul.mubr.msk.bf16.gmra.mxu1 %vm8896_vm7, %v8900_v21  ;;  %2415 = vmatmul.mubr.bf16.gmra.mxu0 %v2152_v26 }
 0x1be   : > { %v893_v31 = vsel %vm829_vm4, %v797_v13, %v861_v28  ;;  %v798_v32 = vadd.f32 %v8699_v61, %v759_v29  ;;  %v7829_v34 = vadd.f32 %v7828_v30, %v7827_v20  ;;  %1884 = vmatprep.mubr.bf16.mxu1 %v10752_v57  ;;  %2424 = vmatprep.mubr.bf16.mxu0 %v10752_v57  ;;  %v1476_v46 = vld [vmem:[#allocation2 + $0xd7] sm:$0xff]  ;;  %vm8913_vm4 = vmpackc.low %vm10762_vm1, %vm7708_vm13  ;;  %vm7709_vm13 = vcmp.ne.s32.totalorder %v1266_v60, 0  ;;  %v3168_v60 = vld [vmem:[#allocation2 + $0x1f] sm:$0xff] }
 0x1bf   : > { %963 = vst [vmem:[#allocation2 + $0xe8] sm:$0xff] %v893_v31  ;;  %v7830_v36 = vpop.f32.mrf.mxu0  ;;  %v10859_v54 = vsel %vm8913_vm4, 4294967295, %v10858_v54  ;;  %v10861_v29 = vmov 0  ;;  %v1280_v30 = vand.u32 15, %v1064_v8 }
 0x1c0   : > { %vm830_vm14 = vcmp.ge.f32.partialorder %v798_v32, 0.0  ;;  %v862_v38 = vmul.f32 0.1, %v798_v32  ;;  %v760_v39 = vmul.f32 %v7829_v34, %v8694_v58  ;;  %10860 = vst [vmem:[#allocation31_spill] sm:$0xff] %v10859_v54 }
 0x1c1   : > { %v7831_v40 = vpop.f32.mrf.mxu0 }
 0x1c2   : > { %v894_v41 = vsel %vm830_vm14, %v798_v32, %v862_v38  ;;  %v799_v43 = vadd.f32 %v8699_v61, %v760_v39  ;;  %v7832_v44 = vadd.f32 %v7831_v40, %v7830_v36  ;;  %v1477_v52 = vld [vmem:[#allocation2 + $0xdf] sm:$0xff]  ;;  %v1758_v36 = vpop.f32.mrf.mxu1 }
 0x1c3   : > { %964 = vst [vmem:[#allocation2 + $0xf0] sm:$0xff] %v894_v41  ;;  %v7833_v55 = vpop.f32.mrf.mxu0  ;;  %v8917_v56 = vpack.c.bf16 %v1477_v52, %v1476_v46  ;;  %v2153_v63 = vpack.c.bf16 %v894_v41, %v893_v31 }
 0x1c4   : > { %vm831_vm7 = vcmp.ge.f32.partialorder %v799_v43, 0.0  ;;  %v863_v1 = vmul.f32 0.1, %v799_v43  ;;  %v761_v2 = vmul.f32 %v7832_v44, %v8694_v58  ;;  %v1760_v46 = vpop.f32.mrf.mxu1 }
 0x1c5   : > { %v7834_v3 = vpop.f32.mrf.mxu0  ;;  %7231 = vmatmul.mubr.msk.bf16.gmra.mxu1 %vm8913_vm4, %v8917_v56  ;;  %2425 = vmatmul.mubr.bf16.gmra.mxu0 %v2153_v63 }
 0x1c6   : > { %v895_v5 = vsel %vm831_vm7, %v799_v43, %v863_v1  ;;  %v800_v6 = vadd.f32 %v8699_v61, %v761_v2  ;;  %v7835_v7 = vadd.f32 %v7834_v3, %v7833_v55  ;;  %1894 = vmatprep.mubr.bf16.mxu1 %v10752_v57  ;;  %2434 = vmatprep.mubr.bf16.mxu0 %v10752_v57  ;;  %v1478_v26 = vld [vmem:[#allocation2 + $0xe7] sm:$0xff]  ;;  %vm8930_vm7 = vmpackc.low %vm10762_vm1, %vm7709_vm13  ;;  %vm7710_vm13 = vcmp.ne.s32.totalorder %v1280_v30, 0 }
 0x1c7   : > { %965 = vst [vmem:[#allocation2 + $0xf8] sm:$0xff] %v895_v5  ;;  %v7836_v9 = vpop.f32.mrf.mxu0  ;;  %v10862_v29 = vsel %vm8930_vm7, 4294967295, %v10861_v29  ;;  %v3169_v30 = vld [vmem:[#allocation2 + $0x27] sm:$0xff] }
 0x1c8   : > { %vm832_vm14 = vcmp.ge.f32.partialorder %v800_v6, 0.0  ;;  %v864_v13 = vmul.f32 0.1, %v800_v6  ;;  %v762_v14 = vmul.f32 %v7835_v7, %v8694_v58  ;;  %10863 = vst [vmem:[#allocation32_spill] sm:$0xff] %v10862_v29 }
 0x1c9   : > { %v7837_v15 = vpop.f32.mrf.mxu0 }
 0x1ca   : > { %v896_v16 = vsel %vm832_vm14, %v800_v6, %v864_v13  ;;  %v801_v20 = vadd.f32 %v8699_v61, %v762_v14  ;;  %v7838_v23 = vadd.f32 %v7837_v15, %v7836_v9  ;;  %v1479_v28 = vld [vmem:[#allocation2 + $0xef] sm:$0xff]  ;;  %v8060_v9 = vld [vmem:[#allocation10 + $0x2f0] ss:$8 sps:$4 sm:$0xff]   ;;  %v1037_v14 = vadd.s32 24, %v8658_v48 }
 0x1cb   : > { %966 = vst [vmem:[#allocation2 + $0x100] sm:$0xff] %v896_v16  ;;  %v8934_v31 = vpack.c.bf16 %v1479_v28, %v1478_v26  ;;  %v2154_v32 = vpack.c.bf16 %v896_v16, %v895_v5  ;;  %v2286_v34 = vpop.f32.mrf.mxu0  ;;  %v3167_v5 = vld [vmem:[#allocation2 + $0x17] sm:$0xff]  ;;  %v2573_v13 = vld [vmem:[#allocation2 + $0x9] sm:$0xff]  ;;  %v10867_v28 = vmov 0 }
 0x1cc   : > { %vm833_vm4 = vcmp.ge.f32.partialorder %v801_v20, 0.0  ;;  %v865_v37 = vmul.f32 0.1, %v801_v20  ;;  %v763_v38 = vmul.f32 %v7838_v23, %v8694_v58  ;;  %v8937_v39 = vadd.f32 %v2286_v34, %v1756_v11  ;;  %v8065_v11 = vld [vmem:[#allocation10 + $0x2e4] ss:$8 sps:$4 sm:$0xff]  }
 0x1cd   : > { %7235 = vmatmul.mubr.msk.bf16.gmra.mxu1 %vm8930_vm7, %v8934_v31  ;;  %2435 = vmatmul.mubr.bf16.gmra.mxu0 %v2154_v32  ;;  %v2288_v40 = vpop.f32.mrf.mxu0  ;;  %v1035_v58 = vadd.s32 8, %v8658_v48  ;;  %v7354_v8 = vpack.c.bf16 %v3168_v60, %v3167_v5  ;;  %v8063_v15 = vld [vmem:[#allocation10 + $0x2e0] ss:$8 sps:$4 sm:$0xff]   ;;  %v8068_v23 = vld [vmem:[#allocation10 + $0x2d4] ss:$8 sps:$4 sm:$0xff]   ;;  %v1091_v34 = vand.u32 15, %v1037_v14 }
 0x1ce   : > { %v897_v41 = vsel %vm833_vm4, %v801_v20, %v865_v37  ;;  %v802_v43 = vadd.f32 %v8699_v61, %v763_v38  ;;  %1904 = vmatprep.mubr.bf16.mxu1 %v10752_v57  ;;  %3440 = vmatprep.mubr.bf16.mxu0 %v10752_v57  ;;  %v8945_v44 = vadd.f32 %v2288_v40, %v1758_v36  ;;  %vm8951_vm4 = vmpackc.low %vm10762_vm1, %vm7710_vm13  ;;  %v10864_v61 = vmov 0  ;;  %v1480_v2 = vld [vmem:[#allocation2 + $0xf7] sm:$0xff]  ;;  %v3170_v20 = vld [vmem:[#allocation2 + $0x2f] sm:$0xff] }
 0x1cf   : > { %967 = vst [vmem:[#allocation2 + $0x108] sm:$0xff] %v897_v41  ;;  %v2290_v52 = vpop.f32.mrf.mxu0  ;;  %v10865_v61 = vsel %vm8951_vm4, 4294967295, %v10864_v61  ;;  %v1077_v7 = vand.u32 15, %v1035_v58  ;;  %v2574_v16 = vld [vmem:[#allocation2 + $0x11] sm:$0xff]  ;;  %v8039_v26 = vld [vmem:[#allocation10 + $0x270] ss:$8 sps:$4 sm:$0xff]   ;;  %v7358_v36 = vpack.c.bf16 %v3170_v20, %v3169_v30 }
 0x1d0   : > { %vm834_vm14 = vcmp.ge.f32.partialorder %v802_v43, 0.0  ;;  %v866_v55 = vmul.f32 0.1, %v802_v43  ;;  %v8948_v63 = vadd.f32 %v2290_v52, %v1760_v46  ;;  %10866 = vst [vmem:[#allocation33_spill] sm:$0xff] %v10865_v61  ;;  %v7274_v32 = vpack.c.bf16 %v2574_v16, %v2573_v13  ;;  %v8044_v37 = vld [vmem:[#allocation10 + $0x264] ss:$8 sps:$4 sm:$0xff]  }
 0x1d1   : > { %vm7711_vm13 = vcmp.ne.s32.totalorder %v1077_v7, 15  ;;  %v8066_v38 = vld [vmem:[#allocation10 + $0x2d0] ss:$8 sps:$4 sm:$0xff]   ;;  %v8071_v40 = vld [vmem:[#allocation10 + $0x2c4] ss:$8 sps:$4 sm:$0xff]   ;;  %v10870_v60 = vmov 0 }
 0x1d2   : > { %v898_v1 = vsel %vm834_vm14, %v802_v43, %v866_v55  ;;  %v1481_v3 = vld [vmem:[#allocation2 + $0xff] sm:$0xff]  ;;  %vm8966_vm14 = vmpackc.low %vm7711_vm13, %vm10762_vm1  ;;  %v8042_v41 = vld [vmem:[#allocation10 + $0x260] ss:$8 sps:$4 sm:$0xff]   ;;  %vm7712_vm13 = vcmp.ne.s32.totalorder %v1091_v34, 15  ;;  %v1039_v43 = vadd.s32 40, %v8658_v48 }
 0x1d3   : > { %968 = vst [vmem:[#allocation2 + $0x110] sm:$0xff] %v898_v1  ;;  %v8955_v6 = vpack.c.bf16 %v1481_v3, %v1480_v2  ;;  %v10868_v28 = vsel %vm8966_vm14, 4294967295, %v10867_v28  ;;  %v8047_v58 = vld [vmem:[#allocation10 + $0x254] ss:$8 sps:$4 sm:$0xff]   ;;  %v8069_v52 = vld [vmem:[#allocation10 + $0x2c0] ss:$8 sps:$4 sm:$0xff]  }
 0x1d4   : > { %10869 = vst [vmem:[#allocation34_spill] sm:$0xff] %v10868_v28  ;;  %v2576_v46 = vld [vmem:[#allocation2 + $0x21] sm:$0xff]  ;;  %v2575_v55 = vld [vmem:[#allocation2 + $0x19] sm:$0xff]  ;;  %v1105_v2 = vand.u32 15, %v1039_v43  ;;  %v2578_v14 = vld [vmem:[#allocation2 + $0x31] sm:$0xff] }
 0x1d5   : > { %7239 = vmatmul.mubr.msk.bf16.gmra.mxu1 %vm8951_vm4, %v8955_v6  ;;  %7355 = vmatmul.mubr.msk.bf16.vlgmr.msra.gmra.mxu0 %vm8667_vm2, %v7354_v8  ;;  %vm8978_vm2 = vmpackc.low %vm7712_vm13, %vm10762_vm1  ;;  %v8982_v1 = vpack.c.bf16 %v2576_v46, %v2575_v55  ;;  %v8045_v3 = vld [vmem:[#allocation10 + $0x250] ss:$8 sps:$4 sm:$0xff]   ;;  %v8077_v5 = vld [vmem:[#allocation10 + $0x2b4] ss:$8 sps:$4 sm:$0xff]  }
 0x1d6   : > { %2878 = vmatprep.mubr.bf16.mxu1 %v10752_v57  ;;  %3450 = vmatprep.mubr.bf16.mxu0 %v10752_v57  ;;  %v10871_v60 = vsel %vm8978_vm2, 4294967295, %v10870_v60  ;;  %v8050_v7 = vld [vmem:[#allocation10 + $0x244] ss:$8 sps:$4 sm:$0xff]   ;;  %v8075_v8 = vld [vmem:[#allocation10 + $0x2b0] ss:$8 sps:$4 sm:$0xff]   ;;  %vm7713_vm13 = vcmp.ne.s32.totalorder %v1105_v2, 15 }
 0x1d7   : > { %4501 = vmatpush1.bf16.msra.mxu0 %v8060_v9  ;;  %10872 = vst [vmem:[#allocation35_spill] sm:$0xff] %v10871_v60  ;;  %v8080_v9 = vld [vmem:[#allocation10 + $0x2a4] ss:$8 sps:$4 sm:$0xff]   ;;  %v8048_v13 = vld [vmem:[#allocation10 + $0x240] ss:$8 sps:$4 sm:$0xff]   ;;  %v2577_v20 = vld [vmem:[#allocation2 + $0x29] sm:$0xff] }
 0x1d8   : > { %4502 = vmatprep.subr.bf16.mxu0 %v8065_v11  ;;  %v1041_v11 = vadd.s32 56, %v8658_v48  ;;  %v8078_v16 = vld [vmem:[#allocation10 + $0x2a0] ss:$8 sps:$4 sm:$0xff]   ;;  %v8051_v30 = vld [vmem:[#allocation10 + $0x230] ss:$8 sps:$4 sm:$0xff]  }
 0x1d9   : > { %v8056_v34 = vld [vmem:[#allocation10 + $0x224] ss:$8 sps:$4 sm:$0xff]   ;;  %v8059_v43 = vld [vmem:[#allocation10 + $0x214] ss:$8 sps:$4 sm:$0xff]   ;;  %v8057_v2 = vld [vmem:[#allocation10 + $0x210] ss:$8 sps:$4 sm:$0xff]  }
 0x1da   : > { %v2579_v46 = vld [vmem:[#allocation2 + $0x39] sm:$0xff] }
 0x1db   : > { %4503 = vmatpush1.bf16.msra.mxu0 %v8063_v15  ;;  %v8053_v15 = vld [vmem:[#allocation10 + $0x234] ss:$8 sps:$4 sm:$0xff]  }
 0x1dc   : > { %4504 = vmatprep.subr.bf16.mxu0 %v8068_v23  ;;  %v8998_v23 = vpack.c.bf16 %v2578_v14, %v2577_v20  ;;  %v2583_v20 = vld [vmem:[#allocation2 + $0x59] sm:$0xff] }
 0x1dd   : > { %7275 = vmatmul.mubr.msk.bf16.vlgmr.msra.gmra.mxu1 %vm8966_vm14, %v7274_v32  ;;  %7359 = vmatmul.mubr.msk.bf16.gmra.mxu0 %vm8715_vm8, %v7358_v36  ;;  %v8083_v32 = vld [vmem:[#allocation10 + $0x294] ss:$8 sps:$4 sm:$0xff]   ;;  %v8081_v36 = vld [vmem:[#allocation10 + $0x290] ss:$8 sps:$4 sm:$0xff]  }
 0x1de   : > { %3939 = vmatpush1.bf16.msra.mxu1 %v8039_v26  ;;  %2888 = vmatprep.mubr.bf16.mxu1 %v10752_v57  ;;  %v1119_v26 = vand.u32 15, %v1041_v11  ;;  %v2581_v11 = vld [vmem:[#allocation2 + $0x49] sm:$0xff] }
 0x1df   : > { %3460 = vmatprep.mubr.bf16.mxu0 %v10752_v57  ;;  %3940 = vmatprep.subr.bf16.mxu1 %v8044_v37  ;;  %v8086_v37 = vld [vmem:[#allocation10 + $0x284] ss:$8 sps:$4 sm:$0xff]  }
 0x1e0   : > { %4505 = vmatpush1.bf16.msra.mxu0 %v8066_v38  ;;  %v1043_v38 = vadd.s32 72, %v8658_v48 }
 0x1e1   : > { %4506 = vmatprep.subr.bf16.mxu0 %v8071_v40  ;;  %v8054_v40 = vld [vmem:[#allocation10 + $0x220] ss:$8 sps:$4 sm:$0xff]  }
 0x1e2   : > { %3941 = vmatpush1.bf16.msra.mxu1 %v8042_v41  ;;  %v2580_v41 = vld [vmem:[#allocation2 + $0x41] sm:$0xff]  ;;  %v1133_v55 = vand.u32 15, %v1043_v38 }
 0x1e3   : > { %3942 = vmatprep.subr.bf16.mxu1 %v8047_v58  ;;  %v8084_v58 = vld [vmem:[#allocation10 + $0x280] ss:$8 sps:$4 sm:$0xff]  }
 0x1e4   : > { %4507 = vmatpush1.bf16.msra.mxu0 %v8069_v52  ;;  %v9014_v52 = vpack.c.bf16 %v2580_v41, %v2579_v46  ;;  %v2588_v41 = vld [vmem:[#allocation2 + $0x81] sm:$0xff] }
 0x1e5   : > { %7279 = vmatmul.mubr.msk.bf16.gmra.mxu1 %vm8978_vm2, %v8982_v1  ;;  %7363 = vmatmul.mubr.msk.bf16.gmra.mxu0 %vm8729_vm12, %v8747_v27  ;;  %vm8994_vm12 = vmpackc.low %vm7713_vm13, %vm10762_vm1  ;;  %v10873_v27 = vmov 0  ;;  %vm7714_vm13 = vcmp.ne.s32.totalorder %v1119_v26, 15  ;;  %v10882_v26 = vmov 0 }
 0x1e6   : > { %2898 = vmatprep.mubr.bf16.mxu1 %v10752_v57  ;;  %3470 = vmatprep.mubr.bf16.mxu0 %v10752_v57  ;;  %v10874_v27 = vsel %vm8994_vm12, 4294967295, %v10873_v27 }
 0x1e7   : > { %3943 = vmatpush1.bf16.msra.mxu1 %v8045_v3  ;;  %4508 = vmatprep.subr.bf16.mxu0 %v8077_v5  ;;  %10875 = vst [vmem:[#allocation36_spill] sm:$0xff] %v10874_v27  ;;  %v8074_v3 = vld [vmem:[#allocation10 + $0x204] ss:$8 sps:$4 sm:$0xff]   ;;  %v1045_v5 = vadd.s32 88, %v8658_v48 }
 0x1e8   : > { %3944 = vmatprep.subr.bf16.mxu1 %v8050_v7  ;;  %4509 = vmatpush1.bf16.msra.mxu0 %v8075_v8  ;;  %v8072_v7 = vld [vmem:[#allocation10 + $0x200] ss:$8 sps:$4 sm:$0xff]  }
 0x1e9   : > { %4510 = vmatprep.subr.bf16.mxu0 %v8080_v9  ;;  %v2582_v8 = vld [vmem:[#allocation2 + $0x51] sm:$0xff] }
 0x1ea   : > { %v8089_v9 = vld [vmem:[#allocation10 + $0x374] ss:$8 sps:$4 sm:$0xff]   ;;  %v9030_v14 = vpack.c.bf16 %v2582_v8, %v2581_v11 }
 0x1eb   : > { %3945 = vmatpush1.bf16.msra.mxu1 %v8048_v13  ;;  %v10879_v13 = vmov 0 }
 0x1ec   : > { %3946 = vmatprep.subr.bf16.mxu1 %v8053_v15  ;;  %4511 = vmatpush1.bf16.msra.mxu0 %v8078_v16  ;;  %v1047_v15 = vadd.s32 104, %v8658_v48  ;;  %v2584_v16 = vld [vmem:[#allocation2 + $0x61] sm:$0xff] }
 0x1ed   : > { %7283 = vmatmul.mubr.msk.bf16.gmra.mxu1 %vm8994_vm12, %v8998_v23  ;;  %7367 = vmatmul.mubr.msk.bf16.gmra.mxu0 %vm8743_vm0, %v8764_v50  ;;  %vm9010_vm0 = vmpackc.low %vm7714_vm13, %vm10762_vm1  ;;  %v10876_v50 = vmov 0  ;;  %vm7715_vm13 = vcmp.ne.s32.totalorder %v1133_v55, 15 }
 0x1ee   : > { %2908 = vmatprep.mubr.bf16.mxu1 %v10752_v57  ;;  %3480 = vmatprep.mubr.bf16.mxu0 %v10752_v57  ;;  %v10877_v50 = vsel %vm9010_vm0, 4294967295, %v10876_v50  ;;  %vm9026_vm8 = vmpackc.low %vm7715_vm13, %vm10762_vm1 }
 0x1ef   : > { %3947 = vmatpush1.bf16.msra.mxu1 %v8051_v30  ;;  %4512 = vmatprep.subr.bf16.mxu0 %v8083_v32  ;;  %10878 = vst [vmem:[#allocation37_spill] sm:$0xff] %v10877_v50  ;;  %v10880_v13 = vsel %vm9026_vm8, 4294967295, %v10879_v13  ;;  %v9046_v30 = vpack.c.bf16 %v2584_v16, %v2583_v20  ;;  %v1161_v32 = vand.u32 15, %v1047_v15  ;;  %v2592_v15 = vld [vmem:[#allocation2 + $0xa1] sm:$0xff]  ;;  %v2591_v20 = vld [vmem:[#allocation2 + $0x99] sm:$0xff] }
 0x1f0   : > { %3948 = vmatprep.subr.bf16.mxu1 %v8056_v34  ;;  %4513 = vmatpush1.bf16.msra.mxu0 %v8081_v36  ;;  %10881 = vst [vmem:[#allocation38_spill] sm:$0xff] %v10880_v13  ;;  %v2586_v34 = vld [vmem:[#allocation2 + $0x71] sm:$0xff]  ;;  %v2585_v36 = vld [vmem:[#allocation2 + $0x69] sm:$0xff] }
 0x1f1   : > { %4514 = vmatprep.subr.bf16.mxu0 %v8086_v37  ;;  %v10885_v37 = vmov 0  ;;  %v9062_v38 = vpack.c.bf16 %v2586_v34, %v2585_v36  ;;  %v9114_v34 = vpack.c.bf16 %v2592_v15, %v2591_v20  ;;  %v2593_v20 = vld [vmem:[#allocation2 + $0xa9] sm:$0xff] }
 0x1f3   : > { %3949 = vmatpush1.bf16.msra.mxu1 %v8054_v40 }
 0x1f4   : > { %3950 = vmatprep.subr.bf16.mxu1 %v8059_v43  ;;  %4515 = vmatpush1.bf16.msra.mxu0 %v8084_v58  ;;  %v2587_v43 = vld [vmem:[#allocation2 + $0x79] sm:$0xff]  ;;  %v10888_v58 = vmov 0 }
 0x1f5   : > { %7287 = vmatmul.mubr.msk.bf16.gmra.mxu1 %vm9010_vm0, %v9014_v52  ;;  %7371 = vmatmul.mubr.msk.bf16.gmra.mxu0 %vm8760_vm6, %v8781_v12  ;;  %v1147_v12 = vand.u32 15, %v1045_v5  ;;  %v9078_v46 = vpack.c.bf16 %v2588_v41, %v2587_v43  ;;  %v2589_v5 = vld [vmem:[#allocation2 + $0x89] sm:$0xff] }
 0x1f6   : > { %2918 = vmatprep.mubr.bf16.mxu1 %v10752_v57  ;;  %3490 = vmatprep.mubr.bf16.mxu0 %v10752_v57 }
 0x1f7   : > { %3951 = vmatpush1.bf16.msra.mxu1 %v8057_v2  ;;  %vm7716_vm13 = vcmp.ne.s32.totalorder %v1147_v12, 15  ;;  %v2590_v2 = vld [vmem:[#allocation2 + $0x91] sm:$0xff]  ;;  %v1055_v12 = vadd.s32 168, %v8658_v48 }
 0x1f8   : > { %3952 = vmatprep.subr.bf16.mxu1 %v8074_v3  ;;  %vm9042_vm6 = vmpackc.low %vm7716_vm13, %vm10762_vm1  ;;  %v9089_v3 = vpop.f32.mrf.mxu0  ;;  %v9096_v8 = vpack.c.bf16 %v2590_v2, %v2589_v5  ;;  %v2594_v5 = vld [vmem:[#allocation2 + $0xb1] sm:$0xff] }
 0x1f9   : > { %v10883_v26 = vsel %vm9042_vm6, 4294967295, %v10882_v26  ;;  %v1217_v36 = vand.u32 15, %v1055_v12 }
 0x1fa   : > { %10884 = vst [vmem:[#allocation39_spill] sm:$0xff] %v10883_v26 }
 0x1fb   : > { %3953 = vmatpush1.bf16.msra.mxu1 %v8072_v7  ;;  %v10891_v7 = vmov 0 }
 0x1fc   : > { %5062 = vmatprep.subr.bf16.mxu1 %v8089_v9 }
 0x1fd   : > { %7291 = vmatmul.mubr.msk.bf16.gmra.mxu1 %vm9026_vm8, %v9030_v14  ;;  %7375 = vmatmul.mubr.msk.bf16.gmra.mxu0 %vm8777_vm11, %v8798_v35  ;;  %vm7717_vm11 = vcmp.ne.s32.totalorder %v1161_v32, 15  ;;  %v1049_v35 = vadd.s32 120, %v8658_v48  ;;  %v10894_v32 = vmov 0 }
 0x1fe   : > { %2928 = vmatprep.mubr.bf16.mxu1 %v10752_v57  ;;  %3500 = vmatprep.mubr.bf16.mxu0 %v10752_v57  ;;  %vm9058_vm13 = vmpackc.low %vm7717_vm11, %vm10762_vm1 }
 0x1ff   : > { %v10886_v37 = vsel %vm9058_vm13, 4294967295, %v10885_v37  ;;  %v1175_v40 = vand.u32 15, %v1049_v35  ;;  %v9112_v35 = vpop.f32.mrf.mxu1 }
 0x200   : > { %10887 = vst [vmem:[#allocation40_spill] sm:$0xff] %v10886_v37 }
 0x205   : > { %7295 = vmatmul.mubr.msk.bf16.gmra.mxu1 %vm9042_vm6, %v9046_v30  ;;  %7379 = vmatmul.mubr.msk.bf16.gmra.mxu0 %vm8794_vm3, %v8815_v0  ;;  %vm7718_vm3 = vcmp.ne.s32.totalorder %v1175_v40, 15  ;;  %v1051_v0 = vadd.s32 136, %v8658_v48 }
 0x206   : > { %2938 = vmatprep.mubr.bf16.mxu1 %v10752_v57  ;;  %3510 = vmatprep.mubr.bf16.mxu0 %v10752_v57  ;;  %vm9074_vm11 = vmpackc.low %vm7718_vm3, %vm10762_vm1 }
 0x207   : > { %v10889_v58 = vsel %vm9074_vm11, 4294967295, %v10888_v58  ;;  %v1189_v55 = vand.u32 15, %v1051_v0 }
 0x208   : > { %10890 = vst [vmem:[#allocation41_spill] sm:$0xff] %v10889_v58 }
 0x20d   : > { %7299 = vmatmul.mubr.msk.bf16.gmra.mxu1 %vm9058_vm13, %v9062_v38  ;;  %7383 = vmatmul.mubr.msk.bf16.gmra.mxu0 %vm8811_vm9, %v8832_v24  ;;  %vm7719_vm9 = vcmp.ne.s32.totalorder %v1189_v55, 15  ;;  %v1053_v24 = vadd.s32 152, %v8658_v48 }
 0x20e   : > { %2948 = vmatprep.mubr.bf16.mxu1 %v10752_v57  ;;  %3520 = vmatprep.mubr.bf16.mxu0 %v10752_v57  ;;  %vm9092_vm3 = vmpackc.low %vm7719_vm9, %vm10762_vm1 }
 0x20f   : > { %v10892_v7 = vsel %vm9092_vm3, 4294967295, %v10891_v7  ;;  %v1203_v9 = vand.u32 15, %v1053_v24  ;;  %v1057_v24 = vadd.s32 184, %v8658_v48 }
 0x210   : > { %10893 = vst [vmem:[#allocation42_spill] sm:$0xff] %v10892_v7 }
 0x211   : > { %vm7720_vm9 = vcmp.ne.s32.totalorder %v1203_v9, 15 }
 0x215   : > { %7303 = vmatmul.mubr.msk.bf16.gmra.mxu1 %vm9074_vm11, %v9078_v46  ;;  %7387 = vmatmul.mubr.msk.bf16.gmra.mxu0 %vm8828_vm15, %v8849_v53  ;;  %vm9108_vm15 = vmpackc.low %vm7720_vm9, %vm10762_vm1  ;;  %vm7721_vm9 = vcmp.ne.s32.totalorder %v1217_v36, 15 }
 0x216   : > { %2958 = vmatprep.mubr.bf16.mxu1 %v10752_v57  ;;  %3530 = vmatprep.mubr.bf16.mxu0 %v10752_v57  ;;  %v10895_v32 = vsel %vm9108_vm15, 4294967295, %v10894_v32 }
 0x217   : > { %10896 = vst [vmem:[#allocation43_spill] sm:$0xff] %v10895_v32 }
 0x21d   : > { %7307 = vmatmul.mubr.msk.bf16.gmra.mxu1 %vm9092_vm3, %v9096_v8  ;;  %v2296_v53 = vpop.f32.mrf.mxu0  ;;  %7391 = vmatmul.mubr.msk.bf16.gmra.mxu0 %vm8845_vm10, %v8866_v19  ;;  %vm10900_vm10 = vnez %v10853_v45  ;;  %v2595_v45 = vld [vmem:[#allocation2 + $0xb9] sm:$0xff] }
 0x21e   : > { %2968 = vmatprep.mubr.bf16.mxu1 %v10752_v57  ;;  %3540 = vmatprep.mubr.bf16.mxu0 %v10752_v57 }
 0x21f   : > { %v2298_v11 = vpop.f32.mrf.mxu0 }
 0x221   : > { %v2300_v16 = vpop.f32.mrf.mxu0 }
 0x223   : > { %v2302_v19 = vpop.f32.mrf.mxu0 }
 0x225   : > { %v1766_v40 = vpop.f32.mrf.mxu1  ;;  %7311 = vmatmul.mubr.msk.bf16.gmra.mxu1 %vm9108_vm15, %v9114_v34  ;;  %v2306_v0 = vpop.f32.mrf.mxu0  ;;  %7395 = vmatmul.mubr.msk.bf16.gmra.mxu0 %vm8862_vm5, %v8883_v49  ;;  %vm9132_vm5 = vmpackc.low %vm7721_vm9, %vm10762_vm1  ;;  %v10897_v49 = vmov 0 }
 0x226   : > { %v9122_v41 = vadd.f32 %v2296_v53, %v1766_v40  ;;  %2978 = vmatprep.mubr.bf16.mxu1 %v10752_v57  ;;  %3550 = vmatprep.mubr.bf16.mxu0 %v10752_v57  ;;  %v10898_v49 = vsel %vm9132_vm5, 4294967295, %v10897_v49  ;;  %v9136_v40 = vpack.c.bf16 %v2594_v5, %v2593_v20  ;;  %v1231_v57 = vand.u32 15, %v1057_v24 }
 0x227   : > { %v1768_v43 = vpop.f32.mrf.mxu1  ;;  %v2308_v55 = vpop.f32.mrf.mxu0  ;;  %10899 = vst [vmem:[#allocation44_spill] sm:$0xff] %v10898_v49  ;;  %v1059_v24 = vadd.s32 200, %v8658_v48 }
 0x228   : > { %v9127_v2 = vadd.f32 %v2298_v11, %v1768_v43  ;;  %vm7722_vm9 = vcmp.ne.s32.totalorder %v1231_v57, 15 }
 0x229   : > { %v1770_v9 = vpop.f32.mrf.mxu1  ;;  %v2310_v12 = vpop.f32.mrf.mxu0  ;;  %v1245_v33 = vand.u32 15, %v1059_v24  ;;  %v1061_v24 = vadd.s32 216, %v8658_v48 }
 0x22a   : > { %v9129_v15 = vadd.f32 %v2300_v16, %v1770_v9  ;;  %v10901_v9 = vmov 0  }
 0x22b   : > { %v1772_v53 = vpop.f32.mrf.mxu1  ;;  %v2312_v36 = vpop.f32.mrf.mxu0  ;;  %v1259_v42 = vand.u32 15, %v1061_v24 }
 0x22c   : > { %v9138_v17 = vadd.f32 %v2302_v19, %v1772_v53  ;;  %v2596_v53 = vld [vmem:[#allocation2 + $0xc1] sm:$0xff] }
 0x22d   : > { %v1776_v11 = vpop.f32.mrf.mxu1  ;;  %7315 = vmatmul.mubr.msk.bf16.gmra.mxu1 %vm9132_vm5, %v9136_v40  ;;  %v2316_v16 = vpop.f32.mrf.mxu0  ;;  %7399 = vmatmul.mubr.msk.bf16.gmra.mxu0 %vm10900_vm10, %v8900_v21  ;;  %vm9156_vm10 = vmpackc.low %vm7722_vm9, %vm10762_vm1  ;;  %v10902_v21 = vmov 0  ;;  %vm10905_vm9 = vnez %v10856_v18  ;;  %vm7723_vm1 = vcmp.ne.s32.totalorder %v1245_v33, 15  ;;  %vm10912_vm5 = vnez %v10859_v54  ;;  %v2599_v54 = vld [vmem:[#allocation2 + $0xd9] sm:$0xff] }
 0x22e   : > { %v9146_v43 = vadd.f32 %v2306_v0, %v1776_v11  ;;  %2988 = vmatprep.mubr.bf16.mxu1 %v10901_v9  ;;  %3560 = vmatprep.mubr.bf16.mxu0 %v10901_v9  ;;  %v10903_v21 = vsel %vm9156_vm10, 4294967295, %v10902_v21  ;;  %v9160_v11 = vpack.c.bf16 %v2596_v53, %v2595_v45 }
 0x22f   : > { %v1778_v5 = vpop.f32.mrf.mxu1  ;;  %v2318_v19 = vpop.f32.mrf.mxu0  ;;  %10904 = vst [vmem:[#allocation45_spill] sm:$0xff] %v10903_v21 }
 0x230   : > { %v9151_v20 = vadd.f32 %v2308_v55, %v1778_v5  ;;  %v8110_v55 = vld [vmem:[#allocation10 + $0x3f4] ss:$8 sps:$4 sm:$0xff]  }
 0x231   : > { %v1780_v51 = vpop.f32.mrf.mxu1  ;;  %v2320_v22 = vpop.f32.mrf.mxu0  ;;  %5592 = vmatprep.subr.bf16.mxu0 %v8110_v55 }
 0x232   : > { %v9153_v62 = vadd.f32 %v2310_v12, %v1780_v51 }
 0x233   : > { %v1782_v0 = vpop.f32.mrf.mxu1  ;;  %v2322_v57 = vpop.f32.mrf.mxu0 }
 0x234   : > { %v9162_v10 = vadd.f32 %v2312_v36, %v1782_v0  ;;  %v2598_v0 = vld [vmem:[#allocation2 + $0xd1] sm:$0xff] }
 0x235   : > { %v1786_v5 = vpop.f32.mrf.mxu1  ;;  %7319 = vmatmul.mubr.msk.bf16.gmra.mxu1 %vm9156_vm10, %v9160_v11  ;;  %v2326_v51 = vpop.f32.mrf.mxu0  ;;  %7403 = vmatmul.mubr.msk.bf16.gmra.mxu0 %vm10905_vm9, %v8917_v56  ;;  %v2597_v56 = vld [vmem:[#allocation2 + $0xc9] sm:$0xff]  ;;  %vm10907_vm9 = vmmov 1  }
 0x236   : > { %v9170_v12 = vadd.f32 %v2316_v16, %v1786_v5  ;;  %2998 = vmatprep.mubr.bf16.mxu1 %v10901_v9  ;;  %3570 = vmatprep.mubr.bf16.mxu0 %v10901_v9  ;;  %vm9180_vm10 = vmpackc.low %vm7723_vm1, %vm10907_vm9  ;;  %v10908_v16 = vmov 0  ;;  %v9184_v18 = vpack.c.bf16 %v2598_v0, %v2597_v56  ;;  %vm7724_vm1 = vcmp.ne.s32.totalorder %v1259_v42, 15  ;;  %v2600_v0 = vld [vmem:[#allocation2 + $0xe1] sm:$0xff] }
 0x237   : > { %v1788_v45 = vpop.f32.mrf.mxu1  ;;  %v2328_v36 = vpop.f32.mrf.mxu0  ;;  %v10909_v16 = vsel %vm9180_vm10, 4294967295, %v10908_v16 }
 0x238   : > { %v9175_v53 = vadd.f32 %v2318_v19, %v1788_v45  ;;  %10910 = vst [vmem:[#allocation47_spill] sm:$0xff] %v10909_v16  ;;  %v1063_v45 = vadd.s32 232, %v8658_v48 }
 0x239   : > { %v1790_v47 = vpop.f32.mrf.mxu1  ;;  %v2330_v25 = vpop.f32.mrf.mxu0 }
 0x23a   : > { %v9177_v4 = vadd.f32 %v2320_v22, %v1790_v47 }
 0x23b   : > { %v1792_v5 = vpop.f32.mrf.mxu1  ;;  %v2332_v33 = vpop.f32.mrf.mxu0 }
 0x23c   : > { %10906 = vst [vmem:[#allocation46_spill] sm:$0xff] %v9177_v4  ;;  %v9186_v59 = vadd.f32 %v2322_v57, %v1792_v5 }
 0x23d   : > { %v1796_v19 = vpop.f32.mrf.mxu1  ;;  %7323 = vmatmul.mubr.msk.bf16.gmra.mxu1 %vm9180_vm10, %v9184_v18  ;;  %v2336_v47 = vpop.f32.mrf.mxu0  ;;  %7407 = vmatmul.mubr.msk.bf16.gmra.mxu0 %vm10912_vm5, %v8934_v31  ;;  %vm9204_vm5 = vmpackc.low %vm7724_vm1, %vm10907_vm9  ;;  %v10916_v31 = vmov 0 }
 0x23e   : > { %10911 = vst [vmem:[#allocation48_spill] sm:$0xff] %v9186_v59  ;;  %v9194_v22 = vadd.f32 %v2326_v51, %v1796_v19  ;;  %3008 = vmatprep.mubr.bf16.mxu1 %v10901_v9  ;;  %3580 = vmatprep.mubr.bf16.mxu0 %v10901_v9  ;;  %v10917_v31 = vsel %vm9204_vm5, 4294967295, %v10916_v31  ;;  %v9208_v19 = vpack.c.bf16 %v2600_v0, %v2599_v54 }
 0x23f   : > { %v1798_v55 = vpop.f32.mrf.mxu1  ;;  %v2338_v57 = vpop.f32.mrf.mxu0  ;;  %10918 = vst [vmem:[#allocation52_spill] sm:$0xff] %v10917_v31 }
 0x240   : > { %10913 = vst [vmem:[#allocation49_spill] sm:$0xff] %v9194_v22  ;;  %v9199_v24 = vadd.f32 %v2328_v36, %v1798_v55  ;;  %v1273_v22 = vand.u32 15, %v1063_v45  ;;  %v1065_v45 = vadd.s32 248, %v8658_v48 }
 0x241   : > { %v1800_v56 = vpop.f32.mrf.mxu1  ;;  %v2340_v5 = vpop.f32.mrf.mxu0 }
 0x242   : > { %10914 = vst [vmem:[#allocation50_spill] sm:$0xff] %v9199_v24  ;;  %v9201_v59 = vadd.f32 %v2330_v25, %v1800_v56  ;;  %vm7725_vm1 = vcmp.ne.s32.totalorder %v1273_v22, 15  ;;  %v2602_v56 = vld [vmem:[#allocation2 + $0xf1] sm:$0xff]  ;;  %v1287_v48 = vand.u32 15, %v1065_v45 }
 0x243   : > { %v1802_v51 = vpop.f32.mrf.mxu1  ;;  %v2342_v42 = vpop.f32.mrf.mxu0 }
 0x244   : > { %10915 = vst [vmem:[#allocation51_spill] sm:$0xff] %v9201_v59  ;;  %v9210_v4 = vadd.f32 %v2332_v33, %v1802_v51  ;;  %v3198_v51 = vld [vmem:[#allocation2 + $0x10f] sm:$0xff] }
 0x245   : > { %v1806_v36 = vpop.f32.mrf.mxu1  ;;  %7327 = vmatmul.mubr.msk.bf16.gmra.mxu1 %vm9204_vm5, %v9208_v19  ;;  %v2346_v25 = vpop.f32.mrf.mxu0  ;;  %7411 = vmatmul.mubr.msk.bf16.gmra.mxu0 %vm8930_vm7, %v8955_v6  ;;  %v2601_v6 = vld [vmem:[#allocation2 + $0xe9] sm:$0xff]  ;;  %vm9228_vm7 = vmpackc.low %vm7725_vm1, %vm10907_vm9  ;;  %vm7726_vm1 = vcmp.ne.s32.totalorder %v1287_v48, 15 }
 0x246   : > { %10919 = vst [vmem:[#allocation53_spill] sm:$0xff] %v9210_v4  ;;  %v9218_v55 = vadd.f32 %v2336_v47, %v1806_v36  ;;  %3018 = vmatprep.mubr.bf16.mxu1 %v10901_v9  ;;  %3590 = vmatprep.mubr.bf16.mxu0 %v10901_v9  ;;  %v10923_v47 = vmov 0  ;;  %v3197_v36 = vld [vmem:[#allocation2 + $0x107] sm:$0xff]  ;;  %v9232_v22 = vpack.c.bf16 %v2602_v56, %v2601_v6 }
 0x247   : > { %v1808_v54 = vpop.f32.mrf.mxu1  ;;  %v2348_v33 = vpop.f32.mrf.mxu0  ;;  %v10924_v47 = vsel %vm9228_vm7, 4294967295, %v10923_v47 }
 0x248   : > { %10920 = vst [vmem:[#allocation54_spill] sm:$0xff] %v9218_v55  ;;  %v9223_v0 = vadd.f32 %v2338_v57, %v1808_v54  ;;  %10925 = vst [vmem:[#allocation57_spill] sm:$0xff] %v10924_v47  ;;  %v7414_v57 = vpack.c.bf16 %v3198_v51, %v3197_v36  ;;  %v8092_v47 = vld [vmem:[#allocation10 + $0x364] ss:$8 sps:$4 sm:$0xff]  }
 0x249   : > { %v1810_v4 = vpop.f32.mrf.mxu1  ;;  %v2350_v59 = vpop.f32.mrf.mxu0 }
 0x24a   : > { %10921 = vst [vmem:[#allocation55_spill] sm:$0xff] %v9223_v0  ;;  %v9225_v24 = vadd.f32 %v2340_v5, %v1810_v4 }
 0x24b   : > { %v1812_v29 = vpop.f32.mrf.mxu1  ;;  %v2352_v55 = vpop.f32.mrf.mxu0 }
 0x24c   : > { %10922 = vst [vmem:[#allocation56_spill] sm:$0xff] %v9225_v24  ;;  %v9234_v54 = vadd.f32 %v2342_v42, %v1812_v29  ;;  %v2604_v42 = vld [vmem:[#allocation2 + $0x101] sm:$0xff] }
 0x24d   : > { %v1816_v0 = vpop.f32.mrf.mxu1  ;;  %7331 = vmatmul.mubr.msk.bf16.gmra.mxu1 %vm9228_vm7, %v9232_v22  ;;  %v2356_v4 = vpop.f32.mrf.mxu0  ;;  %7415 = vmatmul.mubr.msk.bf16.gmra.mxu0 %vm8951_vm4, %v7414_v57  ;;  %vm9250_vm7 = vmpackc.low %vm7726_vm1, %vm10907_vm9  ;;  %v10930_v57 = vmov 0  ;;  %vm10959_vm9 = vnez %v10898_v49  ;;  %vm10960_vm1 = vnez %v10903_v21  ;;  %v10972_v49 = vld [vmem:[#allocation53_spill] sm:$0xff] }
 0x24e   : > { %10926 = vst [vmem:[#allocation58_spill] sm:$0xff] %v9234_v54  ;;  %v9241_v5 = vadd.f32 %v2346_v25, %v1816_v0  ;;  %3028 = vmatprep.mubr.bf16.mxu1 %v10901_v9  ;;  %4532 = vmatprep.mubr.bf16.mxu0 %v10901_v9  ;;  %v2603_v54 = vld [vmem:[#allocation2 + $0xf9] sm:$0xff]  ;;  %v10931_v57 = vsel %vm9250_vm7, 4294967295, %v10930_v57 }
 0x24f   : > { %v1818_v56 = vpop.f32.mrf.mxu1  ;;  %v2358_v45 = vpop.f32.mrf.mxu0  ;;  %10932 = vst [vmem:[#allocation62_spill] sm:$0xff] %v10931_v57  ;;  %v9254_v0 = vpack.c.bf16 %v2604_v42, %v2603_v54  ;;  %v8111_v42 = vld [vmem:[#allocation10 + $0x3e0] ss:$8 sps:$4 sm:$0xff]  }
 0x250   : > { %10927 = vst [vmem:[#allocation59_spill] sm:$0xff] %v9241_v5  ;;  %v9245_v29 = vadd.f32 %v2348_v33, %v1818_v56  ;;  %v8108_v5 = vld [vmem:[#allocation10 + $0x3f0] ss:$8 sps:$4 sm:$0xff]   ;;  %v8113_v33 = vld [vmem:[#allocation10 + $0x3e4] ss:$8 sps:$4 sm:$0xff]  }
 0x251   : > { %v1820_v51 = vpop.f32.mrf.mxu1  ;;  %v2360_v6 = vpop.f32.mrf.mxu0  ;;  %10933 = vst [vmem:[#allocation63_spill] sm:$0xff] %v9254_v0 }
 0x252   : > { %10928 = vst [vmem:[#allocation60_spill] sm:$0xff] %v9245_v29  ;;  %v9247_v36 = vadd.f32 %v2350_v59, %v1820_v51 }
 0x253   : > { %v1822_v25 = vpop.f32.mrf.mxu1  ;;  %v2362_v61 = vpop.f32.mrf.mxu0 }
 0x254   : > { %10929 = vst [vmem:[#allocation61_spill] sm:$0xff] %v9247_v36  ;;  %v9256_v48 = vadd.f32 %v2352_v55, %v1822_v25  ;;  %v8116_v36 = vld [vmem:[#allocation10 + $0x3d4] ss:$8 sps:$4 sm:$0xff]  }
 0x255   : > { %v1826_v56 = vpop.f32.mrf.mxu1  ;;  %7335 = vmatmul.mubr.msk.bf16.gmra.mxu1 %vm9250_vm7, %v9254_v0  ;;  %v2366_v59 = vpop.f32.mrf.mxu0  ;;  %7451 = vmatmul.mubr.msk.bf16.vlgmr.msra.gmra.mxu0 %vm8966_vm14, %v8982_v1  ;;  %v8087_v1 = vld [vmem:[#allocation10 + $0x370] ss:$8 sps:$4 sm:$0xff]  }
 0x256   : > { %10934 = vst [vmem:[#allocation64_spill] sm:$0xff] %v9256_v48  ;;  %v9264_v51 = vadd.f32 %v2356_v4, %v1826_v56  ;;  %3970 = vmatprep.mubr.bf16.mxu1 %v10901_v9  ;;  %4542 = vmatprep.mubr.bf16.mxu0 %v10901_v9  ;;  %v3730_v48 = vld [vmem:[#allocation2 + $0x20] sm:$0xff]  ;;  %v3729_v4 = vld [vmem:[#allocation2 + $0x18] sm:$0xff] }
 0x257   : > { %v1828_v54 = vpop.f32.mrf.mxu1  ;;  %v2368_v55 = vpop.f32.mrf.mxu0  ;;  %5593 = vmatpush1.bf16.msra.mxu0 %v8108_v5  ;;  %v3825_v28 = vpack.c.bf16 %v3730_v48, %v3729_v4  ;;  %v8114_v5 = vld [vmem:[#allocation10 + $0x3d0] ss:$8 sps:$4 sm:$0xff]   ;;  %v8090_v48 = vld [vmem:[#allocation10 + $0x360] ss:$8 sps:$4 sm:$0xff]  }
 0x258   : > { %10935 = vst [vmem:[#allocation65_spill] sm:$0xff] %v9264_v51  ;;  %v9268_v25 = vadd.f32 %v2358_v45, %v1828_v54  ;;  %5594 = vmatprep.subr.bf16.mxu0 %v8113_v33  ;;  %v8117_v4 = vld [vmem:[#allocation10 + $0x3c0] ss:$8 sps:$4 sm:$0xff]  }
 0x259   : > { %v1830_v29 = vpop.f32.mrf.mxu1  ;;  %v2370_v57 = vpop.f32.mrf.mxu0 }
 0x25a   : > { %v9270_v24 = vadd.f32 %v2360_v6, %v1830_v29  ;;  %v8119_v29 = vld [vmem:[#allocation10 + $0x3c4] ss:$8 sps:$4 sm:$0xff]  }
 0x25b   : > { %v1832_v56 = vpop.f32.mrf.mxu1  ;;  %v2372_v51 = vpop.f32.mrf.mxu0  ;;  %5595 = vmatpush1.bf16.msra.mxu0 %v8111_v42 }
 0x25c   : > { %10936 = vst [vmem:[#allocation66_spill] sm:$0xff] %v9270_v24  ;;  %v9272_v0 = vadd.f32 %v2362_v61, %v1832_v56  ;;  %5596 = vmatprep.subr.bf16.mxu0 %v8116_v36  ;;  %v8095_v61 = vld [vmem:[#allocation10 + $0x354] ss:$8 sps:$4 sm:$0xff]  }
 0x25d   : > { %v1836_v45 = vpop.f32.mrf.mxu1  ;;  %3971 = vmatmul.mubr.bf16.vlgmr.msra.gmra.mxu1 %v3825_v28  ;;  %v2376_v54 = vpop.f32.mrf.mxu0  ;;  %7455 = vmatmul.mubr.msk.bf16.gmra.mxu0 %vm8978_vm2, %v8998_v23  ;;  %v3732_v28 = vld [vmem:[#allocation2 + $0x30] sm:$0xff] }
 0x25e   : > { %10937 = vst [vmem:[#allocation67_spill] sm:$0xff] %v9272_v0  ;;  %v9277_v6 = vadd.f32 %v2366_v59, %v1836_v45  ;;  %5063 = vmatpush1.bf16.msra.mxu1 %v8087_v1  ;;  %3980 = vmatprep.mubr.bf16.mxu1 %v10901_v9  ;;  %v3731_v1 = vld [vmem:[#allocation2 + $0x28] sm:$0xff] }
 0x25f   : > { %v1838_v33 = vpop.f32.mrf.mxu1  ;;  %v2378_v42 = vpop.f32.mrf.mxu0  ;;  %4552 = vmatprep.mubr.bf16.mxu0 %v10901_v9  ;;  %5064 = vmatprep.subr.bf16.mxu1 %v8092_v47  ;;  %v9285_v60 = vpack.c.bf16 %v3732_v28, %v3731_v1  ;;  %v8093_v0 = vld [vmem:[#allocation10 + $0x350] ss:$8 sps:$4 sm:$0xff]   ;;  %v8125_v47 = vld [vmem:[#allocation10 + $0x3b4] ss:$8 sps:$4 sm:$0xff]   ;;  %v8096_v28 = vld [vmem:[#allocation10 + $0x340] ss:$8 sps:$4 sm:$0xff]  }
 0x260   : > { %10938 = vst [vmem:[#allocation68_spill] sm:$0xff] %v9277_v6  ;;  %v9281_v36 = vadd.f32 %v2368_v55, %v1838_v33  ;;  %5597 = vmatpush1.bf16.msra.mxu0 %v8114_v5  ;;  %v8098_v55 = vld [vmem:[#allocation10 + $0x344] ss:$8 sps:$4 sm:$0xff]   ;;  %v8123_v5 = vld [vmem:[#allocation10 + $0x3b0] ss:$8 sps:$4 sm:$0xff]  }
 0x261   : > { %v1840_v56 = vpop.f32.mrf.mxu1  ;;  %v2380_v23 = vpop.f32.mrf.mxu0  ;;  %5598 = vmatprep.subr.bf16.mxu0 %v8119_v29  ;;  %v8101_v1 = vld [vmem:[#allocation10 + $0x334] ss:$8 sps:$4 sm:$0xff]  }
 0x262   : > { %v9283_v59 = vadd.f32 %v2370_v57, %v1840_v56  ;;  %5065 = vmatpush1.bf16.msra.mxu1 %v8090_v48  ;;  %v8128_v57 = vld [vmem:[#allocation10 + $0x3a4] ss:$8 sps:$4 sm:$0xff]  }
 0x263   : > { %v1842_v45 = vpop.f32.mrf.mxu1  ;;  %v2382_v6 = vpop.f32.mrf.mxu0  ;;  %5066 = vmatprep.subr.bf16.mxu1 %v8095_v61  ;;  %v3734_v56 = vld [vmem:[#allocation2 + $0x40] sm:$0xff] }
 0x264   : > { %10939 = vst [vmem:[#allocation69_spill] sm:$0xff] %v9283_v59  ;;  %v9287_v24 = vadd.f32 %v2372_v51, %v1842_v45  ;;  %5599 = vmatpush1.bf16.msra.mxu0 %v8117_v4  ;;  %v8126_v45 = vld [vmem:[#allocation10 + $0x3a0] ss:$8 sps:$4 sm:$0xff]  }
 0x265   : > { %v1846_v33 = vpop.f32.mrf.mxu1  ;;  %3981 = vmatmul.mubr.bf16.gmra.mxu1 %v9285_v60  ;;  %v2386_v29 = vpop.f32.mrf.mxu0  ;;  %7459 = vmatmul.mubr.msk.bf16.gmra.mxu0 %vm8994_vm12, %v9014_v52 }
 0x266   : > { %10940 = vst [vmem:[#allocation70_spill] sm:$0xff] %v9287_v24  ;;  %v9293_v48 = vadd.f32 %v2376_v54, %v1846_v33  ;;  %3990 = vmatprep.mubr.bf16.mxu1 %v10901_v9  ;;  %4562 = vmatprep.mubr.bf16.mxu0 %v10901_v9  ;;  %v3733_v33 = vld [vmem:[#allocation2 + $0x38] sm:$0xff] }
 0x267   : > { %v1848_v51 = vpop.f32.mrf.mxu1  ;;  %v2388_v61 = vpop.f32.mrf.mxu0  ;;  %5067 = vmatpush1.bf16.msra.mxu1 %v8093_v0  ;;  %5600 = vmatprep.subr.bf16.mxu0 %v8125_v47  ;;  %v9301_v24 = vpack.c.bf16 %v3734_v56, %v3733_v33  ;;  %v8099_v0 = vld [vmem:[#allocation10 + $0x330] ss:$8 sps:$4 sm:$0xff]   ;;  %v8131_v47 = vld [vmem:[#allocation10 + $0x394] ss:$8 sps:$4 sm:$0xff]   ;;  %v8132_v33 = vld [vmem:[#allocation10 + $0x380] ss:$8 sps:$4 sm:$0xff]  }
 0x268   : > { %10941 = vst [vmem:[#allocation71_spill] sm:$0xff] %v9293_v48  ;;  %v9297_v4 = vadd.f32 %v2378_v42, %v1848_v51  ;;  %5068 = vmatprep.subr.bf16.mxu1 %v8098_v55  ;;  %5601 = vmatpush1.bf16.msra.mxu0 %v8123_v5  ;;  %v8104_v55 = vld [vmem:[#allocation10 + $0x324] ss:$8 sps:$4 sm:$0xff]   ;;  %v8129_v5 = vld [vmem:[#allocation10 + $0x390] ss:$8 sps:$4 sm:$0xff]  }
 0x269   : > { %v1850_v52 = vpop.f32.mrf.mxu1  ;;  %v2390_v27 = vpop.f32.mrf.mxu0  ;;  %5602 = vmatprep.subr.bf16.mxu0 %v8128_v57 }
 0x26a   : > { %v9299_v54 = vadd.f32 %v2380_v23, %v1850_v52  ;;  %v8134_v23 = vld [vmem:[#allocation10 + $0x384] ss:$8 sps:$4 sm:$0xff]   ;;  %v8107_v52 = vld [vmem:[#allocation10 + $0x314] ss:$8 sps:$4 sm:$0xff]  }
 0x26b   : > { %v1852_v48 = vpop.f32.mrf.mxu1  ;;  %v2392_v59 = vpop.f32.mrf.mxu0  ;;  %5069 = vmatpush1.bf16.msra.mxu1 %v8096_v28  ;;  %v8102_v28 = vld [vmem:[#allocation10 + $0x320] ss:$8 sps:$4 sm:$0xff]  }
 0x26c   : > { %10942 = vst [vmem:[#allocation72_spill] sm:$0xff] %v9299_v54  ;;  %v9303_v42 = vadd.f32 %v2382_v6, %v1852_v48  ;;  %5070 = vmatprep.subr.bf16.mxu1 %v8101_v1  ;;  %5603 = vmatpush1.bf16.msra.mxu0 %v8126_v45  ;;  %v3736_v45 = vld [vmem:[#allocation2 + $0x50] sm:$0xff] }
 0x26d   : > { %v1856_v51 = vpop.f32.mrf.mxu1  ;;  %3991 = vmatmul.mubr.bf16.gmra.mxu1 %v9301_v24  ;;  %v2396_v57 = vpop.f32.mrf.mxu0  ;;  %7463 = vmatmul.mubr.msk.bf16.gmra.mxu0 %vm9010_vm0, %v9030_v14 }
 0x26e   : > { %10943 = vst [vmem:[#allocation73_spill] sm:$0xff] %v9303_v42  ;;  %v9309_v56 = vadd.f32 %v2386_v29, %v1856_v51  ;;  %4000 = vmatprep.mubr.bf16.mxu1 %v10901_v9  ;;  %4572 = vmatprep.mubr.bf16.mxu0 %v10901_v9  ;;  %v3735_v51 = vld [vmem:[#allocation2 + $0x48] sm:$0xff] }
 0x26f   : > { %v1858_v6 = vpop.f32.mrf.mxu1  ;;  %v2398_v48 = vpop.f32.mrf.mxu0  ;;  %5071 = vmatpush1.bf16.msra.mxu1 %v8099_v0  ;;  %5604 = vmatprep.subr.bf16.mxu0 %v8131_v47  ;;  %v9317_v42 = vpack.c.bf16 %v3736_v45, %v3735_v51  ;;  %v8105_v0 = vld [vmem:[#allocation10 + $0x310] ss:$8 sps:$4 sm:$0xff]   ;;  %v8137_v45 = vld [vmem:[#allocation10 + $0x474] ss:$8 sps:$4 sm:$0xff]  }
 0x270   : > { %10944 = vst [vmem:[#allocation74_spill] sm:$0xff] %v9309_v56  ;;  %v9313_v1 = vadd.f32 %v2388_v61, %v1858_v6  ;;  %5072 = vmatprep.subr.bf16.mxu1 %v8104_v55  ;;  %5605 = vmatpush1.bf16.msra.mxu0 %v8129_v5  ;;  %v8122_v61 = vld [vmem:[#allocation10 + $0x304] ss:$8 sps:$4 sm:$0xff]  }
 0x271   : > { %v1860_v14 = vpop.f32.mrf.mxu1  ;;  %v2400_v50 = vpop.f32.mrf.mxu0  ;;  %5606 = vmatprep.subr.bf16.mxu0 %v8134_v23 }
 0x272   : > { %v9315_v29 = vadd.f32 %v2390_v27, %v1860_v14 }
 0x273   : > { %v1862_v56 = vpop.f32.mrf.mxu1  ;;  %v2402_v54 = vpop.f32.mrf.mxu0  ;;  %5073 = vmatpush1.bf16.msra.mxu1 %v8102_v28  ;;  %v3738_v28 = vld [vmem:[#allocation2 + $0x60] sm:$0xff] }
 0x274   : > { %v9319_v47 = vadd.f32 %v2392_v59, %v1862_v56  ;;  %5074 = vmatprep.subr.bf16.mxu1 %v8107_v52  ;;  %5607 = vmatpush1.bf16.msra.mxu0 %v8132_v33  ;;  %v8120_v56 = vld [vmem:[#allocation10 + $0x300] ss:$8 sps:$4 sm:$0xff]  }
 0x275   : > { %v1866_v55 = vpop.f32.mrf.mxu1  ;;  %4001 = vmatmul.mubr.bf16.gmra.mxu1 %v9317_v42  ;;  %v2406_v5 = vpop.f32.mrf.mxu0  ;;  %7467 = vmatmul.mubr.msk.bf16.gmra.mxu0 %vm9026_vm8, %v9046_v30  ;;  %v3737_v30 = vld [vmem:[#allocation2 + $0x58] sm:$0xff] }
 0x276   : > { %v9325_v27 = vadd.f32 %v2396_v57, %v1866_v55  ;;  %4010 = vmatprep.mubr.bf16.mxu1 %v10901_v9  ;;  %4582 = vmatprep.mubr.bf16.mxu0 %v10901_v9  ;;  %v9333_v51 = vpack.c.bf16 %v3738_v28, %v3737_v30  ;;  %v3739_v30 = vld [vmem:[#allocation2 + $0x68] sm:$0xff] }
 0x277   : > { %v1868_v23 = vpop.f32.mrf.mxu1  ;;  %v2408_v59 = vpop.f32.mrf.mxu0  ;;  %5075 = vmatpush1.bf16.msra.mxu1 %v8105_v0 }
 0x278   : > { %v9329_v6 = vadd.f32 %v2398_v48, %v1868_v23  ;;  %5076 = vmatprep.subr.bf16.mxu1 %v8122_v61 }
 0x279   : > { %v1870_v52 = vpop.f32.mrf.mxu1  ;;  %v2410_v33 = vpop.f32.mrf.mxu0 }
 0x27a   : > { %v9331_v14 = vadd.f32 %v2400_v50, %v1870_v52 }
 0x27b   : > { %v1872_v57 = vpop.f32.mrf.mxu1  ;;  %v2412_v55 = vpop.f32.mrf.mxu0  ;;  %5077 = vmatpush1.bf16.msra.mxu1 %v8120_v56 }
 0x27c   : > { %v9335_v13 = vadd.f32 %v2402_v54, %v1872_v57  ;;  %6154 = vmatprep.subr.bf16.mxu1 %v8137_v45  ;;  %v3740_v54 = vld [vmem:[#allocation2 + $0x70] sm:$0xff] }
 0x27d   : > { %v1876_v0 = vpop.f32.mrf.mxu1  ;;  %4011 = vmatmul.mubr.bf16.gmra.mxu1 %v9333_v51  ;;  %v2416_v48 = vpop.f32.mrf.mxu0  ;;  %7471 = vmatmul.mubr.msk.bf16.gmra.mxu0 %vm9042_vm6, %v9062_v38 }
 0x27e   : > { %10945 = vst [vmem:[#allocation75_spill] sm:$0xff] %v9335_v13  ;;  %v9341_v61 = vadd.f32 %v2406_v5, %v1876_v0  ;;  %4020 = vmatprep.mubr.bf16.mxu1 %v10901_v9  ;;  %4592 = vmatprep.mubr.bf16.mxu0 %v10901_v9  ;;  %v9349_v13 = vpack.c.bf16 %v3740_v54, %v3739_v30 }
 0x27f   : > { %v1878_v50 = vpop.f32.mrf.mxu1  ;;  %v2418_v23 = vpop.f32.mrf.mxu0 }
 0x280   : > { %v9345_v56 = vadd.f32 %v2408_v59, %v1878_v50 }
 0x281   : > { %v1880_v28 = vpop.f32.mrf.mxu1  ;;  %v2420_v45 = vpop.f32.mrf.mxu0 }
 0x282   : > { %10946 = vst [vmem:[#allocation76_spill] sm:$0xff] %v9345_v56  ;;  %v9347_v52 = vadd.f32 %v2410_v33, %v1880_v28 }
 0x283   : > { %v1882_v57 = vpop.f32.mrf.mxu1  ;;  %v2422_v38 = vpop.f32.mrf.mxu0 }
 0x284   : > { %10947 = vst [vmem:[#allocation77_spill] sm:$0xff] %v9347_v52  ;;  %v9351_v5 = vadd.f32 %v2412_v55, %v1882_v57  ;;  %v3742_v55 = vld [vmem:[#allocation2 + $0x80] sm:$0xff] }
 0x285   : > { %v1886_v0 = vpop.f32.mrf.mxu1  ;;  %4021 = vmatmul.mubr.bf16.gmra.mxu1 %v9349_v13  ;;  %v2426_v26 = vpop.f32.mrf.mxu0  ;;  %7475 = vmatmul.mubr.msk.bf16.gmra.mxu0 %vm9058_vm13, %v9078_v46 }
 0x286   : > { %10948 = vst [vmem:[#allocation78_spill] sm:$0xff] %v9351_v5  ;;  %v9357_v59 = vadd.f32 %v2416_v48, %v1886_v0  ;;  %4030 = vmatprep.mubr.bf16.mxu1 %v10901_v9  ;;  %4602 = vmatprep.mubr.bf16.mxu0 %v10901_v9  ;;  %v3741_v5 = vld [vmem:[#allocation2 + $0x78] sm:$0xff] }
 0x287   : > { %v1888_v33 = vpop.f32.mrf.mxu1  ;;  %v2428_v50 = vpop.f32.mrf.mxu0  ;;  %v9365_v56 = vpack.c.bf16 %v3742_v55, %v3741_v5 }
 0x288   : > { %v9361_v54 = vadd.f32 %v2418_v23, %v1888_v33 }
 0x289   : > { %v1890_v28 = vpop.f32.mrf.mxu1  ;;  %v2430_v30 = vpop.f32.mrf.mxu0 }
 0x28a   : > { %10949 = vst [vmem:[#allocation79_spill] sm:$0xff] %v9361_v54  ;;  %v9363_v57 = vadd.f32 %v2420_v45, %v1890_v28 }
 0x28b   : > { %v1892_v52 = vpop.f32.mrf.mxu1  ;;  %v2432_v46 = vpop.f32.mrf.mxu0 }
 0x28c   : > { %10950 = vst [vmem:[#allocation80_spill] sm:$0xff] %v9363_v57  ;;  %v9367_v48 = vadd.f32 %v2422_v38, %v1892_v52  ;;  %v3744_v52 = vld [vmem:[#allocation2 + $0x90] sm:$0xff] }
 0x28d   : > { %v1896_v0 = vpop.f32.mrf.mxu1  ;;  %4031 = vmatmul.mubr.bf16.gmra.mxu1 %v9365_v56  ;;  %v2436_v37 = vpop.f32.mrf.mxu0  ;;  %7479 = vmatmul.mubr.msk.bf16.gmra.mxu0 %vm9074_vm11, %v9096_v8 }
 0x28e   : > { %10951 = vst [vmem:[#allocation81_spill] sm:$0xff] %v9367_v48  ;;  %v9373_v23 = vadd.f32 %v2426_v26, %v1896_v0  ;;  %4040 = vmatprep.mubr.bf16.mxu1 %v10901_v9  ;;  %4612 = vmatprep.mubr.bf16.mxu0 %v10901_v9  ;;  %v3743_v48 = vld [vmem:[#allocation2 + $0x88] sm:$0xff] }
 0x28f   : > { %v1898_v45 = vpop.f32.mrf.mxu1  ;;  %v2438_v5 = vpop.f32.mrf.mxu0  ;;  %v9381_v54 = vpack.c.bf16 %v3744_v52, %v3743_v48 }
 0x290   : > { %v9377_v33 = vadd.f32 %v2428_v50, %v1898_v45 }
 0x291   : > { %v1900_v38 = vpop.f32.mrf.mxu1  ;;  %v2440_v55 = vpop.f32.mrf.mxu0 }
 0x292   : > { %10952 = vst [vmem:[#allocation82_spill] sm:$0xff] %v9377_v33  ;;  %v9379_v28 = vadd.f32 %v2430_v30, %v1900_v38 }
 0x293   : > { %v1902_v57 = vpop.f32.mrf.mxu1  ;;  %v2442_v8 = vpop.f32.mrf.mxu0 }
 0x294   : > { %10953 = vst [vmem:[#allocation83_spill] sm:$0xff] %v9379_v28  ;;  %v9383_v26 = vadd.f32 %v2432_v46, %v1902_v57  ;;  %v3746_v57 = vld [vmem:[#allocation2 + $0xa0] sm:$0xff] }
 0x295   : > { %v1906_v0 = vpop.f32.mrf.mxu1  ;;  %4041 = vmatmul.mubr.bf16.gmra.mxu1 %v9381_v54  ;;  %v3442_v58 = vpop.f32.mrf.mxu0  ;;  %7483 = vmatmul.mubr.msk.bf16.gmra.mxu0 %vm9092_vm3, %v9114_v34 }
 0x296   : > { %10954 = vst [vmem:[#allocation84_spill] sm:$0xff] %v9383_v26  ;;  %v9389_v50 = vadd.f32 %v2436_v37, %v1906_v0  ;;  %4050 = vmatprep.mubr.bf16.mxu1 %v10901_v9  ;;  %4622 = vmatprep.mubr.bf16.mxu0 %v10901_v9  ;;  %v3745_v26 = vld [vmem:[#allocation2 + $0x98] sm:$0xff] }
 0x297   : > { %v1908_v30 = vpop.f32.mrf.mxu1  ;;  %v3444_v48 = vpop.f32.mrf.mxu0  ;;  %v9397_v33 = vpack.c.bf16 %v3746_v57, %v3745_v26 }
 0x298   : > { %10955 = vst [vmem:[#allocation85_spill] sm:$0xff] %v9389_v50  ;;  %v9393_v45 = vadd.f32 %v2438_v5, %v1908_v30 }
 0x299   : > { %v1910_v46 = vpop.f32.mrf.mxu1  ;;  %v3446_v52 = vpop.f32.mrf.mxu0 }
 0x29a   : > { %10956 = vst [vmem:[#allocation86_spill] sm:$0xff] %v9393_v45  ;;  %v9395_v38 = vadd.f32 %v2440_v55, %v1910_v46 }
 0x29b   : > { %v1912_v28 = vpop.f32.mrf.mxu1  ;;  %v3448_v34 = vpop.f32.mrf.mxu0 }
 0x29c   : > { %10957 = vst [vmem:[#allocation87_spill] sm:$0xff] %v9395_v38  ;;  %v9399_v37 = vadd.f32 %v2442_v8, %v1912_v28  ;;  %v3748_v8 = vld [vmem:[#allocation2 + $0xb0] sm:$0xff] }
 0x29d   : > { %v2880_v0 = vpop.f32.mrf.mxu1  ;;  %4051 = vmatmul.mubr.bf16.gmra.mxu1 %v9397_v33  ;;  %v3452_v7 = vpop.f32.mrf.mxu0  ;;  %7487 = vmatmul.mubr.msk.bf16.gmra.mxu0 %vm9108_vm15, %v9136_v40  ;;  %v3747_v40 = vld [vmem:[#allocation2 + $0xa8] sm:$0xff] }
 0x29e   : > { %10958 = vst [vmem:[#allocation88_spill] sm:$0xff] %v9399_v37  ;;  %v3039_v5 = vadd.f32 %v2880_v0, %v8937_v39  ;;  %4060 = vmatprep.mubr.bf16.mxu1 %v10901_v9  ;;  %4632 = vmatprep.mubr.bf16.mxu0 %v10901_v9  ;;  %v2448_v37 = vadd.f32 %v9089_v3, %v9112_v35 }
 0x29f   : > { %v2882_v55 = vpop.f32.mrf.mxu1  ;;  %v3454_v26 = vpop.f32.mrf.mxu0  ;;  %v9416_v38 = vpack.c.bf16 %v3748_v8, %v3747_v40 }
 0x2a0   : > { %v9408_v30 = vadd.f32 %v3442_v58, %v3039_v5  ;;  %v3040_v28 = vadd.f32 %v2882_v55, %v8945_v44  ;;  %v3750_v55 = vld [vmem:[#allocation2 + $0xc0] sm:$0xff] }
 0x2a1   : > { %v2884_v57 = vpop.f32.mrf.mxu1  ;;  %v3456_v46 = vpop.f32.mrf.mxu0 }
 0x2a2   : > { %v9413_v32 = vadd.f32 %v3444_v48, %v3040_v28  ;;  %v3041_v39 = vadd.f32 %v2884_v57, %v8948_v63 }
 0x2a3   : > { %v2886_v0 = vpop.f32.mrf.mxu1  ;;  %v3458_v45 = vpop.f32.mrf.mxu0 }
 0x2a4   : > { %v9418_v50 = vadd.f32 %v3446_v52, %v3041_v39  ;;  %v3042_v58 = vadd.f32 %v2886_v0, %v2448_v37 }
 0x2a5   : > { %v2890_v5 = vpop.f32.mrf.mxu1  ;;  %4061 = vmatmul.mubr.bf16.gmra.mxu1 %v9416_v38  ;;  %v3462_v44 = vpop.f32.mrf.mxu0  ;;  %7491 = vmatmul.mubr.msk.bf16.gmra.mxu0 %vm10959_vm9, %v9160_v11 }
 0x2a6   : > { %v9424_v3 = vadd.f32 %v3448_v34, %v3042_v58  ;;  %v3043_v63 = vadd.f32 %v2890_v5, %v9122_v41  ;;  %4070 = vmatprep.mubr.bf16.mxu1 %v10901_v9  ;;  %4642 = vmatprep.mubr.bf16.mxu0 %v10901_v9  ;;  %v3749_v34 = vld [vmem:[#allocation2 + $0xb8] sm:$0xff] }
 0x2a7   : > { %v2892_v35 = vpop.f32.mrf.mxu1  ;;  %v3464_v48 = vpop.f32.mrf.mxu0  ;;  %v9435_v41 = vpack.c.bf16 %v3750_v55, %v3749_v34 }
 0x2a8   : > { %v9429_v52 = vadd.f32 %v3452_v7, %v3043_v63  ;;  %v3044_v37 = vadd.f32 %v2892_v35, %v9127_v2  ;;  %v3752_v35 = vld [vmem:[#allocation2 + $0xd0] sm:$0xff] }
 0x2a9   : > { %v2894_v28 = vpop.f32.mrf.mxu1  ;;  %v3466_v8 = vpop.f32.mrf.mxu0 }
 0x2aa   : > { %v9432_v57 = vadd.f32 %v3454_v26, %v3044_v37  ;;  %v3045_v11 = vadd.f32 %v2894_v28, %v9129_v15 }
 0x2ab   : > { %v2896_v39 = vpop.f32.mrf.mxu1  ;;  %v3468_v40 = vpop.f32.mrf.mxu0 }
 0x2ac   : > { %v9437_v0 = vadd.f32 %v3456_v46, %v3045_v11  ;;  %v3046_v58 = vadd.f32 %v2896_v39, %v9138_v17 }
 0x2ad   : > { %v2900_v7 = vpop.f32.mrf.mxu1  ;;  %4071 = vmatmul.mubr.bf16.gmra.mxu1 %v9435_v41  ;;  %v3472_v2 = vpop.f32.mrf.mxu0  ;;  %7495 = vmatmul.mubr.msk.bf16.gmra.mxu0 %vm10960_vm1, %v9184_v18 }
 0x2ae   : > { %v9444_v26 = vadd.f32 %v3458_v45, %v3046_v58  ;;  %v3047_v15 = vadd.f32 %v2900_v7, %v9146_v43  ;;  %4080 = vmatprep.mubr.bf16.mxu1 %v10901_v9  ;;  %4652 = vmatprep.mubr.bf16.mxu0 %v10901_v9  ;;  %v3751_v45 = vld [vmem:[#allocation2 + $0xc8] sm:$0xff] }
 0x2af   : > { %v2902_v46 = vpop.f32.mrf.mxu1  ;;  %v3474_v5 = vpop.f32.mrf.mxu0  ;;  %v9455_v43 = vpack.c.bf16 %v3752_v35, %v3751_v45 }
 0x2b0   : > { %v9449_v63 = vadd.f32 %v3462_v44, %v3047_v15  ;;  %v3048_v17 = vadd.f32 %v2902_v46, %v9151_v20  ;;  %v3754_v46 = vld [vmem:[#allocation2 + $0xe0] sm:$0xff] }
 0x2b1   : > { %v2904_v37 = vpop.f32.mrf.mxu1  ;;  %v3476_v55 = vpop.f32.mrf.mxu0 }
 0x2b2   : > { %v9452_v28 = vadd.f32 %v3464_v48, %v3048_v17  ;;  %v3049_v18 = vadd.f32 %v2904_v37, %v9153_v62 }
 0x2b3   : > { %v2906_v11 = vpop.f32.mrf.mxu1  ;;  %v3478_v34 = vpop.f32.mrf.mxu0 }
 0x2b4   : > { %v9457_v39 = vadd.f32 %v3466_v8, %v3049_v18  ;;  %v3050_v58 = vadd.f32 %v2906_v11, %v9162_v10  ;;  %v3753_v18 = vld [vmem:[#allocation2 + $0xd8] sm:$0xff] }
 0x2b5   : > { %v2910_v44 = vpop.f32.mrf.mxu1  ;;  %4081 = vmatmul.mubr.bf16.gmra.mxu1 %v9455_v43  ;;  %v3482_v20 = vpop.f32.mrf.mxu0  ;;  %7499 = vmatmul.mubr.msk.bf16.gmra.mxu0 %vm9180_vm10, %v9208_v19  ;;  %v10962_v19 = vld [vmem:[#allocation46_spill] sm:$0xff] }
 0x2b6   : > { %v9464_v48 = vadd.f32 %v3468_v40, %v3050_v58  ;;  %v3051_v62 = vadd.f32 %v2910_v44, %v9170_v12  ;;  %4090 = vmatprep.mubr.bf16.mxu1 %v10901_v9  ;;  %4662 = vmatprep.mubr.bf16.mxu0 %v10901_v9  ;;  %v9475_v12 = vpack.c.bf16 %v3754_v46, %v3753_v18  ;;  %v10964_v44 = vld [vmem:[#allocation48_spill] sm:$0xff] }
 0x2b7   : > { %v2912_v8 = vpop.f32.mrf.mxu1  ;;  %v3484_v7 = vpop.f32.mrf.mxu0 }
 0x2b8   : > { %v9469_v15 = vadd.f32 %v3472_v2, %v3051_v62  ;;  %v3052_v10 = vadd.f32 %v2912_v8, %v9175_v53  ;;  %v10966_v62 = vld [vmem:[#allocation49_spill] sm:$0xff] }
 0x2b9   : > { %v2914_v17 = vpop.f32.mrf.mxu1  ;;  %v3486_v35 = vpop.f32.mrf.mxu0 }
 0x2ba   : > { %v9472_v37 = vadd.f32 %v3474_v5, %v3052_v10  ;;  %v3053_v40 = vadd.f32 %v2914_v17, %v10962_v19  ;;  %v10968_v17 = vld [vmem:[#allocation50_spill] sm:$0xff] }
 0x2bb   : > { %v2916_v45 = vpop.f32.mrf.mxu1  ;;  %v3488_v11 = vpop.f32.mrf.mxu0 }
 0x2bc   : > { %10961 = vst [vmem:[#allocation89_spill] sm:$0xff] %v9472_v37  ;;  %v9477_v58 = vadd.f32 %v3476_v55, %v3053_v40  ;;  %v3054_v16 = vadd.f32 %v2916_v45, %v10964_v44  ;;  %v3756_v40 = vld [vmem:[#allocation2 + $0xf0] sm:$0xff] }
 0x2bd   : > { %v2920_v2 = vpop.f32.mrf.mxu1  ;;  %4091 = vmatmul.mubr.bf16.gmra.mxu1 %v9475_v12  ;;  %v3492_v53 = vpop.f32.mrf.mxu0  ;;  %7503 = vmatmul.mubr.msk.bf16.gmra.mxu0 %vm9204_vm5, %v9232_v22  ;;  %v10970_v22 = vld [vmem:[#allocation51_spill] sm:$0xff] }
 0x2be   : > { %10963 = vst [vmem:[#allocation46_spill] sm:$0xff] %v9477_v58  ;;  %v9484_v5 = vadd.f32 %v3478_v34, %v3054_v16  ;;  %v3055_v8 = vadd.f32 %v2920_v2, %v10966_v62  ;;  %4100 = vmatprep.mubr.bf16.mxu1 %v10901_v9  ;;  %4672 = vmatprep.mubr.bf16.mxu0 %v10901_v9  ;;  %v3755_v34 = vld [vmem:[#allocation2 + $0xe8] sm:$0xff] }
 0x2bf   : > { %v2922_v55 = vpop.f32.mrf.mxu1  ;;  %v3494_v10 = vpop.f32.mrf.mxu0  ;;  %v9495_v2 = vpack.c.bf16 %v3756_v40, %v3755_v34  ;;  %v4289_v34 = vld [vmem:[#allocation2 + $0x109] sm:$0xff] }
 0x2c0   : > { %10965 = vst [vmem:[#allocation48_spill] sm:$0xff] %v9484_v5  ;;  %v9489_v46 = vadd.f32 %v3482_v20, %v3055_v8  ;;  %v3056_v19 = vadd.f32 %v2922_v55, %v10968_v17  ;;  %v10973_v55 = vld [vmem:[#allocation63_spill] sm:$0xff]  ;;  %v10974_v17 = vld [vmem:[#allocation57_spill] sm:$0xff] }
 0x2c1   : > { %v2924_v18 = vpop.f32.mrf.mxu1  ;;  %v3496_v45 = vpop.f32.mrf.mxu0  ;;  %vm10975_vm5 = vnez %v10974_v17 }
 0x2c2   : > { %10967 = vst [vmem:[#allocation49_spill] sm:$0xff] %v9489_v46  ;;  %v9492_v44 = vadd.f32 %v3484_v7, %v3056_v19  ;;  %v3057_v16 = vadd.f32 %v2924_v18, %v10970_v22  ;;  %v10977_v19 = vld [vmem:[#allocation54_spill] sm:$0xff] }
 0x2c3   : > { %v2926_v31 = vpop.f32.mrf.mxu1  ;;  %v3498_v62 = vpop.f32.mrf.mxu0 }
 0x2c4   : > { %10969 = vst [vmem:[#allocation50_spill] sm:$0xff] %v9492_v44  ;;  %v9497_v21 = vadd.f32 %v3486_v35, %v3057_v16  ;;  %v3058_v5 = vadd.f32 %v2926_v31, %v10972_v49  ;;  %v10979_v49 = vld [vmem:[#allocation55_spill] sm:$0xff] }
 0x2c5   : > { %v2930_v20 = vpop.f32.mrf.mxu1  ;;  %4101 = vmatmul.mubr.bf16.gmra.mxu1 %v9495_v2  ;;  %v3502_v8 = vpop.f32.mrf.mxu0  ;;  %7507 = vmatmul.mubr.msk.bf16.gmra.mxu0 %vm10975_vm5, %v10973_v55  ;;  %v3758_v16 = vld [vmem:[#allocation2 + $0x100] sm:$0xff] }
 0x2c6   : > { %10971 = vst [vmem:[#allocation51_spill] sm:$0xff] %v9497_v21  ;;  %v9504_v7 = vadd.f32 %v3488_v11, %v3058_v5  ;;  %v3059_v18 = vadd.f32 %v2930_v20, %v10977_v19  ;;  %4110 = vmatprep.mubr.bf16.mxu1 %v10901_v9  ;;  %4682 = vmatprep.mubr.bf16.mxu0 %v10901_v9  ;;  %v4290_v21 = vld [vmem:[#allocation2 + $0x111] sm:$0xff] }
 0x2c7   : > { %v2932_v35 = vpop.f32.mrf.mxu1  ;;  %v3504_v40 = vpop.f32.mrf.mxu0  ;;  %v10981_v11 = vld [vmem:[#allocation56_spill] sm:$0xff]  ;;  %v3757_v20 = vld [vmem:[#allocation2 + $0xf8] sm:$0xff]  ;;  %v7510_v58 = vpack.c.bf16 %v4290_v21, %v4289_v34 }
 0x2c8   : > { %10976 = vst [vmem:[#allocation53_spill] sm:$0xff] %v9504_v7  ;;  %v9509_v22 = vadd.f32 %v3492_v53, %v3059_v18  ;;  %v3060_v31 = vadd.f32 %v2932_v35, %v10979_v49  ;;  %v9515_v7 = vpack.c.bf16 %v3758_v16, %v3757_v20  ;;  %v10983_v53 = vld [vmem:[#allocation58_spill] sm:$0xff]  ;;  %v10988_v34 = vld [vmem:[#allocation60_spill] sm:$0xff] }
 0x2c9   : > { %v2934_v44 = vpop.f32.mrf.mxu1  ;;  %v3506_v17 = vpop.f32.mrf.mxu0  ;;  %v3760_v20 = vld [vmem:[#allocation2 + $0x110] sm:$0xff] }
 0x2ca   : > { %10978 = vst [vmem:[#allocation63_spill] sm:$0xff] %v9509_v22  ;;  %v9512_v55 = vadd.f32 %v3494_v10, %v3060_v31  ;;  %v3061_v5 = vadd.f32 %v2934_v44, %v10981_v11  ;;  %v10986_v44 = vld [vmem:[#allocation59_spill] sm:$0xff] }
 0x2cb   : > { %v2936_v19 = vpop.f32.mrf.mxu1  ;;  %v3508_v46 = vpop.f32.mrf.mxu0 }
 0x2cc   : > { %10980 = vst [vmem:[#allocation54_spill] sm:$0xff] %v9512_v55  ;;  %v9517_v37 = vadd.f32 %v3496_v45, %v3061_v5  ;;  %v3062_v18 = vadd.f32 %v2936_v19, %v10983_v53  ;;  %v3759_v5 = vld [vmem:[#allocation2 + $0x108] sm:$0xff] }
 0x2cd   : > { %v2940_v35 = vpop.f32.mrf.mxu1  ;;  %4111 = vmatmul.mubr.bf16.gmra.mxu1 %v9515_v7  ;;  %v3512_v49 = vpop.f32.mrf.mxu0  ;;  %7511 = vmatmul.mubr.msk.bf16.gmra.mxu0 %vm9250_vm7, %v7510_v58  ;;  %v10990_v58 = vld [vmem:[#allocation61_spill] sm:$0xff] }
 0x2ce   : > { %10982 = vst [vmem:[#allocation55_spill] sm:$0xff] %v9517_v37  ;;  %v9523_v10 = vadd.f32 %v3498_v62, %v3062_v18  ;;  %v3063_v31 = vadd.f32 %v2940_v35, %v10986_v44  ;;  %4120 = vmatprep.mubr.bf16.mxu1 %v10901_v9  ;;  %5624 = vmatprep.mubr.bf16.mxu0 %v10901_v9  ;;  %v10992_v37 = vld [vmem:[#allocation64_spill] sm:$0xff] }
 0x2cf   : > { %v2942_v21 = vpop.f32.mrf.mxu1  ;;  %v3514_v45 = vpop.f32.mrf.mxu0  ;;  %v9534_v35 = vpack.c.bf16 %v3760_v20, %v3759_v5  ;;  %v4822_v20 = vld [vmem:[#allocation2 + $0x2f] sm:$0xff] }
 0x2d0   : > { %10985 = vst [vmem:[#allocation56_spill] sm:$0xff] %v9523_v10  ;;  %v9528_v16 = vadd.f32 %v3502_v8, %v3063_v31  ;;  %v3064_v11 = vadd.f32 %v2942_v21, %v10988_v34 }
 0x2d1   : > { %v2944_v19 = vpop.f32.mrf.mxu1  ;;  %v3516_v53 = vpop.f32.mrf.mxu0 }
 0x2d2   : > { %10987 = vst [vmem:[#allocation58_spill] sm:$0xff] %v9528_v16  ;;  %v9531_v22 = vadd.f32 %v3504_v40, %v3064_v11  ;;  %v3065_v62 = vadd.f32 %v2944_v19, %v10990_v58  ;;  %v10994_v40 = vld [vmem:[#allocation65_spill] sm:$0xff]  ;;  %v10997_v16 = vld [vmem:[#allocation67_spill] sm:$0xff] }
 0x2d3   : > { %v2946_v18 = vpop.f32.mrf.mxu1  ;;  %v3518_v44 = vpop.f32.mrf.mxu0 }
 0x2d4   : > { %10989 = vst [vmem:[#allocation59_spill] sm:$0xff] %v9531_v22  ;;  %v9536_v10 = vadd.f32 %v3506_v17, %v3065_v62  ;;  %v3066_v55 = vadd.f32 %v2946_v18, %v10992_v37  ;;  %v4821_v18 = vld [vmem:[#allocation2 + $0x27] sm:$0xff] }
 0x2d5   : > { %v2950_v8 = vpop.f32.mrf.mxu1  ;;  %4121 = vmatmul.mubr.bf16.gmra.mxu1 %v9534_v35  ;;  %v3522_v31 = vpop.f32.mrf.mxu0  ;;  %5625 = vmatmul.mubr.bf16.vlgmr.msra.gmra.mxu0 %v9285_v60  ;;  %v10996_v60 = vld [vmem:[#allocation66_spill] sm:$0xff] }
 0x2d6   : > { %10991 = vst [vmem:[#allocation60_spill] sm:$0xff] %v9536_v10  ;;  %v9541_v21 = vadd.f32 %v3508_v46, %v3066_v55  ;;  %v3067_v34 = vadd.f32 %v2950_v8, %v10994_v40  ;;  %5094 = vmatprep.mubr.bf16.mxu1 %v10901_v9  ;;  %5634 = vmatprep.mubr.bf16.mxu0 %v10901_v9  ;;  %v8135_v55 = vld [vmem:[#allocation10 + $0x470] ss:$8 sps:$4 sm:$0xff]   ;;  %v8140_v10 = vld [vmem:[#allocation10 + $0x464] ss:$8 sps:$4 sm:$0xff]  }
 0x2d7   : > { %v2952_v11 = vpop.f32.mrf.mxu1  ;;  %v3524_v5 = vpop.f32.mrf.mxu0  ;;  %v7530_v40 = vpack.c.bf16 %v4822_v20, %v4821_v18  ;;  %v8138_v20 = vld [vmem:[#allocation10 + $0x460] ss:$8 sps:$4 sm:$0xff]  }
 0x2d8   : > { %10993 = vst [vmem:[#allocation61_spill] sm:$0xff] %v9541_v21  ;;  %v9546_v17 = vadd.f32 %v3512_v49, %v3067_v34  ;;  %v3068_v37 = vadd.f32 %v2952_v11, %v9268_v25  ;;  %v11001_v11 = vld [vmem:[#allocation68_spill] sm:$0xff] }
 0x2d9   : > { %v2954_v19 = vpop.f32.mrf.mxu1  ;;  %v3526_v58 = vpop.f32.mrf.mxu0 }
 0x2da   : > { %10995 = vst [vmem:[#allocation64_spill] sm:$0xff] %v9546_v17  ;;  %v9549_v62 = vadd.f32 %v3514_v45, %v3068_v37  ;;  %v3069_v46 = vadd.f32 %v2954_v19, %v10996_v60  ;;  %v10998_v17 = vld [vmem:[#allocation18_spill] sm:$0xff] }
 0x2db   : > { %v2956_v8 = vpop.f32.mrf.mxu1  ;;  %v3528_v21 = vpop.f32.mrf.mxu0  ;;  %vm10999_vm7 = vnez %v10998_v17 }
 0x2dc   : > { %v9552_v22 = vadd.f32 %v3516_v53, %v3069_v46  ;;  %v3070_v49 = vadd.f32 %v2956_v8, %v10997_v16  ;;  %v8143_v16 = vld [vmem:[#allocation10 + $0x454] ss:$8 sps:$4 sm:$0xff]   ;;  %v11003_v8 = vld [vmem:[#allocation69_spill] sm:$0xff] }
 0x2dd   : > { %v2960_v34 = vpop.f32.mrf.mxu1  ;;  %7531 = vmatmul.mubr.msk.bf16.vlgmr.msra.gmra.mxu1 %vm10999_vm7, %v7530_v40  ;;  %v3532_v25 = vpop.f32.mrf.mxu0  ;;  %5635 = vmatmul.mubr.bf16.gmra.mxu0 %v9301_v24  ;;  %v4824_v46 = vld [vmem:[#allocation2 + $0x3f] sm:$0xff]  ;;  %v4823_v40 = vld [vmem:[#allocation2 + $0x37] sm:$0xff] }
 0x2de   : > { %v9558_v45 = vadd.f32 %v3518_v44, %v3070_v49  ;;  %v3071_v37 = vadd.f32 %v2960_v34, %v11001_v11  ;;  %6155 = vmatpush1.bf16.msra.mxu1 %v8135_v55  ;;  %5104 = vmatprep.mubr.bf16.mxu1 %v10901_v9  ;;  %v7534_v34 = vpack.c.bf16 %v4824_v46, %v4823_v40  ;;  %v8144_v46 = vld [vmem:[#allocation10 + $0x440] ss:$8 sps:$4 sm:$0xff]  }
 0x2df   : > { %v2962_v19 = vpop.f32.mrf.mxu1  ;;  %v3534_v53 = vpop.f32.mrf.mxu0  ;;  %5644 = vmatprep.mubr.bf16.mxu0 %v10901_v9  ;;  %6156 = vmatprep.subr.bf16.mxu1 %v8140_v10  ;;  %v4826_v40 = vld [vmem:[#allocation2 + $0x4f] sm:$0xff] }
 0x2e0   : > { %11000 = vst [vmem:[#allocation65_spill] sm:$0xff] %v9558_v45  ;;  %v9563_v60 = vadd.f32 %v3522_v31, %v3071_v37  ;;  %v3072_v17 = vadd.f32 %v2962_v19, %v9281_v36  ;;  %v8141_v45 = vld [vmem:[#allocation10 + $0x450] ss:$8 sps:$4 sm:$0xff]   ;;  %v11005_v31 = vld [vmem:[#allocation70_spill] sm:$0xff] }
 0x2e1   : > { %v2964_v24 = vpop.f32.mrf.mxu1  ;;  %v3536_v44 = vpop.f32.mrf.mxu0  ;;  %v11006_v19 = vld [vmem:[#allocation19_spill] sm:$0xff] }
 0x2e2   : > { %11002 = vst [vmem:[#allocation66_spill] sm:$0xff] %v9563_v60  ;;  %v9566_v18 = vadd.f32 %v3524_v5, %v3072_v17  ;;  %v3073_v55 = vadd.f32 %v2964_v24, %v11003_v8  ;;  %6157 = vmatpush1.bf16.msra.mxu1 %v8138_v20  ;;  %v8146_v60 = vld [vmem:[#allocation10 + $0x444] ss:$8 sps:$4 sm:$0xff]   ;;  %vm11007_vm7 = vnez %v11006_v19  ;;  %v11009_v20 = vld [vmem:[#allocation71_spill] sm:$0xff] }
 0x2e3   : > { %v2966_v49 = vpop.f32.mrf.mxu1  ;;  %v3538_v11 = vpop.f32.mrf.mxu0  ;;  %6158 = vmatprep.subr.bf16.mxu1 %v8143_v16 }
 0x2e4   : > { %v9569_v10 = vadd.f32 %v3526_v58, %v3073_v55  ;;  %v3074_v37 = vadd.f32 %v2966_v49, %v11005_v31  ;;  %v8149_v49 = vld [vmem:[#allocation10 + $0x434] ss:$8 sps:$4 sm:$0xff]  }
 0x2e5   : > { %v2970_v36 = vpop.f32.mrf.mxu1  ;;  %7535 = vmatmul.mubr.msk.bf16.gmra.mxu1 %vm11007_vm7, %v7534_v34  ;;  %v3542_v5 = vpop.f32.mrf.mxu0  ;;  %5645 = vmatmul.mubr.bf16.gmra.mxu0 %v9317_v42  ;;  %v11010_v31 = vld [vmem:[#allocation72_spill] sm:$0xff] }
 0x2e6   : > { %11004 = vst [vmem:[#allocation67_spill] sm:$0xff] %v9569_v10  ;;  %v9575_v17 = vadd.f32 %v3528_v21, %v3074_v37  ;;  %v3075_v24 = vadd.f32 %v2970_v36, %v11009_v20  ;;  %5114 = vmatprep.mubr.bf16.mxu1 %v10901_v9  ;;  %5654 = vmatprep.mubr.bf16.mxu0 %v10901_v9  ;;  %v4825_v36 = vld [vmem:[#allocation2 + $0x47] sm:$0xff] }
 0x2e7   : > { %v2972_v58 = vpop.f32.mrf.mxu1  ;;  %v3544_v16 = vpop.f32.mrf.mxu0  ;;  %6159 = vmatpush1.bf16.msra.mxu1 %v8141_v45  ;;  %v7538_v20 = vpack.c.bf16 %v4826_v40, %v4825_v36  ;;  %v8147_v45 = vld [vmem:[#allocation10 + $0x430] ss:$8 sps:$4 sm:$0xff]  }
 0x2e8   : > { %11008 = vst [vmem:[#allocation18_spill] sm:$0xff] %v9575_v17  ;;  %v9580_v8 = vadd.f32 %v3532_v25, %v3075_v24  ;;  %v3076_v55 = vadd.f32 %v2972_v58, %v9297_v4  ;;  %6160 = vmatprep.subr.bf16.mxu1 %v8146_v60  ;;  %v11011_v25 = vld [vmem:[#allocation73_spill] sm:$0xff]  ;;  %v11012_v58 = vld [vmem:[#allocation20_spill] sm:$0xff]  ;;  %v4828_v36 = vld [vmem:[#allocation2 + $0x5f] sm:$0xff] }
 0x2e9   : > { %v2974_v42 = vpop.f32.mrf.mxu1  ;;  %v3546_v21 = vpop.f32.mrf.mxu0  ;;  %v8152_v4 = vld [vmem:[#allocation10 + $0x424] ss:$8 sps:$4 sm:$0xff]   ;;  %vm11013_vm7 = vnez %v11012_v58 }
 0x2ea   : > { %v9583_v34 = vadd.f32 %v3534_v53, %v3076_v55  ;;  %v3077_v37 = vadd.f32 %v2974_v42, %v11010_v31  ;;  %v11015_v42 = vld [vmem:[#allocation74_spill] sm:$0xff] }
 0x2eb   : > { %v2976_v19 = vpop.f32.mrf.mxu1  ;;  %v3548_v17 = vpop.f32.mrf.mxu0  ;;  %6161 = vmatpush1.bf16.msra.mxu1 %v8144_v46 }
 0x2ec   : > { %v9586_v10 = vadd.f32 %v3536_v44, %v3077_v37  ;;  %v3078_v24 = vadd.f32 %v2976_v19, %v11011_v25  ;;  %6162 = vmatprep.subr.bf16.mxu1 %v8149_v49  ;;  %v8150_v49 = vld [vmem:[#allocation10 + $0x420] ss:$8 sps:$4 sm:$0xff]   ;;  %v8155_v19 = vld [vmem:[#allocation10 + $0x414] ss:$8 sps:$4 sm:$0xff]  }
 0x2ed   : > { %v2980_v60 = vpop.f32.mrf.mxu1  ;;  %7539 = vmatmul.mubr.msk.bf16.gmra.mxu1 %vm11013_vm7, %v7538_v20  ;;  %v3552_v53 = vpop.f32.mrf.mxu0  ;;  %5655 = vmatmul.mubr.bf16.gmra.mxu0 %v9333_v51 }
 0x2ee   : > { %v9592_v55 = vadd.f32 %v3538_v11, %v3078_v24  ;;  %v3079_v40 = vadd.f32 %v2980_v60, %v11015_v42  ;;  %5124 = vmatprep.mubr.bf16.mxu1 %v10901_v9  ;;  %5664 = vmatprep.mubr.bf16.mxu0 %v10901_v9  ;;  %v4827_v24 = vld [vmem:[#allocation2 + $0x57] sm:$0xff] }
 0x2ef   : > { %v2982_v44 = vpop.f32.mrf.mxu1  ;;  %v3554_v46 = vpop.f32.mrf.mxu0  ;;  %6163 = vmatpush1.bf16.msra.mxu1 %v8147_v45  ;;  %v7542_v58 = vpack.c.bf16 %v4828_v36, %v4827_v24  ;;  %v8153_v45 = vld [vmem:[#allocation10 + $0x410] ss:$8 sps:$4 sm:$0xff]  }
 0x2f0   : > { %11014 = vst [vmem:[#allocation68_spill] sm:$0xff] %v9592_v55  ;;  %v9597_v31 = vadd.f32 %v3542_v5, %v3079_v40  ;;  %v3080_v37 = vadd.f32 %v2982_v44, %v9313_v1  ;;  %6164 = vmatprep.subr.bf16.mxu1 %v8152_v4  ;;  %v8158_v1 = vld [vmem:[#allocation10 + $0x404] ss:$8 sps:$4 sm:$0xff]  }
 0x2f1   : > { %v2984_v51 = vpop.f32.mrf.mxu1  ;;  %v3556_v11 = vpop.f32.mrf.mxu0  ;;  %v11016_v40 = vld [vmem:[#allocation21_spill] sm:$0xff] }
 0x2f2   : > { %v9600_v20 = vadd.f32 %v3544_v16, %v3080_v37  ;;  %v3081_v25 = vadd.f32 %v2984_v51, %v9315_v29  ;;  %vm11017_vm7 = vnez %v11016_v40  ;;  %v11019_v40 = vld [vmem:[#allocation22_spill] sm:$0xff] }
 0x2f3   : > { %v2986_v60 = vpop.f32.mrf.mxu1  ;;  %v3558_v42 = vpop.f32.mrf.mxu0  ;;  %6165 = vmatpush1.bf16.msra.mxu1 %v8150_v49 }
 0x2f4   : > { %v9603_v55 = vadd.f32 %v3546_v21, %v3081_v25  ;;  %v3082_v5 = vadd.f32 %v2986_v60, %v9319_v47  ;;  %6166 = vmatprep.subr.bf16.mxu1 %v8155_v19  ;;  %v8156_v47 = vld [vmem:[#allocation10 + $0x400] ss:$8 sps:$4 sm:$0xff]   ;;  %v4829_v25 = vld [vmem:[#allocation2 + $0x67] sm:$0xff] }
 0x2f5   : > { %v2990_v4 = vpop.f32.mrf.mxu1  ;;  %7543 = vmatmul.mubr.msk.bf16.gmra.mxu1 %vm11017_vm7, %v7542_v58  ;;  %v3562_v16 = vpop.f32.mrf.mxu0  ;;  %5665 = vmatmul.mubr.bf16.gmra.mxu0 %v9349_v13  ;;  %v4830_v19 = vld [vmem:[#allocation2 + $0x6f] sm:$0xff]  ;;  %vm11020_vm7 = vnez %v11019_v40 }
 0x2f6   : > { %v9609_v29 = vadd.f32 %v3548_v17, %v3082_v5  ;;  %v3083_v44 = vadd.f32 %v2990_v4, %v9325_v27  ;;  %5134 = vmatprep.mubr.bf16.mxu1 %v10901_v9  ;;  %5674 = vmatprep.mubr.bf16.mxu0 %v10901_v9  ;;  %v7546_v60 = vpack.c.bf16 %v4830_v19, %v4829_v25  ;;  %v4831_v25 = vld [vmem:[#allocation2 + $0x77] sm:$0xff] }
 0x2f7   : > { %v2992_v21 = vpop.f32.mrf.mxu1  ;;  %v3564_v49 = vpop.f32.mrf.mxu0  ;;  %6167 = vmatpush1.bf16.msra.mxu1 %v8153_v45  ;;  %v11018_v45 = vld [vmem:[#allocation75_spill] sm:$0xff] }
 0x2f8   : > { %v9614_v37 = vadd.f32 %v3552_v53, %v3083_v44  ;;  %v3084_v36 = vadd.f32 %v2992_v21, %v9329_v6  ;;  %6168 = vmatprep.subr.bf16.mxu1 %v8158_v1  ;;  %v11021_v21 = vld [vmem:[#allocation76_spill] sm:$0xff] }
 0x2f9   : > { %v2994_v51 = vpop.f32.mrf.mxu1  ;;  %v3566_v13 = vpop.f32.mrf.mxu0 }
 0x2fa   : > { %v9617_v17 = vadd.f32 %v3554_v46, %v3084_v36  ;;  %v3085_v27 = vadd.f32 %v2994_v51, %v9331_v14  ;;  %v4832_v36 = vld [vmem:[#allocation2 + $0x7f] sm:$0xff] }
 0x2fb   : > { %v2996_v24 = vpop.f32.mrf.mxu1  ;;  %v3568_v58 = vpop.f32.mrf.mxu0  ;;  %6169 = vmatpush1.bf16.msra.mxu1 %v8156_v47 }
 0x2fc   : > { %v9620_v5 = vadd.f32 %v3556_v11, %v3085_v27  ;;  %v3086_v53 = vadd.f32 %v2996_v24, %v11018_v45 }
 0x2fd   : > { %v3000_v4 = vpop.f32.mrf.mxu1  ;;  %7547 = vmatmul.mubr.msk.bf16.gmra.mxu1 %vm11020_vm7, %v7546_v60  ;;  %v3572_v6 = vpop.f32.mrf.mxu0  ;;  %5675 = vmatmul.mubr.bf16.gmra.mxu0 %v9365_v56  ;;  %v11022_v56 = vld [vmem:[#allocation77_spill] sm:$0xff] }
 0x2fe   : > { %v9626_v46 = vadd.f32 %v3558_v42, %v3086_v53  ;;  %v3087_v14 = vadd.f32 %v3000_v4, %v9341_v61  ;;  %5144 = vmatprep.mubr.bf16.mxu1 %v10901_v9  ;;  %5684 = vmatprep.mubr.bf16.mxu0 %v10901_v9  ;;  %v7550_v61 = vpack.c.bf16 %v4832_v36, %v4831_v25  ;;  %v11024_v53 = vld [vmem:[#allocation78_spill] sm:$0xff]  ;;  %v11028_v36 = vld [vmem:[#allocation79_spill] sm:$0xff] }
 0x2ff   : > { %v3002_v1 = vpop.f32.mrf.mxu1  ;;  %v3574_v11 = vpop.f32.mrf.mxu0 }
 0x300   : > { %v9631_v44 = vadd.f32 %v3562_v16, %v3087_v14  ;;  %v3088_v47 = vadd.f32 %v3002_v1, %v11021_v21  ;;  %v11025_v16 = vld [vmem:[#allocation23_spill] sm:$0xff] }
 0x301   : > { %v3004_v19 = vpop.f32.mrf.mxu1  ;;  %v3576_v51 = vpop.f32.mrf.mxu0  ;;  %vm11026_vm7 = vnez %v11025_v16  ;;  %v11031_v16 = vld [vmem:[#allocation81_spill] sm:$0xff] }
 0x302   : > { %v9634_v27 = vadd.f32 %v3564_v49, %v3088_v47  ;;  %v3089_v42 = vadd.f32 %v3004_v19, %v11022_v56  ;;  %v4834_v56 = vld [vmem:[#allocation2 + $0x8f] sm:$0xff] }
 0x303   : > { %v3006_v24 = vpop.f32.mrf.mxu1  ;;  %v3578_v60 = vpop.f32.mrf.mxu0 }
 0x304   : > { %v9637_v45 = vadd.f32 %v3566_v13, %v3089_v42  ;;  %v3090_v4 = vadd.f32 %v3006_v24, %v11024_v53 }
 0x305   : > { %v3010_v40 = vpop.f32.mrf.mxu1  ;;  %7551 = vmatmul.mubr.msk.bf16.gmra.mxu1 %vm11026_vm7, %v7550_v61  ;;  %v3582_v14 = vpop.f32.mrf.mxu0  ;;  %5685 = vmatmul.mubr.bf16.gmra.mxu0 %v9381_v54  ;;  %v11029_v54 = vld [vmem:[#allocation80_spill] sm:$0xff] }
 0x306   : > { %11023 = vst [vmem:[#allocation69_spill] sm:$0xff] %v9637_v45  ;;  %v9643_v1 = vadd.f32 %v3568_v58, %v3090_v4  ;;  %v3091_v49 = vadd.f32 %v3010_v40, %v9357_v59  ;;  %5154 = vmatprep.mubr.bf16.mxu1 %v10901_v9  ;;  %5694 = vmatprep.mubr.bf16.mxu0 %v10901_v9  ;;  %v4833_v61 = vld [vmem:[#allocation2 + $0x87] sm:$0xff] }
 0x307   : > { %v3012_v21 = vpop.f32.mrf.mxu1  ;;  %v3584_v13 = vpop.f32.mrf.mxu0  ;;  %v7554_v59 = vpack.c.bf16 %v4834_v56, %v4833_v61  ;;  %v11035_v56 = vld [vmem:[#allocation82_spill] sm:$0xff] }
 0x308   : > { %11027 = vst [vmem:[#allocation70_spill] sm:$0xff] %v9643_v1  ;;  %v9648_v47 = vadd.f32 %v3572_v6, %v3091_v49  ;;  %v3092_v19 = vadd.f32 %v3012_v21, %v11028_v36  ;;  %v11032_v6 = vld [vmem:[#allocation24_spill] sm:$0xff] }
 0x309   : > { %v3014_v42 = vpop.f32.mrf.mxu1  ;;  %v3586_v25 = vpop.f32.mrf.mxu0  ;;  %vm11033_vm7 = vnez %v11032_v6  ;;  %v11039_v6 = vld [vmem:[#allocation84_spill] sm:$0xff] }
 0x30a   : > { %v9651_v24 = vadd.f32 %v3574_v11, %v3092_v19  ;;  %v3093_v58 = vadd.f32 %v3014_v42, %v11029_v54  ;;  %v4836_v54 = vld [vmem:[#allocation2 + $0x9f] sm:$0xff] }
 0x30b   : > { %v3016_v53 = vpop.f32.mrf.mxu1  ;;  %v3588_v4 = vpop.f32.mrf.mxu0 }
 0x30c   : > { %v9654_v40 = vadd.f32 %v3576_v51, %v3093_v58  ;;  %v3094_v1 = vadd.f32 %v3016_v53, %v11031_v16 }
 0x30d   : > { %v3020_v45 = vpop.f32.mrf.mxu1  ;;  %7555 = vmatmul.mubr.msk.bf16.gmra.mxu1 %vm11033_vm7, %v7554_v59  ;;  %v3592_v49 = vpop.f32.mrf.mxu0  ;;  %5695 = vmatmul.mubr.bf16.gmra.mxu0 %v9397_v33  ;;  %v11037_v33 = vld [vmem:[#allocation83_spill] sm:$0xff] }
 0x30e   : > { %11030 = vst [vmem:[#allocation19_spill] sm:$0xff] %v9654_v40  ;;  %v9660_v21 = vadd.f32 %v3578_v60, %v3094_v1  ;;  %v3095_v11 = vadd.f32 %v3020_v45, %v9373_v23  ;;  %5164 = vmatprep.mubr.bf16.mxu1 %v10901_v9  ;;  %5704 = vmatprep.mubr.bf16.mxu0 %v10901_v9  ;;  %v4835_v1 = vld [vmem:[#allocation2 + $0x97] sm:$0xff] }
 0x30f   : > { %v3022_v36 = vpop.f32.mrf.mxu1  ;;  %v3594_v51 = vpop.f32.mrf.mxu0  ;;  %v7558_v23 = vpack.c.bf16 %v4836_v54, %v4835_v1 }
 0x310   : > { %11034 = vst [vmem:[#allocation71_spill] sm:$0xff] %v9660_v21  ;;  %v9665_v19 = vadd.f32 %v3582_v14, %v3095_v11  ;;  %v3096_v42 = vadd.f32 %v3022_v36, %v11035_v56  ;;  %v11040_v14 = vld [vmem:[#allocation25_spill] sm:$0xff] }
 0x311   : > { %v3024_v58 = vpop.f32.mrf.mxu1  ;;  %v3596_v61 = vpop.f32.mrf.mxu0  ;;  %vm11041_vm7 = vnez %v11040_v14 }
 0x312   : > { %v9668_v53 = vadd.f32 %v3584_v13, %v3096_v42  ;;  %v3097_v60 = vadd.f32 %v3024_v58, %v11037_v33  ;;  %v11043_v13 = vld [vmem:[#allocation85_spill] sm:$0xff]  ;;  %v11044_v58 = vld [vmem:[#allocation86_spill] sm:$0xff] }
 0x313   : > { %v3026_v59 = vpop.f32.mrf.mxu1  ;;  %v3598_v45 = vpop.f32.mrf.mxu0 }
 0x314   : > { %11036 = vst [vmem:[#allocation72_spill] sm:$0xff] %v9668_v53  ;;  %v9671_v16 = vadd.f32 %v3586_v25, %v3097_v60  ;;  %v3098_v21 = vadd.f32 %v3026_v59, %v11039_v6  ;;  %v4838_v60 = vld [vmem:[#allocation2 + $0xaf] sm:$0xff] }
 0x315   : > { %v3030_v40 = vpop.f32.mrf.mxu1  ;;  %7559 = vmatmul.mubr.msk.bf16.gmra.mxu1 %vm11041_vm7, %v7558_v23  ;;  %v4534_v11 = vpop.f32.mrf.mxu0  ;;  %5705 = vmatmul.mubr.bf16.gmra.mxu0 %v9416_v38  ;;  %v11045_v38 = vld [vmem:[#allocation87_spill] sm:$0xff] }
 0x316   : > { %11038 = vst [vmem:[#allocation73_spill] sm:$0xff] %v9671_v16  ;;  %v9677_v36 = vadd.f32 %v3588_v4, %v3098_v21  ;;  %v3099_v56 = vadd.f32 %v3030_v40, %v11043_v13  ;;  %5174 = vmatprep.mubr.bf16.mxu1 %v10901_v9  ;;  %5714 = vmatprep.mubr.bf16.mxu0 %v10901_v9  ;;  %v4837_v21 = vld [vmem:[#allocation2 + $0xa7] sm:$0xff] }
 0x317   : > { %v3032_v42 = vpop.f32.mrf.mxu1  ;;  %v4536_v25 = vpop.f32.mrf.mxu0  ;;  %v7562_v40 = vpack.c.bf16 %v4838_v60, %v4837_v21  ;;  %v4840_v60 = vld [vmem:[#allocation2 + $0xbf] sm:$0xff] }
 0x318   : > { %11042 = vst [vmem:[#allocation20_spill] sm:$0xff] %v9677_v36  ;;  %v9682_v54 = vadd.f32 %v3592_v49, %v3099_v56  ;;  %v3100_v33 = vadd.f32 %v3032_v42, %v11044_v58  ;;  %v11046_v36 = vld [vmem:[#allocation88_spill] sm:$0xff]  ;;  %v11047_v49 = vld [vmem:[#allocation26_spill] sm:$0xff] }
 0x319   : > { %v3034_v1 = vpop.f32.mrf.mxu1  ;;  %v4538_v59 = vpop.f32.mrf.mxu0  ;;  %vm11048_vm7 = vnez %v11047_v49 }
 0x31a   : > { %v9685_v23 = vadd.f32 %v3594_v51, %v3100_v33  ;;  %v3101_v4 = vadd.f32 %v3034_v1, %v11045_v38 }
 0x31b   : > { %v3036_v6 = vpop.f32.mrf.mxu1  ;;  %v4540_v14 = vpop.f32.mrf.mxu0 }
 0x31c   : > { %v9688_v13 = vadd.f32 %v3596_v61, %v3101_v4  ;;  %v3102_v16 = vadd.f32 %v3036_v6, %v11046_v36 }
 0x31d   : > { %v3972_v53 = vpop.f32.mrf.mxu1  ;;  %7563 = vmatmul.mubr.msk.bf16.gmra.mxu1 %vm11048_vm7, %v7562_v40  ;;  %v4544_v56 = vpop.f32.mrf.mxu0  ;;  %5715 = vmatmul.mubr.bf16.gmra.mxu0 %v9435_v41 }
 0x31e   : > { %v9694_v42 = vadd.f32 %v3598_v45, %v3102_v16  ;;  %v4131_v51 = vadd.f32 %v3972_v53, %v9408_v30  ;;  %5184 = vmatprep.mubr.bf16.mxu1 %v10901_v9  ;;  %5724 = vmatprep.mubr.bf16.mxu0 %v10901_v9  ;;  %v4839_v45 = vld [vmem:[#allocation2 + $0xb7] sm:$0xff] }
 0x31f   : > { %v3974_v58 = vpop.f32.mrf.mxu1  ;;  %v4546_v61 = vpop.f32.mrf.mxu0  ;;  %v7566_v30 = vpack.c.bf16 %v4840_v60, %v4839_v45 }
 0x320   : > { %v9699_v33 = vadd.f32 %v4534_v11, %v4131_v51  ;;  %v4132_v36 = vadd.f32 %v3974_v58, %v9413_v32  ;;  %v11049_v11 = vld [vmem:[#allocation27_spill] sm:$0xff]  ;;  %v4842_v58 = vld [vmem:[#allocation2 + $0xcf] sm:$0xff] }
 0x321   : > { %v3976_v1 = vpop.f32.mrf.mxu1  ;;  %v4548_v38 = vpop.f32.mrf.mxu0  ;;  %vm11050_vm7 = vnez %v11049_v11 }
 0x322   : > { %v9702_v4 = vadd.f32 %v4536_v25, %v4132_v36  ;;  %v4133_v41 = vadd.f32 %v3976_v1, %v9418_v50 }
 0x323   : > { %v3978_v16 = vpop.f32.mrf.mxu1  ;;  %v4550_v53 = vpop.f32.mrf.mxu0 }
 0x324   : > { %v9705_v21 = vadd.f32 %v4538_v59, %v4133_v41  ;;  %v4134_v6 = vadd.f32 %v3978_v16, %v9424_v3 }
 0x325   : > { %v3982_v40 = vpop.f32.mrf.mxu1  ;;  %7567 = vmatmul.mubr.msk.bf16.gmra.mxu1 %vm11050_vm7, %v7566_v30  ;;  %v4554_v32 = vpop.f32.mrf.mxu0  ;;  %5725 = vmatmul.mubr.bf16.gmra.mxu0 %v9455_v43 }
 0x326   : > { %v9711_v49 = vadd.f32 %v4540_v14, %v4134_v6  ;;  %v4135_v25 = vadd.f32 %v3982_v40, %v9429_v52  ;;  %5194 = vmatprep.mubr.bf16.mxu1 %v10901_v9  ;;  %5734 = vmatprep.mubr.bf16.mxu0 %v10901_v9  ;;  %v4841_v14 = vld [vmem:[#allocation2 + $0xc7] sm:$0xff] }
 0x327   : > { %v3984_v50 = vpop.f32.mrf.mxu1  ;;  %v4556_v59 = vpop.f32.mrf.mxu0  ;;  %v7570_v52 = vpack.c.bf16 %v4842_v58, %v4841_v14 }
 0x328   : > { %v9716_v51 = vadd.f32 %v4544_v56, %v4135_v25  ;;  %v4136_v3 = vadd.f32 %v3984_v50, %v9432_v57  ;;  %v11051_v56 = vld [vmem:[#allocation28_spill] sm:$0xff]  ;;  %v4844_v25 = vld [vmem:[#allocation2 + $0xdf] sm:$0xff] }
 0x329   : > { %v3986_v36 = vpop.f32.mrf.mxu1  ;;  %v4558_v60 = vpop.f32.mrf.mxu0  ;;  %vm11052_vm7 = vnez %v11051_v56 }
 0x32a   : > { %v9719_v1 = vadd.f32 %v4546_v61, %v4136_v3  ;;  %v4137_v43 = vadd.f32 %v3986_v36, %v9437_v0 }
 0x32b   : > { %v3988_v41 = vpop.f32.mrf.mxu1  ;;  %v4560_v45 = vpop.f32.mrf.mxu0 }
 0x32c   : > { %v9722_v16 = vadd.f32 %v4548_v38, %v4137_v43  ;;  %v4138_v30 = vadd.f32 %v3988_v41, %v9444_v26 }
 0x32d   : > { %v3992_v6 = vpop.f32.mrf.mxu1  ;;  %7571 = vmatmul.mubr.msk.bf16.gmra.mxu1 %vm11052_vm7, %v7570_v52  ;;  %v4564_v57 = vpop.f32.mrf.mxu0  ;;  %5735 = vmatmul.mubr.bf16.gmra.mxu0 %v9475_v12 }
 0x32e   : > { %v9728_v40 = vadd.f32 %v4550_v53, %v4138_v30  ;;  %v4139_v61 = vadd.f32 %v3992_v6, %v9449_v63  ;;  %5204 = vmatprep.mubr.bf16.mxu1 %v10901_v9  ;;  %5744 = vmatprep.mubr.bf16.mxu0 %v10901_v9  ;;  %v4843_v53 = vld [vmem:[#allocation2 + $0xd7] sm:$0xff] }
 0x32f   : > { %v3994_v0 = vpop.f32.mrf.mxu1  ;;  %v4566_v38 = vpop.f32.mrf.mxu0  ;;  %v7574_v63 = vpack.c.bf16 %v4844_v25, %v4843_v53 }
 0x330   : > { %v9733_v11 = vadd.f32 %v4554_v32, %v4139_v61  ;;  %v4140_v26 = vadd.f32 %v3994_v0, %v9452_v28  ;;  %v11053_v32 = vld [vmem:[#allocation29_spill] sm:$0xff] }
 0x331   : > { %v3996_v50 = vpop.f32.mrf.mxu1  ;;  %v4568_v3 = vpop.f32.mrf.mxu0  ;;  %vm11054_vm7 = vnez %v11053_v32  ;;  %v4846_v61 = vld [vmem:[#allocation2 + $0xef] sm:$0xff] }
 0x332   : > { %v9736_v58 = vadd.f32 %v4556_v59, %v4140_v26  ;;  %v4141_v12 = vadd.f32 %v3996_v50, %v9457_v39  ;;  %v4845_v50 = vld [vmem:[#allocation2 + $0xe7] sm:$0xff] }
 0x333   : > { %v3998_v36 = vpop.f32.mrf.mxu1  ;;  %v4570_v43 = vpop.f32.mrf.mxu0 }
 0x334   : > { %v9739_v14 = vadd.f32 %v4558_v60, %v4141_v12  ;;  %v4142_v41 = vadd.f32 %v3998_v36, %v9464_v48  ;;  %v11055_v48 = vld [vmem:[#allocation89_spill] sm:$0xff] }
 0x335   : > { %v4002_v52 = vpop.f32.mrf.mxu1  ;;  %7575 = vmatmul.mubr.msk.bf16.gmra.mxu1 %vm11054_vm7, %v7574_v63  ;;  %v4574_v28 = vpop.f32.mrf.mxu0  ;;  %5745 = vmatmul.mubr.bf16.gmra.mxu0 %v9495_v2  ;;  %v11056_v2 = vld [vmem:[#allocation46_spill] sm:$0xff]  ;;  %v11058_v63 = vld [vmem:[#allocation48_spill] sm:$0xff] }
 0x336   : > { %v9745_v30 = vadd.f32 %v4560_v45, %v4142_v41  ;;  %v4143_v59 = vadd.f32 %v4002_v52, %v9469_v15  ;;  %5214 = vmatprep.mubr.bf16.mxu1 %v10901_v9  ;;  %5754 = vmatprep.mubr.bf16.mxu0 %v10901_v9  ;;  %v7578_v15 = vpack.c.bf16 %v4846_v61, %v4845_v50  ;;  %v11063_v61 = vld [vmem:[#allocation50_spill] sm:$0xff] }
 0x337   : > { %v4004_v39 = vpop.f32.mrf.mxu1  ;;  %v4576_v60 = vpop.f32.mrf.mxu0 }
 0x338   : > { %v9750_v6 = vadd.f32 %v4564_v57, %v4143_v59  ;;  %v4144_v56 = vadd.f32 %v4004_v39, %v11055_v48  ;;  %v11059_v57 = vld [vmem:[#allocation30_spill] sm:$0xff] }
 0x339   : > { %v4006_v0 = vpop.f32.mrf.mxu1  ;;  %v4578_v26 = vpop.f32.mrf.mxu0  ;;  %vm11060_vm7 = vnez %v11059_v57 }
 0x33a   : > { %v9753_v25 = vadd.f32 %v4566_v38, %v4144_v56  ;;  %v4145_v45 = vadd.f32 %v4006_v0, %v11056_v2  ;;  %v11062_v38 = vld [vmem:[#allocation49_spill] sm:$0xff]  ;;  %v4848_v2 = vld [vmem:[#allocation2 + $0xff] sm:$0xff] }
 0x33b   : > { %v4008_v12 = vpop.f32.mrf.mxu1  ;;  %v4580_v53 = vpop.f32.mrf.mxu0 }
 0x33c   : > { %v9756_v36 = vadd.f32 %v4568_v3, %v4145_v45  ;;  %v4146_v41 = vadd.f32 %v4008_v12, %v11058_v63 }
 0x33d   : > { %v4012_v52 = vpop.f32.mrf.mxu1  ;;  %7579 = vmatmul.mubr.msk.bf16.gmra.mxu1 %vm11060_vm7, %v7578_v15  ;;  %v4584_v32 = vpop.f32.mrf.mxu0  ;;  %5755 = vmatmul.mubr.bf16.gmra.mxu0 %v9515_v7  ;;  %v11065_v7 = vld [vmem:[#allocation51_spill] sm:$0xff]  ;;  %v4847_v15 = vld [vmem:[#allocation2 + $0xf7] sm:$0xff] }
 0x33e   : > { %11057 = vst [vmem:[#allocation74_spill] sm:$0xff] %v9756_v36  ;;  %v9762_v59 = vadd.f32 %v4570_v43, %v4146_v41  ;;  %v4147_v39 = vadd.f32 %v4012_v52, %v11062_v38  ;;  %5224 = vmatprep.mubr.bf16.mxu1 %v10901_v9  ;;  %5764 = vmatprep.mubr.bf16.mxu0 %v10901_v9  ;;  %v11067_v38 = vld [vmem:[#allocation53_spill] sm:$0xff] }
 0x33f   : > { %v4014_v48 = vpop.f32.mrf.mxu1  ;;  %v4586_v3 = vpop.f32.mrf.mxu0  ;;  %v7582_v41 = vpack.c.bf16 %v4848_v2, %v4847_v15 }
 0x340   : > { %11061 = vst [vmem:[#allocation21_spill] sm:$0xff] %v9762_v59  ;;  %v9767_v56 = vadd.f32 %v4574_v28, %v4147_v39  ;;  %v4148_v0 = vadd.f32 %v4014_v48, %v11063_v61  ;;  %v11068_v28 = vld [vmem:[#allocation31_spill] sm:$0xff] }
 0x341   : > { %v4016_v45 = vpop.f32.mrf.mxu1  ;;  %v4588_v50 = vpop.f32.mrf.mxu0  ;;  %vm11069_vm7 = vnez %v11068_v28 }
 0x342   : > { %v9770_v12 = vadd.f32 %v4576_v60, %v4148_v0  ;;  %v4149_v43 = vadd.f32 %v4016_v45, %v11065_v7  ;;  %v11071_v60 = vld [vmem:[#allocation63_spill] sm:$0xff]  ;;  %v11073_v45 = vld [vmem:[#allocation54_spill] sm:$0xff] }
 0x343   : > { %v4018_v63 = vpop.f32.mrf.mxu1  ;;  %v4590_v52 = vpop.f32.mrf.mxu0 }
 0x344   : > { %11064 = vst [vmem:[#allocation75_spill] sm:$0xff] %v9770_v12  ;;  %v9773_v57 = vadd.f32 %v4578_v26, %v4149_v43  ;;  %v4150_v59 = vadd.f32 %v4018_v63, %v11067_v38  ;;  %v4850_v43 = vld [vmem:[#allocation2 + $0x10f] sm:$0xff] }
 0x345   : > { %v4022_v36 = vpop.f32.mrf.mxu1  ;;  %7583 = vmatmul.mubr.msk.bf16.gmra.mxu1 %vm11069_vm7, %v7582_v41  ;;  %v4594_v39 = vpop.f32.mrf.mxu0  ;;  %5765 = vmatmul.mubr.bf16.gmra.mxu0 %v9534_v35  ;;  %v8159_v41 = vld [vmem:[#allocation2] sm:$0xff]  ;;  %v11077_v12 = vld [vmem:[#allocation56_spill] sm:$0xff] }
 0x346   : > { %11066 = vst [vmem:[#allocation22_spill] sm:$0xff] %v9773_v57  ;;  %v9779_v48 = vadd.f32 %v4580_v53, %v4150_v59  ;;  %v4151_v61 = vadd.f32 %v4022_v36, %v11071_v60  ;;  %5234 = vmatprep.mubr.bf16.mxu1 %v10901_v9  ;;  %5774 = vmatprep.mubr.bf16.mxu0 %v10901_v9  ;;  %v11075_v53 = vld [vmem:[#allocation55_spill] sm:$0xff] }
 0x347   : > { %v4024_v0 = vpop.f32.mrf.mxu1  ;;  %v4596_v26 = vpop.f32.mrf.mxu0  ;;  %v5494_v38 = vpack.c.bf16 %v8159_v41, %v8159_v41  ;;  %v4849_v36 = vld [vmem:[#allocation2 + $0x107] sm:$0xff] }
 0x348   : > { %11070 = vst [vmem:[#allocation76_spill] sm:$0xff] %v9779_v48  ;;  %v9784_v2 = vadd.f32 %v4584_v32, %v4151_v61  ;;  %v4152_v7 = vadd.f32 %v4024_v0, %v11073_v45  ;;  %v7586_v60 = vpack.c.bf16 %v4850_v43, %v4849_v36 }
 0x349   : > { %v4026_v15 = vpop.f32.mrf.mxu1  ;;  %v4598_v63 = vpop.f32.mrf.mxu0 }
 0x34a   : > { %11072 = vst [vmem:[#allocation77_spill] sm:$0xff] %v9784_v2  ;;  %v9787_v35 = vadd.f32 %v4586_v3, %v4152_v7  ;;  %v4153_v59 = vadd.f32 %v4026_v15, %v11075_v53  ;;  %v11078_v2 = vld [vmem:[#allocation32_spill] sm:$0xff]  ;;  %v11081_v3 = vld [vmem:[#allocation58_spill] sm:$0xff] }
 0x34b   : > { %v4028_v28 = vpop.f32.mrf.mxu1  ;;  %v4600_v48 = vpop.f32.mrf.mxu0  ;;  %vm11079_vm7 = vnez %v11078_v2 }
 0x34c   : > { %11074 = vst [vmem:[#allocation78_spill] sm:$0xff] %v9787_v35  ;;  %v9790_v57 = vadd.f32 %v4588_v50, %v4153_v59  ;;  %v4154_v32 = vadd.f32 %v4028_v28, %v11077_v12  ;;  %v11083_v50 = vld [vmem:[#allocation59_spill] sm:$0xff]  ;;  %v4851_v59 = vld [vmem:[#allocation2 + $0x117] sm:$0xff] }
 0x34d   : > { %v4032_v61 = vpop.f32.mrf.mxu1  ;;  %7587 = vmatmul.mubr.msk.bf16.gmra.mxu1 %vm11079_vm7, %v7586_v60  ;;  %v4604_v0 = vpop.f32.mrf.mxu0  ;;  %5775 = vmatmul.mubr.bf16.gmra.mxu0 %v5494_v38  ;;  %v4852_v12 = vld [vmem:[#allocation2 + $0x11f] sm:$0xff]  ;;  %v11084_v60 = vld [vmem:[#allocation60_spill] sm:$0xff] }
 0x34e   : > { %11076 = vst [vmem:[#allocation23_spill] sm:$0xff] %v9790_v57  ;;  %v9795_v45 = vadd.f32 %v4590_v52, %v4154_v32  ;;  %v4155_v7 = vadd.f32 %v4032_v61, %v11081_v3  ;;  %5244 = vmatprep.mubr.bf16.mxu1 %v10901_v9  ;;  %v7590_v32 = vpack.c.bf16 %v4852_v12, %v4851_v59  ;;  %v11085_v3 = vld [vmem:[#allocation61_spill] sm:$0xff] }
 0x34f   : > { %v4034_v15 = vpop.f32.mrf.mxu1  ;;  %v4606_v41 = vpop.f32.mrf.mxu0  ;;  %v5914_v59 = vld [vmem:[#allocation2 + $0x31] sm:$0xff] }
 0x350   : > { %11080 = vst [vmem:[#allocation79_spill] sm:$0xff] %v9795_v45  ;;  %v9799_v43 = vadd.f32 %v4594_v39, %v4155_v7  ;;  %v4156_v53 = vadd.f32 %v4034_v15, %v11083_v50  ;;  %v11088_v50 = vld [vmem:[#allocation64_spill] sm:$0xff]  ;;  %v11091_v39 = vld [vmem:[#allocation65_spill] sm:$0xff] }
 0x351   : > { %v4036_v36 = vpop.f32.mrf.mxu1  ;;  %v4608_v28 = vpop.f32.mrf.mxu0 }
 0x352   : > { %11082 = vst [vmem:[#allocation80_spill] sm:$0xff] %v9799_v43  ;;  %v9802_v2 = vadd.f32 %v4596_v26, %v4156_v53  ;;  %v4157_v38 = vadd.f32 %v4036_v36, %v11084_v60 }
 0x353   : > { %v4038_v52 = vpop.f32.mrf.mxu1  ;;  %v4610_v45 = vpop.f32.mrf.mxu0 }
 0x354   : > { %v9805_v61 = vadd.f32 %v4598_v63, %v4157_v38  ;;  %v4158_v57 = vadd.f32 %v4038_v52, %v11085_v3 }
 0x355   : > { %v4042_v35 = vpop.f32.mrf.mxu1  ;;  %7591 = vmatmul.mubr.msk.bf16.gmra.mxu1 %vm8951_vm4, %v7590_v32  ;;  %v4614_v7 = vpop.f32.mrf.mxu0  ;;  %v5913_v32 = vld [vmem:[#allocation2 + $0x29] sm:$0xff] }
 0x356   : > { %v9810_v15 = vadd.f32 %v4600_v48, %v4158_v57  ;;  %v4159_v43 = vadd.f32 %v4042_v35, %v11088_v50  ;;  %6186 = vmatprep.mubr.bf16.mxu1 %v10901_v9  ;;  %v7626_v48 = vpack.c.bf16 %v5914_v59, %v5913_v32  ;;  %v5916_v59 = vld [vmem:[#allocation2 + $0x41] sm:$0xff] }
 0x357   : > { %v4044_v26 = vpop.f32.mrf.mxu1  ;;  %v4616_v53 = vpop.f32.mrf.mxu0 }
 0x358   : > { %11087 = vst [vmem:[#allocation81_spill] sm:$0xff] %v9810_v15  ;;  %v9814_v36 = vadd.f32 %v4604_v0, %v4159_v43  ;;  %v4160_v63 = vadd.f32 %v4044_v26, %v9549_v62  ;;  %v11094_v26 = vld [vmem:[#allocation66_spill] sm:$0xff] }
 0x359   : > { %v4046_v12 = vpop.f32.mrf.mxu1  ;;  %v4618_v60 = vpop.f32.mrf.mxu0  ;;  %v5915_v0 = vld [vmem:[#allocation2 + $0x39] sm:$0xff] }
 0x35a   : > { %v9817_v38 = vadd.f32 %v4606_v41, %v4160_v63  ;;  %v4161_v52 = vadd.f32 %v4046_v12, %v9552_v22 }
 0x35b   : > { %v4048_v57 = vpop.f32.mrf.mxu1  ;;  %v4620_v3 = vpop.f32.mrf.mxu0 }
 0x35c   : > { %11089 = vst [vmem:[#allocation24_spill] sm:$0xff] %v9817_v38  ;;  %v9820_v35 = vadd.f32 %v4608_v28, %v4161_v52  ;;  %v4162_v50 = vadd.f32 %v4048_v57, %v11091_v39  ;;  %v11095_v39 = vld [vmem:[#allocation67_spill] sm:$0xff] }
 0x35d   : > { %v4052_v15 = vpop.f32.mrf.mxu1  ;;  %7627 = vmatmul.mubr.msk.bf16.vlgmr.msra.gmra.mxu1 %vm8966_vm14, %v7626_v48  ;;  %v4624_v62 = vpop.f32.mrf.mxu0 }
 0x35e   : > { %11090 = vst [vmem:[#allocation82_spill] sm:$0xff] %v9820_v35  ;;  %v9825_v43 = vadd.f32 %v4610_v45, %v4162_v50  ;;  %v4163_v41 = vadd.f32 %v4052_v15, %v11094_v26  ;;  %6196 = vmatprep.mubr.bf16.mxu1 %v10901_v9  ;;  %v7630_v50 = vpack.c.bf16 %v5916_v59, %v5915_v0  ;;  %v11096_v26 = vld [vmem:[#allocation18_spill] sm:$0xff]  ;;  %v5918_v59 = vld [vmem:[#allocation2 + $0x51] sm:$0xff] }
 0x35f   : > { %v4054_v22 = vpop.f32.mrf.mxu1  ;;  %v4626_v63 = vpop.f32.mrf.mxu0 }
 0x360   : > { %11093 = vst [vmem:[#allocation83_spill] sm:$0xff] %v9825_v43  ;;  %v9829_v12 = vadd.f32 %v4614_v7, %v4163_v41  ;;  %v4164_v28 = vadd.f32 %v4054_v22, %v9566_v18 }
 0x361   : > { %v4056_v52 = vpop.f32.mrf.mxu1  ;;  %v4628_v32 = vpop.f32.mrf.mxu0 }
 0x362   : > { %v9832_v57 = vadd.f32 %v4616_v53, %v4164_v28  ;;  %v4165_v48 = vadd.f32 %v4056_v52, %v11095_v39 }
 0x363   : > { %v4058_v45 = vpop.f32.mrf.mxu1  ;;  %v4630_v43 = vpop.f32.mrf.mxu0 }
 0x364   : > { %v9835_v15 = vadd.f32 %v4618_v60, %v4165_v48  ;;  %v4166_v35 = vadd.f32 %v4058_v45, %v11096_v26 }
 0x365   : > { %v4062_v38 = vpop.f32.mrf.mxu1  ;;  %7631 = vmatmul.mubr.msk.bf16.gmra.mxu1 %vm8978_vm2, %v7630_v50  ;;  %v4634_v18 = vpop.f32.mrf.mxu0  ;;  %v5917_v50 = vld [vmem:[#allocation2 + $0x49] sm:$0xff] }
 0x366   : > { %v9840_v41 = vadd.f32 %v4620_v3, %v4166_v35  ;;  %v4167_v53 = vadd.f32 %v4062_v38, %v9580_v8  ;;  %6206 = vmatprep.mubr.bf16.mxu1 %v10901_v9  ;;  %v7634_v35 = vpack.c.bf16 %v5918_v59, %v5917_v50  ;;  %v11099_v38 = vld [vmem:[#allocation68_spill] sm:$0xff]  ;;  %v5920_v59 = vld [vmem:[#allocation2 + $0x61] sm:$0xff] }
 0x367   : > { %v4064_v22 = vpop.f32.mrf.mxu1  ;;  %v4636_v28 = vpop.f32.mrf.mxu0 }
 0x368   : > { %11098 = vst [vmem:[#allocation84_spill] sm:$0xff] %v9840_v41  ;;  %v9844_v52 = vadd.f32 %v4624_v62, %v4167_v53  ;;  %v4168_v60 = vadd.f32 %v4064_v22, %v9583_v34 }
 0x369   : > { %v4066_v39 = vpop.f32.mrf.mxu1  ;;  %v4638_v48 = vpop.f32.mrf.mxu0 }
 0x36a   : > { %v9847_v0 = vadd.f32 %v4626_v63, %v4168_v60  ;;  %v4169_v45 = vadd.f32 %v4066_v39, %v9586_v10 }
 0x36b   : > { %v4068_v3 = vpop.f32.mrf.mxu1  ;;  %v4640_v26 = vpop.f32.mrf.mxu0 }
 0x36c   : > { %v9850_v8 = vadd.f32 %v4628_v32, %v4169_v45  ;;  %v4170_v7 = vadd.f32 %v4068_v3, %v11099_v38 }
 0x36d   : > { %v4072_v41 = vpop.f32.mrf.mxu1  ;;  %7635 = vmatmul.mubr.msk.bf16.gmra.mxu1 %vm8994_vm12, %v7634_v35  ;;  %v4644_v34 = vpop.f32.mrf.mxu0  ;;  %v5919_v35 = vld [vmem:[#allocation2 + $0x59] sm:$0xff] }
 0x36e   : > { %v9855_v53 = vadd.f32 %v4630_v43, %v4170_v7  ;;  %v4171_v63 = vadd.f32 %v4072_v41, %v9597_v31  ;;  %6216 = vmatprep.mubr.bf16.mxu1 %v10901_v9  ;;  %v7638_v38 = vpack.c.bf16 %v5920_v59, %v5919_v35  ;;  %v5922_v59 = vld [vmem:[#allocation2 + $0x71] sm:$0xff] }
 0x36f   : > { %v4074_v10 = vpop.f32.mrf.mxu1  ;;  %v4646_v22 = vpop.f32.mrf.mxu0 }
 0x370   : > { %v9859_v60 = vadd.f32 %v4634_v18, %v4171_v63  ;;  %v4172_v32 = vadd.f32 %v4074_v10, %v9600_v20 }
 0x371   : > { %v4076_v39 = vpop.f32.mrf.mxu1  ;;  %v4648_v45 = vpop.f32.mrf.mxu0 }
 0x372   : > { %v9862_v50 = vadd.f32 %v4636_v28, %v4172_v32  ;;  %v4173_v3 = vadd.f32 %v4076_v39, %v9603_v55 }
 0x373   : > { %v4078_v43 = vpop.f32.mrf.mxu1  ;;  %v4650_v7 = vpop.f32.mrf.mxu0 }
 0x374   : > { %v9865_v31 = vadd.f32 %v4638_v48, %v4173_v3  ;;  %v4174_v41 = vadd.f32 %v4078_v43, %v9609_v29  ;;  %v5921_v43 = vld [vmem:[#allocation2 + $0x69] sm:$0xff] }
 0x375   : > { %v4082_v62 = vpop.f32.mrf.mxu1  ;;  %7639 = vmatmul.mubr.msk.bf16.gmra.mxu1 %vm9010_vm0, %v7638_v38  ;;  %v4654_v20 = vpop.f32.mrf.mxu0  ;;  %v7642_v38 = vpack.c.bf16 %v5922_v59, %v5921_v43  ;;  %v5924_v59 = vld [vmem:[#allocation2 + $0x81] sm:$0xff]  ;;  %v11105_v43 = vld [vmem:[#allocation69_spill] sm:$0xff] }
 0x376   : > { %v9870_v63 = vadd.f32 %v4640_v26, %v4174_v41  ;;  %v4175_v28 = vadd.f32 %v4082_v62, %v9614_v37  ;;  %6226 = vmatprep.mubr.bf16.mxu1 %v10901_v9 }
 0x377   : > { %v4084_v55 = vpop.f32.mrf.mxu1  ;;  %v4656_v10 = vpop.f32.mrf.mxu0 }
 0x378   : > { %v9874_v32 = vadd.f32 %v4644_v34, %v4175_v28  ;;  %v4176_v48 = vadd.f32 %v4084_v55, %v9617_v17 }
 0x379   : > { %v4086_v39 = vpop.f32.mrf.mxu1  ;;  %v4658_v29 = vpop.f32.mrf.mxu0 }
 0x37a   : > { %v9877_v3 = vadd.f32 %v4646_v22, %v4176_v48  ;;  %v4177_v35 = vadd.f32 %v4086_v39, %v9620_v5 }
 0x37b   : > { %v4088_v26 = vpop.f32.mrf.mxu1  ;;  %v4660_v41 = vpop.f32.mrf.mxu0 }
 0x37c   : > { %v9880_v37 = vadd.f32 %v4648_v45, %v4177_v35  ;;  %v4178_v62 = vadd.f32 %v4088_v26, %v9626_v46 }
 0x37d   : > { %v4092_v18 = vpop.f32.mrf.mxu1  ;;  %7643 = vmatmul.mubr.msk.bf16.gmra.mxu1 %vm9026_vm8, %v7642_v38  ;;  %v4664_v17 = vpop.f32.mrf.mxu0  ;;  %v5923_v38 = vld [vmem:[#allocation2 + $0x79] sm:$0xff] }
 0x37e   : > { %11102 = vst [vmem:[#allocation25_spill] sm:$0xff] %v9880_v37  ;;  %v9885_v28 = vadd.f32 %v4650_v7, %v4178_v62  ;;  %v4179_v22 = vadd.f32 %v4092_v18, %v9631_v44  ;;  %6236 = vmatprep.mubr.bf16.mxu1 %v10901_v9  ;;  %v7646_v62 = vpack.c.bf16 %v5924_v59, %v5923_v38  ;;  %v11107_v18 = vld [vmem:[#allocation70_spill] sm:$0xff]  ;;  %v5926_v59 = vld [vmem:[#allocation2 + $0x91] sm:$0xff] }
 0x37f   : > { %v4094_v5 = vpop.f32.mrf.mxu1  ;;  %v4666_v55 = vpop.f32.mrf.mxu0 }
 0x380   : > { %11104 = vst [vmem:[#allocation85_spill] sm:$0xff] %v9885_v28  ;;  %v9889_v48 = vadd.f32 %v4654_v20, %v4179_v22  ;;  %v4180_v45 = vadd.f32 %v4094_v5, %v9634_v27 }
 0x381   : > { %v4096_v39 = vpop.f32.mrf.mxu1  ;;  %v4668_v46 = vpop.f32.mrf.mxu0 }
 0x382   : > { %v9892_v35 = vadd.f32 %v4656_v10, %v4180_v45  ;;  %v4181_v26 = vadd.f32 %v4096_v39, %v11105_v43 }
 0x383   : > { %v4098_v7 = vpop.f32.mrf.mxu1  ;;  %v4670_v34 = vpop.f32.mrf.mxu0 }
 0x384   : > { %v9895_v44 = vadd.f32 %v4658_v29, %v4181_v26  ;;  %v4182_v28 = vadd.f32 %v4098_v7, %v11107_v18  ;;  %v11110_v7 = vld [vmem:[#allocation19_spill] sm:$0xff] }
 0x385   : > { %v4102_v37 = vpop.f32.mrf.mxu1  ;;  %7647 = vmatmul.mubr.msk.bf16.gmra.mxu1 %vm9042_vm6, %v7646_v62  ;;  %v4674_v27 = vpop.f32.mrf.mxu0  ;;  %v5925_v18 = vld [vmem:[#allocation2 + $0x89] sm:$0xff] }
 0x386   : > { %11106 = vst [vmem:[#allocation86_spill] sm:$0xff] %v9895_v44  ;;  %v9900_v22 = vadd.f32 %v4660_v41, %v4182_v28  ;;  %v4183_v10 = vadd.f32 %v4102_v37, %v9648_v47  ;;  %6246 = vmatprep.mubr.bf16.mxu1 %v10901_v9  ;;  %v7650_v28 = vpack.c.bf16 %v5926_v59, %v5925_v18  ;;  %v11112_v37 = vld [vmem:[#allocation71_spill] sm:$0xff]  ;;  %v11115_v59 = vld [vmem:[#allocation72_spill] sm:$0xff] }
 0x387   : > { %v4104_v5 = vpop.f32.mrf.mxu1  ;;  %v4676_v45 = vpop.f32.mrf.mxu0 }
 0x388   : > { %11109 = vst [vmem:[#allocation87_spill] sm:$0xff] %v9900_v22  ;;  %v9904_v39 = vadd.f32 %v4664_v17, %v4183_v10  ;;  %v4184_v29 = vadd.f32 %v4104_v5, %v9651_v24 }
 0x389   : > { %v4106_v43 = vpop.f32.mrf.mxu1  ;;  %v4678_v26 = vpop.f32.mrf.mxu0 }
 0x38a   : > { %v9907_v38 = vadd.f32 %v4666_v55, %v4184_v29  ;;  %v4185_v62 = vadd.f32 %v4106_v43, %v11110_v7 }
 0x38b   : > { %v4108_v41 = vpop.f32.mrf.mxu1  ;;  %v4680_v20 = vpop.f32.mrf.mxu0 }
 0x38c   : > { %v9910_v47 = vadd.f32 %v4668_v46, %v4185_v62  ;;  %v4186_v22 = vadd.f32 %v4108_v41, %v11112_v37  ;;  %v5928_v46 = vld [vmem:[#allocation2 + $0xa1] sm:$0xff]  ;;  %v11116_v41 = vld [vmem:[#allocation73_spill] sm:$0xff] }
 0x38d   : > { %v4112_v44 = vpop.f32.mrf.mxu1  ;;  %7651 = vmatmul.mubr.msk.bf16.gmra.mxu1 %vm9058_vm13, %v7650_v28  ;;  %v4684_v24 = vpop.f32.mrf.mxu0  ;;  %v5927_v28 = vld [vmem:[#allocation2 + $0x99] sm:$0xff] }
 0x38e   : > { %11111 = vst [vmem:[#allocation88_spill] sm:$0xff] %v9910_v47  ;;  %v9915_v10 = vadd.f32 %v4670_v34, %v4186_v22  ;;  %v4187_v55 = vadd.f32 %v4112_v44, %v9665_v19  ;;  %6256 = vmatprep.mubr.bf16.mxu1 %v10901_v9  ;;  %v7654_v34 = vpack.c.bf16 %v5928_v46, %v5927_v28  ;;  %v11117_v19 = vld [vmem:[#allocation20_spill] sm:$0xff] }
 0x38f   : > { %v4114_v5 = vpop.f32.mrf.mxu1  ;;  %v4686_v7 = vpop.f32.mrf.mxu0  ;;  %v5930_v46 = vld [vmem:[#allocation2 + $0xb1] sm:$0xff]  ;;  %v5929_v28 = vld [vmem:[#allocation2 + $0xa9] sm:$0xff] }
 0x390   : > { %11114 = vst [vmem:[#allocation26_spill] sm:$0xff] %v9915_v10  ;;  %v9919_v29 = vadd.f32 %v4674_v27, %v4187_v55  ;;  %v4188_v43 = vadd.f32 %v4114_v5, %v11115_v59 }
 0x391   : > { %v4116_v62 = vpop.f32.mrf.mxu1  ;;  %v4688_v10 = vpop.f32.mrf.mxu0 }
 0x392   : > { %v9922_v18 = vadd.f32 %v4676_v45, %v4188_v43  ;;  %v4189_v37 = vadd.f32 %v4116_v62, %v11116_v41 }
 0x393   : > { %v4118_v17 = vpop.f32.mrf.mxu1 }
 0x394   : > { %v9925_v22 = vadd.f32 %v4678_v26, %v4189_v37  ;;  %v4190_v44 = vadd.f32 %v4118_v17, %v11117_v19  ;;  %v4690_v26 = vpop.f32.mrf.mxu0 }
 0x395   : > { %v4122_v47 = vpop.f32.mrf.mxu1  ;;  %7655 = vmatmul.mubr.msk.bf16.gmra.mxu1 %vm9074_vm11, %v7654_v34 }
 0x396   : > { %v9930_v55 = vadd.f32 %v4680_v20, %v4190_v44  ;;  %v4191_v5 = vadd.f32 %v4122_v47, %v9682_v54  ;;  %6266 = vmatprep.mubr.bf16.mxu1 %v10901_v9  ;;  %v7658_v20 = vpack.c.bf16 %v5930_v46, %v5929_v28  ;;  %v9943_v47 = vpop.f32.mrf.mxu0 }
 0x397   : > { %v4124_v45 = vpop.f32.mrf.mxu1 }
 0x398   : > { %v9934_v59 = vadd.f32 %v4684_v24, %v4191_v5  ;;  %v4192_v43 = vadd.f32 %v4124_v45, %v9685_v23  ;;  %v5931_v45 = vld [vmem:[#allocation2 + $0xb9] sm:$0xff] }
 0x399   : > { %v4126_v62 = vpop.f32.mrf.mxu1 }
 0x39a   : > { %v9937_v41 = vadd.f32 %v4686_v7, %v4192_v43  ;;  %v4193_v37 = vadd.f32 %v4126_v62, %v9688_v13 }
 0x39b   : > { %v4128_v17 = vpop.f32.mrf.mxu1 }
 0x39c   : > { %v9940_v34 = vadd.f32 %v4688_v10, %v4193_v37  ;;  %v4194_v54 = vadd.f32 %v4128_v17, %v9694_v42  ;;  %v9956_v10 = vpop.f32.mrf.mxu0  ;;  %v5932_v42 = vld [vmem:[#allocation2 + $0xc1] sm:$0xff] }
 0x39d   : > { %v5096_v24 = vpop.f32.mrf.mxu1  ;;  %7659 = vmatmul.mubr.msk.bf16.gmra.mxu1 %vm9092_vm3, %v7658_v20  ;;  %v5934_v20 = vld [vmem:[#allocation2 + $0xd1] sm:$0xff] }
 0x39e   : > { %v9947_v23 = vadd.f32 %v4690_v26, %v4194_v54  ;;  %v9950_v7 = vadd.f32 %v5096_v24, %v9699_v33  ;;  %6276 = vmatprep.mubr.bf16.mxu1 %v10901_v9  ;;  %v7662_v26 = vpack.c.bf16 %v5932_v42, %v5931_v45  ;;  %v9961_v46 = vpop.f32.mrf.mxu0  ;;  %v5933_v24 = vld [vmem:[#allocation2 + $0xc9] sm:$0xff] }
 0x39f   : > { %v5098_v13 = vpop.f32.mrf.mxu1 }
 0x3a0   : > { %v9954_v44 = vadd.f32 %v5098_v13, %v9702_v4  ;;  %v7666_v13 = vpack.c.bf16 %v5934_v20, %v5933_v24 }
 0x3a1   : > { %v5100_v27 = vpop.f32.mrf.mxu1 }
 0x3a2   : > { %v9959_v5 = vadd.f32 %v5100_v27, %v9705_v21  ;;  %v9972_v21 = vpop.f32.mrf.mxu0 }
 0x3a3   : > { %v5102_v43 = vpop.f32.mrf.mxu1 }
 0x3a4   : > { %v9964_v33 = vadd.f32 %v5102_v43, %v9711_v49  ;;  %v9980_v42 = vpop.f32.mrf.mxu0 }
 0x3a5   : > { %v5106_v62 = vpop.f32.mrf.mxu1  ;;  %7663 = vmatmul.mubr.msk.bf16.gmra.mxu1 %vm9108_vm15, %v7662_v26 }
 0x3a6   : > { %v9969_v4 = vadd.f32 %v5106_v62, %v9716_v51  ;;  %6286 = vmatprep.mubr.bf16.mxu1 %v10901_v9  ;;  %v5936_v62 = vld [vmem:[#allocation2 + $0xe1] sm:$0xff] }
 0x3a7   : > { %v5108_v28 = vpop.f32.mrf.mxu1 }
 0x3a8   : > { %v9975_v17 = vadd.f32 %v5108_v28, %v9719_v1  ;;  %v5935_v28 = vld [vmem:[#allocation2 + $0xd9] sm:$0xff] }
 0x3a9   : > { %v5110_v54 = vpop.f32.mrf.mxu1 }
 0x3aa   : > { %v9978_v49 = vadd.f32 %v5110_v54, %v9722_v16  ;;  %v9991_v16 = vpop.f32.mrf.mxu0  ;;  %v7670_v54 = vpack.c.bf16 %v5936_v62, %v5935_v28  ;;  %v5937_v28 = vld [vmem:[#allocation2 + $0xe9] sm:$0xff] }
 0x3ab   : > { %v5112_v19 = vpop.f32.mrf.mxu1 }
 0x3ac   : > { %v9983_v51 = vadd.f32 %v5112_v19, %v9728_v40  ;;  %v9999_v24 = vpop.f32.mrf.mxu0 }
 0x3ad   : > { %v5116_v27 = vpop.f32.mrf.mxu1  ;;  %7667 = vmatmul.mubr.msk.bf16.gmra.mxu1 %vm10959_vm9, %v7666_v13 }
 0x3ae   : > { %v9988_v1 = vadd.f32 %v5116_v27, %v9733_v11  ;;  %6296 = vmatprep.mubr.bf16.mxu1 %v10901_v9 }
 0x3af   : > { %v5118_v43 = vpop.f32.mrf.mxu1 }
 0x3b0   : > { %v9994_v26 = vadd.f32 %v5118_v43, %v9736_v58  ;;  %v5938_v43 = vld [vmem:[#allocation2 + $0xf1] sm:$0xff] }
 0x3b1   : > { %v5120_v37 = vpop.f32.mrf.mxu1  ;;  %v7674_v13 = vpack.c.bf16 %v5938_v43, %v5937_v28  ;;  %v5940_v43 = vld [vmem:[#allocation2 + $0x101] sm:$0xff] }
 0x3b2   : > { %v9997_v40 = vadd.f32 %v5120_v37, %v9739_v14  ;;  %v10010_v14 = vpop.f32.mrf.mxu0  ;;  %v11127_v37 = vld [vmem:[#allocation74_spill] sm:$0xff] }
 0x3b3   : > { %v5122_v20 = vpop.f32.mrf.mxu1 }
 0x3b4   : > { %11122 = vst [vmem:[#allocation27_spill] sm:$0xff] %v9997_v40  ;;  %v10002_v11 = vadd.f32 %v5122_v20, %v9745_v30  ;;  %v11141_v40 = vld [vmem:[#allocation52_spill] sm:$0xff] }
 0x3b5   : > { %v5126_v19 = vpop.f32.mrf.mxu1  ;;  %7671 = vmatmul.mubr.msk.bf16.gmra.mxu1 %vm10960_vm1, %v7670_v54  ;;  %v10018_v54 = vpop.f32.mrf.mxu0  ;;  %vm11142_vm2 = vnez %v11141_v40 }
 0x3b6   : > { %11123 = vst [vmem:[#allocation28_spill] sm:$0xff] %v10002_v11  ;;  %v10007_v58 = vadd.f32 %v5126_v19, %v9750_v6  ;;  %6306 = vmatprep.mubr.bf16.mxu1 %v10901_v9  ;;  %v11129_v6 = vld [vmem:[#allocation21_spill] sm:$0xff] }
 0x3b7   : > { %v5128_v27 = vpop.f32.mrf.mxu1 }
 0x3b8   : > { %11125 = vst [vmem:[#allocation29_spill] sm:$0xff] %v10007_v58  ;;  %v10013_v45 = vadd.f32 %v5128_v27, %v9753_v25 }
 0x3b9   : > { %v5130_v62 = vpop.f32.mrf.mxu1 }
 0x3ba   : > { %11126 = vst [vmem:[#allocation89_spill] sm:$0xff] %v10013_v45  ;;  %v10016_v30 = vadd.f32 %v5130_v62, %v11127_v37  ;;  %v10029_v62 = vpop.f32.mrf.mxu0  ;;  %v11134_v37 = vld [vmem:[#allocation75_spill] sm:$0xff]  ;;  %v11136_v45 = vld [vmem:[#allocation22_spill] sm:$0xff] }
 0x3bb   : > { %v5132_v20 = vpop.f32.mrf.mxu1  ;;  %11133 = vst [vmem:[#allocation49_spill] sm:$0xff] %v10029_v62  ;;  %v11143_v62 = vld [vmem:[#allocation77_spill] sm:$0xff] }
 0x3bc   : > { %11128 = vst [vmem:[#allocation46_spill] sm:$0xff] %v10016_v30  ;;  %v10021_v19 = vadd.f32 %v5132_v20, %v11129_v6  ;;  %v5939_v6 = vld [vmem:[#allocation2 + $0xf9] sm:$0xff] }
 0x3bd   : > { %v5136_v58 = vpop.f32.mrf.mxu1  ;;  %7675 = vmatmul.mubr.msk.bf16.gmra.mxu1 %vm9180_vm10, %v7674_v13  ;;  %v7678_v11 = vpack.c.bf16 %v5940_v43, %v5939_v6  ;;  %v10037_v13 = vpop.f32.mrf.mxu0  ;;  %v5941_v43 = vld [vmem:[#allocation2 + $0x109] sm:$0xff]  ;;  %v5942_v6 = vld [vmem:[#allocation2 + $0x111] sm:$0xff] }
 0x3be   : > { %11130 = vst [vmem:[#allocation48_spill] sm:$0xff] %v10021_v19  ;;  %v10026_v25 = vadd.f32 %v5136_v58, %v9767_v56  ;;  %6316 = vmatprep.mubr.bf16.mxu1 %v10901_v9  ;;  %11138 = vst [vmem:[#allocation53_spill] sm:$0xff] %v10037_v13  ;;  %v11139_v56 = vld [vmem:[#allocation76_spill] sm:$0xff]  ;;  %v7682_v40 = vpack.c.bf16 %v5942_v6, %v5941_v43 }
 0x3bf   : > { %v5138_v27 = vpop.f32.mrf.mxu1 }
 0x3c0   : > { %11132 = vst [vmem:[#allocation30_spill] sm:$0xff] %v10026_v25  ;;  %v10032_v30 = vadd.f32 %v5138_v27, %v11134_v37 }
 0x3c1   : > { %v5140_v28 = vpop.f32.mrf.mxu1 }
 0x3c2   : > { %11135 = vst [vmem:[#allocation50_spill] sm:$0xff] %v10032_v30  ;;  %v10035_v20 = vadd.f32 %v5140_v28, %v11136_v45  ;;  %v10048_v45 = vpop.f32.mrf.mxu0  ;;  %v11146_v28 = vld [vmem:[#allocation78_spill] sm:$0xff] }
 0x3c3   : > { %v5142_v19 = vpop.f32.mrf.mxu1  ;;  %11145 = vst [vmem:[#allocation54_spill] sm:$0xff] %v10048_v45  ;;  %v11152_v45 = vld [vmem:[#allocation80_spill] sm:$0xff] }
 0x3c4   : > { %11137 = vst [vmem:[#allocation51_spill] sm:$0xff] %v10035_v20  ;;  %v10040_v58 = vadd.f32 %v5142_v19, %v11139_v56  ;;  %v11148_v19 = vld [vmem:[#allocation23_spill] sm:$0xff] }
 0x3c5   : > { %v5146_v25 = vpop.f32.mrf.mxu1  ;;  %7679 = vmatmul.mubr.msk.bf16.gmra.mxu1 %vm11142_vm2, %v7678_v11  ;;  %v10056_v11 = vpop.f32.mrf.mxu0 }
 0x3c6   : > { %11140 = vst [vmem:[#allocation31_spill] sm:$0xff] %v10040_v58  ;;  %v10045_v27 = vadd.f32 %v5146_v25, %v11143_v62  ;;  %6326 = vmatprep.mubr.bf16.mxu1 %v10901_v9  ;;  %v11149_v25 = vld [vmem:[#allocation79_spill] sm:$0xff] }
 0x3c7   : > { %v5148_v37 = vpop.f32.mrf.mxu1 }
 0x3c8   : > { %11144 = vst [vmem:[#allocation63_spill] sm:$0xff] %v10045_v27  ;;  %v10051_v20 = vadd.f32 %v5148_v37, %v11146_v28  ;;  %v5943_v28 = vld [vmem:[#allocation2 + $0x119] sm:$0xff] }
 0x3c9   : > { %v5150_v30 = vpop.f32.mrf.mxu1 }
 0x3ca   : > { %11147 = vst [vmem:[#allocation55_spill] sm:$0xff] %v10051_v20  ;;  %v10054_v56 = vadd.f32 %v5150_v30, %v11148_v19  ;;  %v5944_v20 = vld [vmem:[#allocation2 + $0x121] sm:$0xff]  ;;  %v10067_v19 = vpop.f32.mrf.mxu0 }
 0x3cb   : > { %v5152_v58 = vpop.f32.mrf.mxu1 }
 0x3cc   : > { %v10059_v62 = vadd.f32 %v5152_v58, %v11149_v25  ;;  %v7686_v58 = vpack.c.bf16 %v5944_v20, %v5943_v28  ;;  %v11160_v20 = vld [vmem:[#allocation24_spill] sm:$0xff] }
 0x3cd   : > { %v5156_v27 = vpop.f32.mrf.mxu1  ;;  %7683 = vmatmul.mubr.msk.bf16.gmra.mxu1 %vm10975_vm5, %v7682_v40  ;;  %v10075_v40 = vpop.f32.mrf.mxu0 }
 0x3ce   : > { %11150 = vst [vmem:[#allocation56_spill] sm:$0xff] %v10059_v62  ;;  %v10064_v37 = vadd.f32 %v5156_v27, %v11152_v45  ;;  %6336 = vmatprep.mubr.bf16.mxu1 %v10901_v9  ;;  %v11156_v27 = vld [vmem:[#allocation81_spill] sm:$0xff] }
 0x3cf   : > { %v5158_v30 = vpop.f32.mrf.mxu1 }
 0x3d0   : > { %11153 = vst [vmem:[#allocation32_spill] sm:$0xff] %v10064_v37  ;;  %v10070_v43 = vadd.f32 %v5158_v30, %v9802_v2  ;;  %v11158_v37 = vld [vmem:[#allocation62_spill] sm:$0xff]  ;;  %v10085_v30 = vpop.f32.mrf.mxu0 }
 0x3d1   : > { %v5160_v6 = vpop.f32.mrf.mxu1  ;;  %vm11159_vm8 = vnez %v11158_v37 }
 0x3d2   : > { %11154 = vst [vmem:[#allocation58_spill] sm:$0xff] %v10070_v43  ;;  %v10073_v25 = vadd.f32 %v5160_v6, %v9805_v61  ;;  %v11162_v6 = vld [vmem:[#allocation82_spill] sm:$0xff] }
 0x3d3   : > { %v5162_v13 = vpop.f32.mrf.mxu1 }
 0x3d4   : > { %11155 = vst [vmem:[#allocation59_spill] sm:$0xff] %v10073_v25  ;;  %v10078_v45 = vadd.f32 %v5162_v13, %v11156_v27  ;;  %v10093_v13 = vpop.f32.mrf.mxu0  ;;  %v11164_v27 = vld [vmem:[#allocation83_spill] sm:$0xff] }
 0x3d5   : > { %v5166_v9 = vpop.f32.mrf.mxu1  ;;  %7687 = vmatmul.mubr.msk.bf16.gmra.mxu1 %vm11159_vm8, %v7686_v58 }
 0x3d6   : > { %11157 = vst [vmem:[#allocation60_spill] sm:$0xff] %v10078_v45  ;;  %v10083_v62 = vadd.f32 %v5166_v9, %v9814_v36  ;;  %v10101_v9 = vpop.f32.mrf.mxu0 }
 0x3d7   : > { %v5168_v2 = vpop.f32.mrf.mxu1 }
 0x3d8   : > { %v10088_v28 = vadd.f32 %v5168_v2, %v11160_v20 }
 0x3d9   : > { %v5170_v61 = vpop.f32.mrf.mxu1 }
 0x3da   : > { %11161 = vst [vmem:[#allocation61_spill] sm:$0xff] %v10088_v28  ;;  %v10091_v25 = vadd.f32 %v5170_v61, %v11162_v6  ;;  %v11167_v28 = vld [vmem:[#allocation84_spill] sm:$0xff] }
 0x3db   : > { %v5172_v43 = vpop.f32.mrf.mxu1 }
 0x3dc   : > { %11163 = vst [vmem:[#allocation33_spill] sm:$0xff] %v10091_v25  ;;  %v10096_v45 = vadd.f32 %v5172_v43, %v11164_v27  ;;  %v10109_v25 = vpop.f32.mrf.mxu0 }
 0x3dd   : > { %v5176_v37 = vpop.f32.mrf.mxu1 }
 0x3de   : > { %v10099_v36 = vadd.f32 %v5176_v37, %v9829_v12 }
 0x3df   : > { %v5178_v58 = vpop.f32.mrf.mxu1 }
 0x3e0   : > { %11165 = vst [vmem:[#allocation64_spill] sm:$0xff] %v10099_v36  ;;  %v10104_v2 = vadd.f32 %v5178_v58, %v9832_v57  ;;  %v10117_v36 = vpop.f32.mrf.mxu0 }
 0x3e1   : > { %v5180_v20 = vpop.f32.mrf.mxu1 }
 0x3e2   : > { %v10107_v61 = vadd.f32 %v5180_v20, %v9835_v15 }
 0x3e3   : > { %v5182_v6 = vpop.f32.mrf.mxu1 }
 0x3e4   : > { %11166 = vst [vmem:[#allocation65_spill] sm:$0xff] %v10107_v61  ;;  %v10112_v43 = vadd.f32 %v5182_v6, %v11167_v28  ;;  %v10125_v61 = vpop.f32.mrf.mxu0 }
 0x3e5   : > { %v5186_v27 = vpop.f32.mrf.mxu1 }
 0x3e6   : > { %v10115_v12 = vadd.f32 %v5186_v27, %v9844_v52 }
 0x3e7   : > { %v5188_v37 = vpop.f32.mrf.mxu1 }
 0x3e8   : > { %11168 = vst [vmem:[#allocation34_spill] sm:$0xff] %v10115_v12  ;;  %v10120_v57 = vadd.f32 %v5188_v37, %v9847_v0  ;;  %v10133_v12 = vpop.f32.mrf.mxu0 }
 0x3e9   : > { %v5190_v58 = vpop.f32.mrf.mxu1 }
 0x3ea   : > { %v10123_v15 = vadd.f32 %v5190_v58, %v9850_v8 }
 0x3eb   : > { %v5192_v20 = vpop.f32.mrf.mxu1 }
 0x3ec   : > { %11169 = vst [vmem:[#allocation66_spill] sm:$0xff] %v10123_v15  ;;  %v10128_v28 = vadd.f32 %v5192_v20, %v9855_v53  ;;  %v10141_v15 = vpop.f32.mrf.mxu0 }
 0x3ed   : > { %v5196_v6 = vpop.f32.mrf.mxu1 }
 0x3ee   : > { %11170 = vst [vmem:[#allocation67_spill] sm:$0xff] %v10128_v28  ;;  %v10131_v52 = vadd.f32 %v5196_v6, %v9859_v60  ;;  %v11179_v28 = vld [vmem:[#allocation85_spill] sm:$0xff] }
 0x3ef   : > { %v5198_v27 = vpop.f32.mrf.mxu1 }
 0x3f0   : > { %11171 = vst [vmem:[#allocation18_spill] sm:$0xff] %v10131_v52  ;;  %v10136_v0 = vadd.f32 %v5198_v27, %v9862_v50  ;;  %v10149_v52 = vpop.f32.mrf.mxu0 }
 0x3f1   : > { %v5200_v37 = vpop.f32.mrf.mxu1 }
 0x3f2   : > { %11172 = vst [vmem:[#allocation35_spill] sm:$0xff] %v10136_v0  ;;  %v10139_v8 = vadd.f32 %v5200_v37, %v9865_v31  ;;  %v11177_v0 = vld [vmem:[#allocation25_spill] sm:$0xff] }
 0x3f3   : > { %v5202_v58 = vpop.f32.mrf.mxu1 }
 0x3f4   : > { %11173 = vst [vmem:[#allocation68_spill] sm:$0xff] %v10139_v8  ;;  %v10144_v53 = vadd.f32 %v5202_v58, %v9870_v63  ;;  %v10157_v8 = vpop.f32.mrf.mxu0 }
 0x3f5   : > { %v5206_v20 = vpop.f32.mrf.mxu1 }
 0x3f6   : > { %11174 = vst [vmem:[#allocation36_spill] sm:$0xff] %v10144_v53  ;;  %v10147_v60 = vadd.f32 %v5206_v20, %v9874_v32  ;;  %v11185_v53 = vld [vmem:[#allocation87_spill] sm:$0xff] }
 0x3f7   : > { %v5208_v6 = vpop.f32.mrf.mxu1 }
 0x3f8   : > { %11175 = vst [vmem:[#allocation37_spill] sm:$0xff] %v10147_v60  ;;  %v10152_v50 = vadd.f32 %v5208_v6, %v9877_v3  ;;  %v10165_v60 = vpop.f32.mrf.mxu0 }
 0x3f9   : > { %v5210_v27 = vpop.f32.mrf.mxu1 }
 0x3fa   : > { %11176 = vst [vmem:[#allocation38_spill] sm:$0xff] %v10152_v50  ;;  %v10155_v31 = vadd.f32 %v5210_v27, %v11177_v0  ;;  %v11183_v50 = vld [vmem:[#allocation86_spill] sm:$0xff] }
 0x3fb   : > { %v5212_v37 = vpop.f32.mrf.mxu1 }
 0x3fc   : > { %11178 = vst [vmem:[#allocation69_spill] sm:$0xff] %v10155_v31  ;;  %v10160_v63 = vadd.f32 %v5212_v37, %v11179_v28  ;;  %v10173_v31 = vpop.f32.mrf.mxu0 }
 0x3fd   : > { %v5216_v58 = vpop.f32.mrf.mxu1 }
 0x3fe   : > { %11180 = vst [vmem:[#allocation70_spill] sm:$0xff] %v10160_v63  ;;  %v10163_v32 = vadd.f32 %v5216_v58, %v9889_v48  ;;  %v11190_v63 = vld [vmem:[#allocation26_spill] sm:$0xff] }
 0x3ff   : > { %v5218_v20 = vpop.f32.mrf.mxu1 }
 0x400   : > { %11181 = vst [vmem:[#allocation39_spill] sm:$0xff] %v10163_v32  ;;  %v10168_v3 = vadd.f32 %v5218_v20, %v9892_v35  ;;  %v10181_v32 = vpop.f32.mrf.mxu0 }
 0x401   : > { %v5220_v6 = vpop.f32.mrf.mxu1 }
 0x402   : > { %11182 = vst [vmem:[#allocation19_spill] sm:$0xff] %v10168_v3  ;;  %v10171_v0 = vadd.f32 %v5220_v6, %v11183_v50  ;;  %v11188_v3 = vld [vmem:[#allocation88_spill] sm:$0xff] }
 0x403   : > { %v5222_v27 = vpop.f32.mrf.mxu1 }
 0x404   : > { %11184 = vst [vmem:[#allocation71_spill] sm:$0xff] %v10171_v0  ;;  %v10176_v28 = vadd.f32 %v5222_v27, %v11185_v53  ;;  %v10189_v0 = vpop.f32.mrf.mxu0 }
 0x405   : > { %v5226_v37 = vpop.f32.mrf.mxu1 }
 0x406   : > { %v10179_v48 = vadd.f32 %v5226_v37, %v9904_v39 }
 0x407   : > { %v5228_v58 = vpop.f32.mrf.mxu1 }
 0x408   : > { %11186 = vst [vmem:[#allocation40_spill] sm:$0xff] %v10179_v48  ;;  %v10184_v35 = vadd.f32 %v5228_v58, %v9907_v38  ;;  %v10197_v48 = vpop.f32.mrf.mxu0 }
 0x409   : > { %v5230_v20 = vpop.f32.mrf.mxu1 }
 0x40a   : > { %11187 = vst [vmem:[#allocation72_spill] sm:$0xff] %v10184_v35  ;;  %v10187_v50 = vadd.f32 %v5230_v20, %v11188_v3 }
 0x40b   : > { %v5232_v6 = vpop.f32.mrf.mxu1 }
 0x40c   : > { %11189 = vst [vmem:[#allocation73_spill] sm:$0xff] %v10187_v50  ;;  %v10192_v53 = vadd.f32 %v5232_v6, %v11190_v63  ;;  %v10205_v50 = vpop.f32.mrf.mxu0 }
 0x40d   : > { %v5236_v27 = vpop.f32.mrf.mxu1 }
 0x40e   : > { %11191 = vst [vmem:[#allocation20_spill] sm:$0xff] %v10192_v53  ;;  %v10195_v39 = vadd.f32 %v5236_v27, %v9919_v29 }
 0x40f   : > { %v5238_v37 = vpop.f32.mrf.mxu1 }
 0x410   : > { %11192 = vst [vmem:[#allocation41_spill] sm:$0xff] %v10195_v39  ;;  %v10200_v38 = vadd.f32 %v5238_v37, %v9922_v18  ;;  %v10213_v39 = vpop.f32.mrf.mxu0  ;;  %v11198_v37 = vld [vmem:[#allocation17_spill] sm:$0xff] }
 0x411   : > { %v5240_v58 = vpop.f32.mrf.mxu1 }
 0x412   : > { %11193 = vst [vmem:[#allocation42_spill] sm:$0xff] %v10200_v38  ;;  %v10203_v3 = vadd.f32 %v5240_v58, %v9925_v22  ;;  %v6543_v38 = vsub.s32 0, %v11198_v37  ;;  %v6539_v58 = vld [vmem:[%s10729_s5] sm:$0x3] }
 0x413   : > { %v5242_v20 = vpop.f32.mrf.mxu1 }
 0x414   : > { %11194 = vst [vmem:[#allocation43_spill] sm:$0xff] %v10203_v3  ;;  %v10208_v63 = vadd.f32 %v5242_v20, %v9930_v55  ;;  %v6547_v20 = vsub.s32 1, %v11198_v37 }
 0x415   : > { %v5246_v6 = vpop.f32.mrf.mxu1 }
 0x416   : > { %11195 = vst [vmem:[#allocation44_spill] sm:$0xff] %v10208_v63  ;;  %v10211_v29 = vadd.f32 %v5246_v6, %v9934_v59  ;;  %v6615_v6 = vld [vmem:[%s10730_s6] sm:$0x3] }
 0x417   : > { %v5248_v27 = vpop.f32.mrf.mxu1 }
 0x418   : > { %11196 = vst [vmem:[#allocation45_spill] sm:$0xff] %v10211_v29  ;;  %v10216_v18 = vadd.f32 %v5248_v27, %v9937_v41  ;;  %v5785_v41 = vadd.f32 %v9943_v47, %v9950_v7  ;;  %v10231_v27 = vpop.f32.mrf.mxu0  ;;  %v10236_v29 = vrot.slane %v6539_v58, %v6543_v38  ;;  %v5787_v47 = vadd.f32 %v9961_v46, %v9959_v5 }
 0x419   : > { %v5250_v22 = vpop.f32.mrf.mxu1 }
 0x41a   : > { %11197 = vst [vmem:[#allocation74_spill] sm:$0xff] %v10216_v18  ;;  %v10223_v55 = vadd.f32 %v5250_v22, %v9940_v34  ;;  %v5786_v34 = vadd.f32 %v9956_v10, %v9954_v44  ;;  %v10240_v22 = vrot.slane %v6615_v6, %v6543_v38  ;;  %v10246_v7 = vpop.f32.mrf.mxu0  ;;  %v5788_v38 = vadd.f32 %v9972_v21, %v9964_v33 }
 0x41b   : > { %v5252_v59 = vpop.f32.mrf.mxu1 }
 0x41c   : > { %11199 = vst [vmem:[#allocation21_spill] sm:$0xff] %v10223_v55  ;;  %v10234_v18 = vadd.f32 %v5252_v59, %v9947_v23  ;;  %v10242_v55 = vrot.slane %v6539_v58, %v6547_v20  ;;  %v10255_v58 = vpop.f32.mrf.mxu0 }
 0x41d   : > { %v6188_v63 = vpop.f32.mrf.mxu1 }
 0x41e   : > { %11200 = vst [vmem:[#allocation47_spill] sm:$0xff] %v10234_v18  ;;  %v6347_v37 = vadd.f32 %v6188_v63, %v5785_v41  ;;  %v10249_v18 = vrot.slane %v6615_v6, %v6547_v20  ;;  %v5789_v20 = vadd.f32 %v9980_v42, %v9969_v4  ;;  %v5790_v6 = vadd.f32 %v9991_v16, %v9975_v17 }
 0x41f   : > { %v6190_v3 = vpop.f32.mrf.mxu1 }
 0x420   : > { %v6551_v23 = vmul.f32 %v10236_v29, %v6347_v37  ;;  %v6348_v59 = vadd.f32 %v6190_v3, %v5786_v34  ;;  %v5791_v37 = vadd.f32 %v9999_v24, %v9978_v49  ;;  %v8161_v49 = vld [vmem:[%s8602_s10 + $0x8] sm:$0xff] }
 0x421   : > { %v6192_v53 = vpop.f32.mrf.mxu1 }
 0x422   : > { %v6627_v35 = vadd.f32 %v10240_v22, %v6551_v23  ;;  %v6552_v44 = vmul.f32 %v10242_v55, %v6348_v59  ;;  %v6349_v10 = vadd.f32 %v6192_v53, %v5787_v47  ;;  %v8160_v47 = vld [vmem:[%s8602_s10] sm:$0xff] }
 0x423   : > { %v6194_v63 = vpop.f32.mrf.mxu1 }
 0x424   : > { %vm6691_vm12 = vcmp.ge.f32.partialorder %v6627_v35, 0.0  ;;  %v6755_v5 = vmul.f32 0.1, %v6627_v35  ;;  %v6628_v46 = vadd.f32 %v10249_v18, %v6552_v44  ;;  %v6553_v3 = vmul.f32 %v10236_v29, %v6349_v10  ;;  %v10268_v44 = vpop.f32.mrf.mxu0 }
 0x425   : > { %v6350_v53 = vadd.f32 %v6194_v63, %v5788_v38  ;;  %v6198_v41 = vpop.f32.mrf.mxu1 }
 0x426   : > { %v6819_v33 = vsel %vm6691_vm12, %v6627_v35, %v6755_v5  ;;  %vm6692_vm0 = vcmp.ge.f32.partialorder %v6628_v46, 0.0  ;;  %v6756_v21 = vmul.f32 0.1, %v6628_v46  ;;  %v6629_v34 = vadd.f32 %v10240_v22, %v6553_v3 }
 0x427   : > { %v6883_v23 = vadd.f32 %v8160_v47, %v6819_v33  ;;  %v6554_v59 = vmul.f32 %v10242_v55, %v6350_v53  ;;  %v6351_v4 = vadd.f32 %v6198_v41, %v5789_v20  ;;  %v6200_v42 = vpop.f32.mrf.mxu1  ;;  %v5792_v5 = vadd.f32 %v10010_v14, %v9983_v51 }
 0x428   : > { %v6820_v17 = vsel %vm6692_vm0, %v6628_v46, %v6756_v21  ;;  %vm6693_vm6 = vcmp.ge.f32.partialorder %v6629_v34, 0.0  ;;  %v6757_v16 = vmul.f32 0.1, %v6629_v34  ;;  %v6352_v35 = vadd.f32 %v6200_v42, %v5790_v6  ;;  %v8162_v6 = vld [vmem:[%s8602_s10 + $0x10] sm:$0xff] }
 0x429   : > { %6947 = vst [vmem:[%s10272_s12] sm:$0xff] %v6883_v23  ;;  %v6884_v24 = vadd.f32 %v8161_v49, %v6820_v17  ;;  %v6630_v10 = vadd.f32 %v10249_v18, %v6554_v59  ;;  %v6555_v38 = vmul.f32 %v10236_v29, %v6351_v4  ;;  %v6202_v63 = vpop.f32.mrf.mxu1  ;;  %v5793_v47 = vadd.f32 %v10018_v54, %v9988_v1  ;;  %v10286_v23 = vpop.f32.mrf.mxu0  ;;  %v11202_v49 = vld [vmem:[#allocation27_spill] sm:$0xff] }
 0x42a   : > { %v6821_v46 = vsel %vm6693_vm6, %v6629_v34, %v6757_v16  ;;  %v6556_v3 = vmul.f32 %v10242_v55, %v6352_v35  ;;  %v6353_v20 = vadd.f32 %v6202_v63, %v5791_v37  ;;  %v11201_v37 = vld [vmem:[#allocation49_spill] sm:$0xff]  ;;  %v8163_v16 = vld [vmem:[%s8602_s10 + $0x18] sm:$0xff] }
 0x42b   : > { %6948 = vst [vmem:[%s10272_s12 + $0x8] sm:$0xff] %v6884_v24  ;;  %v6885_v53 = vadd.f32 %v8162_v6, %v6821_v46  ;;  %vm6694_vm15 = vcmp.ge.f32.partialorder %v6630_v10, 0.0  ;;  %v6758_v41 = vmul.f32 0.1, %v6630_v10  ;;  %v6631_v33 = vadd.f32 %v10240_v22, %v6555_v38  ;;  %v6204_v21 = vpop.f32.mrf.mxu1  ;;  %v11203_v24 = vld [vmem:[#allocation53_spill] sm:$0xff]  ;;  %v10298_v46 = vpop.f32.mrf.mxu0 }
 0x42c   : > { %v6632_v51 = vadd.f32 %v10249_v18, %v6556_v3  ;;  %v6557_v14 = vmul.f32 %v10236_v29, %v6353_v20  ;;  %v6354_v34 = vadd.f32 %v6204_v21, %v5792_v5  ;;  %v5794_v59 = vadd.f32 %v11201_v37, %v9994_v26  ;;  %v8164_v3 = vld [vmem:[%s8602_s10 + $0x20] sm:$0xff] }
 0x42d   : > { %6949 = vst [vmem:[%s10272_s12 + $0x10] sm:$0xff] %v6885_v53  ;;  %v6822_v4 = vsel %vm6694_vm15, %v6630_v10, %v6758_v41  ;;  %vm6695_vm10 = vcmp.ge.f32.partialorder %v6631_v33, 0.0  ;;  %v6759_v42 = vmul.f32 0.1, %v6631_v33  ;;  %v6208_v17 = vpop.f32.mrf.mxu1  ;;  %v5795_v38 = vadd.f32 %v11203_v24, %v11202_v49  ;;  %v8165_v41 = vld [vmem:[%s8602_s10 + $0x28] sm:$0xff]  ;;  %v11204_v37 = vld [vmem:[#allocation28_spill] sm:$0xff] }
 0x42e   : > { %v6886_v35 = vadd.f32 %v8163_v16, %v6822_v4  ;;  %vm6696_vm5 = vcmp.ge.f32.partialorder %v6632_v51, 0.0  ;;  %v6760_v1 = vmul.f32 0.1, %v6632_v51  ;;  %v6633_v54 = vadd.f32 %v10240_v22, %v6557_v14  ;;  %v11205_v4 = vld [vmem:[#allocation54_spill] sm:$0xff] }
 0x42f   : > { %v6823_v63 = vsel %vm6695_vm10, %v6631_v33, %v6759_v42  ;;  %v6558_v26 = vmul.f32 %v10242_v55, %v6354_v34  ;;  %v6355_v5 = vadd.f32 %v6208_v17, %v5793_v47  ;;  %v6210_v10 = vpop.f32.mrf.mxu1  ;;  %v5796_v42 = vadd.f32 %v11205_v4, %v11204_v37  ;;  %v11208_v37 = vld [vmem:[#allocation46_spill] sm:$0xff] }
 0x430   : > { %6950 = vst [vmem:[%s10272_s12 + $0x18] sm:$0xff] %v6886_v35  ;;  %v6887_v20 = vadd.f32 %v8164_v3, %v6823_v63  ;;  %v6824_v6 = vsel %vm6696_vm5, %v6632_v51, %v6760_v1  ;;  %vm6697_vm4 = vcmp.ge.f32.partialorder %v6633_v54, 0.0  ;;  %v6761_v53 = vmul.f32 0.1, %v6633_v54  ;;  %v8166_v35 = vld [vmem:[%s8602_s10 + $0x30] sm:$0xff]  ;;  %v10311_v63 = vpop.f32.mrf.mxu0 }
 0x431   : > { %v6888_v21 = vadd.f32 %v8165_v41, %v6824_v6  ;;  %v6634_v14 = vadd.f32 %v10249_v18, %v6558_v26  ;;  %v6559_v33 = vmul.f32 %v10236_v29, %v6355_v5  ;;  %v6356_v34 = vadd.f32 %v6210_v10, %v5794_v59  ;;  %v6212_v47 = vpop.f32.mrf.mxu1  ;;  %v11206_v10 = vld [vmem:[#allocation29_spill] sm:$0xff]  ;;  %v8167_v6 = vld [vmem:[%s8602_s10 + $0x38] sm:$0xff] }
 0x432   : > { %6951 = vst [vmem:[%s10272_s12 + $0x20] sm:$0xff] %v6887_v20  ;;  %v6825_v17 = vsel %vm6697_vm4, %v6633_v54, %v6761_v53  ;;  %v6357_v16 = vadd.f32 %v6212_v47, %v5795_v38  ;;  %v5797_v54 = vadd.f32 %v10056_v11, %v11206_v10  ;;  %v5799_v11 = vadd.f32 %v10075_v40, %v11208_v37 }
 0x433   : > { %6952 = vst [vmem:[%s10272_s12 + $0x28] sm:$0xff] %v6888_v21  ;;  %v6889_v51 = vadd.f32 %v8166_v35, %v6825_v17  ;;  %vm6698_vm14 = vcmp.ge.f32.partialorder %v6634_v14, 0.0  ;;  %v6762_v1 = vmul.f32 0.1, %v6634_v14  ;;  %v6635_v49 = vadd.f32 %v10240_v22, %v6559_v33  ;;  %v6214_v24 = vpop.f32.mrf.mxu1  ;;  %v10326_v17 = vpop.f32.mrf.mxu0 }
 0x434   : > { %v6560_v59 = vmul.f32 %v10242_v55, %v6356_v34  ;;  %v6561_v26 = vmul.f32 %v10236_v29, %v6357_v16  ;;  %v6358_v5 = vadd.f32 %v6214_v24, %v5796_v42  ;;  %v11207_v34 = vld [vmem:[#allocation89_spill] sm:$0xff] }
 0x435   : > { %6953 = vst [vmem:[%s10272_s12 + $0x30] sm:$0xff] %v6889_v51  ;;  %v6826_v38 = vsel %vm6698_vm14, %v6634_v14, %v6762_v1  ;;  %vm6699_vm13 = vcmp.ge.f32.partialorder %v6635_v49, 0.0  ;;  %v6763_v3 = vmul.f32 0.1, %v6635_v49  ;;  %v6218_v20 = vpop.f32.mrf.mxu1  ;;  %v5798_v47 = vadd.f32 %v10067_v19, %v11207_v34  ;;  %v8168_v16 = vld [vmem:[%s8602_s10 + $0x40] sm:$0xff]  ;;  %v10338_v34 = vpop.f32.mrf.mxu0 }
 0x436   : > { %v6890_v53 = vadd.f32 %v8167_v6, %v6826_v38  ;;  %v6636_v41 = vadd.f32 %v10249_v18, %v6560_v59  ;;  %v6637_v21 = vadd.f32 %v10240_v22, %v6561_v26  ;;  %v6562_v33 = vmul.f32 %v10242_v55, %v6358_v5  ;;  %v11209_v59 = vld [vmem:[#allocation48_spill] sm:$0xff]  ;;  %v11210_v5 = vld [vmem:[#allocation30_spill] sm:$0xff] }
 0x437   : > { %v6827_v4 = vsel %vm6699_vm13, %v6635_v49, %v6763_v3  ;;  %v6359_v14 = vadd.f32 %v6218_v20, %v5797_v54  ;;  %v6220_v42 = vpop.f32.mrf.mxu1  ;;  %v5800_v26 = vadd.f32 %v10085_v30, %v11209_v59  ;;  %v5801_v10 = vadd.f32 %v10093_v13, %v11210_v5  ;;  %v8169_v3 = vld [vmem:[%s8602_s10 + $0x48] sm:$0xff] }
 0x438   : > { %6954 = vst [vmem:[%s10272_s12 + $0x38] sm:$0xff] %v6890_v53  ;;  %v6891_v35 = vadd.f32 %v8168_v16, %v6827_v4  ;;  %vm6700_vm11 = vcmp.ge.f32.partialorder %v6636_v41, 0.0  ;;  %v6764_v51 = vmul.f32 0.1, %v6636_v41  ;;  %vm6701_vm3 = vcmp.ge.f32.partialorder %v6637_v21, 0.0  ;;  %v11211_v4 = vld [vmem:[#allocation50_spill] sm:$0xff] }
 0x439   : > { %v6765_v1 = vmul.f32 0.1, %v6637_v21  ;;  %v6638_v24 = vadd.f32 %v10249_v18, %v6562_v33  ;;  %v6563_v19 = vmul.f32 %v10236_v29, %v6359_v14  ;;  %v6360_v40 = vadd.f32 %v6220_v42, %v5798_v47  ;;  %v6222_v49 = vpop.f32.mrf.mxu1  ;;  %v8170_v47 = vld [vmem:[%s8602_s10 + $0x50] sm:$0xff] }
 0x43a   : > { %6955 = vst [vmem:[%s10272_s12 + $0x40] sm:$0xff] %v6891_v35  ;;  %v6828_v54 = vsel %vm6700_vm11, %v6636_v41, %v6764_v51  ;;  %v6361_v38 = vadd.f32 %v6222_v49, %v5799_v11  ;;  %v5802_v11 = vadd.f32 %v10101_v9, %v11211_v4  ;;  %v11212_v14 = vld [vmem:[#allocation51_spill] sm:$0xff] }
 0x43b   : > { %v6892_v20 = vadd.f32 %v8169_v3, %v6828_v54  ;;  %v6829_v6 = vsel %vm6701_vm3, %v6637_v21, %v6765_v1  ;;  %vm6702_vm9 = vcmp.ge.f32.partialorder %v6638_v24, 0.0  ;;  %v6766_v53 = vmul.f32 0.1, %v6638_v24  ;;  %v6224_v33 = vpop.f32.mrf.mxu1  ;;  %v8171_v51 = vld [vmem:[%s8602_s10 + $0x58] sm:$0xff] }
 0x43c   : > { %v6893_v37 = vadd.f32 %v8170_v47, %v6829_v6  ;;  %v6639_v30 = vadd.f32 %v10240_v22, %v6563_v19  ;;  %v6564_v13 = vmul.f32 %v10242_v55, %v6360_v40  ;;  %v6565_v41 = vmul.f32 %v10236_v29, %v6361_v38  ;;  %v11213_v49 = vld [vmem:[#allocation31_spill] sm:$0xff] }
 0x43d   : > { %v5803_v21 = vadd.f32 %v10109_v25, %v11212_v14  ;;  %6956 = vst [vmem:[%s10272_s12 + $0x48] sm:$0xff] %v6892_v20  ;;  %v6830_v42 = vsel %vm6702_vm9, %v6638_v24, %v6766_v53  ;;  %v6362_v16 = vadd.f32 %v6224_v33, %v5800_v26  ;;  %v6228_v35 = vpop.f32.mrf.mxu1  ;;  %v5804_v59 = vadd.f32 %v10117_v36, %v11213_v49  ;;  %v10356_v24 = vpop.f32.mrf.mxu0  ;;  %v8172_v20 = vld [vmem:[%s8602_s10 + $0x60] sm:$0xff]  ;;  %v11215_v49 = vld [vmem:[#allocation55_spill] sm:$0xff] }
 0x43e   : > { %6957 = vst [vmem:[%s10272_s12 + $0x50] sm:$0xff] %v6893_v37  ;;  %v6894_v1 = vadd.f32 %v8171_v51, %v6830_v42  ;;  %vm6703_vm1 = vcmp.ge.f32.partialorder %v6639_v30, 0.0  ;;  %v6767_v19 = vmul.f32 0.1, %v6639_v30  ;;  %v6640_v40 = vadd.f32 %v10249_v18, %v6564_v13 }
 0x43f   : > { %v6641_v9 = vadd.f32 %v10240_v22, %v6565_v41  ;;  %v6566_v25 = vmul.f32 %v10242_v55, %v6362_v16  ;;  %v6363_v5 = vadd.f32 %v6228_v35, %v5801_v10  ;;  %v6230_v54 = vpop.f32.mrf.mxu1  ;;  %v10365_v42 = vpop.f32.mrf.mxu0  ;;  %v8174_v16 = vld [vmem:[%s8602_s10 + $0x70] sm:$0xff] }
 0x440   : > { %6958 = vst [vmem:[%s10272_s12 + $0x58] sm:$0xff] %v6894_v1  ;;  %v6831_v26 = vsel %vm6703_vm1, %v6639_v30, %v6767_v19  ;;  %vm6704_vm7 = vcmp.ge.f32.partialorder %v6640_v40, 0.0  ;;  %v6768_v38 = vmul.f32 0.1, %v6640_v40  ;;  %v6364_v3 = vadd.f32 %v6230_v54, %v5802_v11  ;;  %v8173_v30 = vld [vmem:[%s8602_s10 + $0x68] sm:$0xff]  ;;  %v11214_v19 = vld [vmem:[#allocation63_spill] sm:$0xff] }
 0x441   : > { %v6895_v6 = vadd.f32 %v8172_v20, %v6831_v26  ;;  %vm6705_vm2 = vcmp.ge.f32.partialorder %v6641_v9, 0.0  ;;  %v6769_v36 = vmul.f32 0.1, %v6641_v9  ;;  %v6642_v53 = vadd.f32 %v10249_v18, %v6566_v25  ;;  %v6232_v33 = vpop.f32.mrf.mxu1  ;;  %v8175_v26 = vld [vmem:[%s8602_s10 + $0x78] sm:$0xff] }
 0x442   : > { %v6832_v47 = vsel %vm6704_vm7, %v6640_v40, %v6768_v38  ;;  %v6567_v10 = vmul.f32 %v10236_v29, %v6363_v5  ;;  %v6568_v37 = vmul.f32 %v10242_v55, %v6364_v3  ;;  %v6365_v13 = vadd.f32 %v6232_v33, %v5803_v21 }
 0x443   : > { %6959 = vst [vmem:[%s10272_s12 + $0x60] sm:$0xff] %v6895_v6  ;;  %v6896_v41 = vadd.f32 %v8173_v30, %v6832_v47  ;;  %v6833_v4 = vsel %vm6705_vm2, %v6641_v9, %v6769_v36  ;;  %vm6706_vm8 = vcmp.ge.f32.partialorder %v6642_v53, 0.0  ;;  %v6770_v11 = vmul.f32 0.1, %v6642_v53  ;;  %v6234_v14 = vpop.f32.mrf.mxu1  ;;  %v10384_v47 = vpop.f32.mrf.mxu0 }
 0x444   : > { %v6897_v35 = vadd.f32 %v8174_v16, %v6833_v4  ;;  %v6643_v51 = vadd.f32 %v10240_v22, %v6567_v10  ;;  %v6644_v1 = vadd.f32 %v10249_v18, %v6568_v37  ;;  %v6569_v21 = vmul.f32 %v10236_v29, %v6365_v13  ;;  %v8176_v13 = vld [vmem:[%s8602_s10 + $0x80] sm:$0xff] }
 0x445   : > { %v5805_v40 = vadd.f32 %v10125_v61, %v11214_v19  ;;  %v5806_v9 = vadd.f32 %v10133_v12, %v11215_v49  ;;  %6960 = vst [vmem:[%s10272_s12 + $0x68] sm:$0xff] %v6896_v41  ;;  %v6834_v25 = vsel %vm6706_vm8, %v6642_v53, %v6770_v11  ;;  %v6366_v5 = vadd.f32 %v6234_v14, %v5804_v59  ;;  %v6238_v54 = vpop.f32.mrf.mxu1  ;;  %v11216_v53 = vld [vmem:[#allocation56_spill] sm:$0xff]  ;;  %v8177_v14 = vld [vmem:[%s8602_s10 + $0x88] sm:$0xff] }
 0x446   : > { %6961 = vst [vmem:[%s10272_s12 + $0x70] sm:$0xff] %v6897_v35  ;;  %v6898_v38 = vadd.f32 %v8175_v26, %v6834_v25  ;;  %vm6707_vm12 = vcmp.ge.f32.partialorder %v6643_v51, 0.0  ;;  %v6771_v3 = vmul.f32 0.1, %v6643_v51  ;;  %vm6708_vm0 = vcmp.ge.f32.partialorder %v6644_v1, 0.0  ;;  %v11217_v35 = vld [vmem:[#allocation32_spill] sm:$0xff] }
 0x447   : > { %v6772_v20 = vmul.f32 0.1, %v6644_v1  ;;  %v6645_v6 = vadd.f32 %v10240_v22, %v6569_v21  ;;  %v6570_v61 = vmul.f32 %v10242_v55, %v6366_v5  ;;  %v6367_v36 = vadd.f32 %v6238_v54, %v5805_v40  ;;  %v6240_v12 = vpop.f32.mrf.mxu1  ;;  %v11218_v21 = vld [vmem:[#allocation58_spill] sm:$0xff] }
 0x448   : > { %v5807_v59 = vadd.f32 %v10141_v15, %v10054_v56  ;;  %v5808_v33 = vadd.f32 %v10149_v52, %v11216_v53  ;;  %6962 = vst [vmem:[%s10272_s12 + $0x78] sm:$0xff] %v6898_v38  ;;  %v6835_v10 = vsel %vm6707_vm12, %v6643_v51, %v6771_v3  ;;  %v6368_v37 = vadd.f32 %v6240_v12, %v5806_v9  ;;  %v10397_v9 = vpop.f32.mrf.mxu0  ;;  %v8178_v25 = vld [vmem:[%s8602_s10 + $0x90] sm:$0xff] }
 0x449   : > { %v6899_v30 = vadd.f32 %v8176_v13, %v6835_v10  ;;  %v6836_v41 = vsel %vm6708_vm0, %v6644_v1, %v6772_v20  ;;  %vm6709_vm6 = vcmp.ge.f32.partialorder %v6645_v6, 0.0  ;;  %v6773_v4 = vmul.f32 0.1, %v6645_v6  ;;  %v6242_v11 = vpop.f32.mrf.mxu1  ;;  %v11219_v38 = vld [vmem:[#allocation59_spill] sm:$0xff] }
 0x44a   : > { %v6900_v16 = vadd.f32 %v8177_v14, %v6836_v41  ;;  %v6646_v56 = vadd.f32 %v10249_v18, %v6570_v61  ;;  %v6571_v15 = vmul.f32 %v10236_v29, %v6367_v36  ;;  %v6572_v52 = vmul.f32 %v10242_v55, %v6368_v37  ;;  %v10409_v13 = vpop.f32.mrf.mxu0 }
 0x44b   : > { %v5809_v51 = vadd.f32 %v10157_v8, %v11217_v35  ;;  %v5810_v19 = vadd.f32 %v10165_v60, %v11218_v21  ;;  %6963 = vst [vmem:[%s10272_s12 + $0x80] sm:$0xff] %v6899_v30  ;;  %v6837_v1 = vsel %vm6709_vm6, %v6645_v6, %v6773_v4  ;;  %v6369_v40 = vadd.f32 %v6242_v11, %v5807_v59  ;;  %v6244_v49 = vpop.f32.mrf.mxu1  ;;  %v8179_v59 = vld [vmem:[%s8602_s10 + $0x98] sm:$0xff]  ;;  %v8180_v11 = vld [vmem:[%s8602_s10 + $0xa0] sm:$0xff] }
 0x44c   : > { %6964 = vst [vmem:[%s10272_s12 + $0x88] sm:$0xff] %v6900_v16  ;;  %v6901_v5 = vadd.f32 %v8178_v25, %v6837_v1  ;;  %vm6710_vm15 = vcmp.ge.f32.partialorder %v6646_v56, 0.0  ;;  %v6774_v54 = vmul.f32 0.1, %v6646_v56  ;;  %v6647_v26 = vadd.f32 %v10240_v22, %v6571_v15 }
 0x44d   : > { %v5811_v8 = vadd.f32 %v10173_v31, %v11219_v38  ;;  %v6648_v60 = vadd.f32 %v10249_v18, %v6572_v52  ;;  %v6573_v3 = vmul.f32 %v10236_v29, %v6369_v40  ;;  %v6370_v20 = vadd.f32 %v6244_v49, %v5808_v33  ;;  %v6248_v6 = vpop.f32.mrf.mxu1  ;;  %v8181_v52 = vld [vmem:[%s8602_s10 + $0xa8] sm:$0xff]  ;;  %v11220_v40 = vld [vmem:[#allocation60_spill] sm:$0xff]  ;;  %v8182_v38 = vld [vmem:[%s8602_s10 + $0xb0] sm:$0xff] }
 0x44e   : > { %6965 = vst [vmem:[%s10272_s12 + $0x90] sm:$0xff] %v6901_v5  ;;  %v6838_v61 = vsel %vm6710_vm15, %v6646_v56, %v6774_v54  ;;  %vm6711_vm10 = vcmp.ge.f32.partialorder %v6647_v26, 0.0  ;;  %v6775_v36 = vmul.f32 0.1, %v6647_v26  ;;  %v6371_v12 = vadd.f32 %v6248_v6, %v5809_v51 }
 0x44f   : > { %v6902_v53 = vadd.f32 %v8179_v59, %v6838_v61  ;;  %vm6712_vm5 = vcmp.ge.f32.partialorder %v6648_v60, 0.0  ;;  %v6776_v10 = vmul.f32 0.1, %v6648_v60  ;;  %v6649_v31 = vadd.f32 %v10240_v22, %v6573_v3  ;;  %v6250_v37 = vpop.f32.mrf.mxu1 }
 0x450   : > { %v6839_v30 = vsel %vm6711_vm10, %v6647_v26, %v6775_v36  ;;  %v6574_v33 = vmul.f32 %v10242_v55, %v6370_v20  ;;  %v6575_v41 = vmul.f32 %v10236_v29, %v6371_v12  ;;  %v6372_v4 = vadd.f32 %v6250_v37, %v5810_v19  ;;  %v10424_v26 = vpop.f32.mrf.mxu0  ;;  %v11222_v36 = vld [vmem:[#allocation33_spill] sm:$0xff] }
 0x451   : > { %6966 = vst [vmem:[%s10272_s12 + $0x98] sm:$0xff] %v6902_v53  ;;  %v6903_v14 = vadd.f32 %v8180_v11, %v6839_v30  ;;  %v6840_v16 = vsel %vm6712_vm5, %v6648_v60, %v6776_v10  ;;  %vm6713_vm4 = vcmp.ge.f32.partialorder %v6649_v31, 0.0  ;;  %v6777_v56 = vmul.f32 0.1, %v6649_v31  ;;  %v6252_v15 = vpop.f32.mrf.mxu1  ;;  %v8183_v10 = vld [vmem:[%s8602_s10 + $0xb8] sm:$0xff] }
 0x452   : > { %v6904_v35 = vadd.f32 %v8181_v52, %v6840_v16  ;;  %v6650_v51 = vadd.f32 %v10249_v18, %v6574_v33  ;;  %v6651_v21 = vadd.f32 %v10240_v22, %v6575_v41  ;;  %v6576_v1 = vmul.f32 %v10242_v55, %v6372_v4  ;;  %v10436_v41 = vpop.f32.mrf.mxu0  ;;  %v8184_v4 = vld [vmem:[%s8602_s10 + $0xc0] sm:$0xff] }
 0x453   : > { %v5812_v19 = vadd.f32 %v10181_v32, %v11220_v40  ;;  %v5813_v49 = vadd.f32 %v10189_v0, %v10083_v62  ;;  %6967 = vst [vmem:[%s10272_s12 + $0xa0] sm:$0xff] %v6903_v14  ;;  %v6841_v25 = vsel %vm6713_vm4, %v6649_v31, %v6777_v56  ;;  %v6373_v5 = vadd.f32 %v6252_v15, %v5811_v8  ;;  %v6254_v54 = vpop.f32.mrf.mxu1  ;;  %v11221_v8 = vld [vmem:[#allocation61_spill] sm:$0xff]  ;;  %v11223_v56 = vld [vmem:[#allocation64_spill] sm:$0xff] }
 0x454   : > { %6968 = vst [vmem:[%s10272_s12 + $0xa8] sm:$0xff] %v6904_v35  ;;  %v6905_v60 = vadd.f32 %v8182_v38, %v6841_v25  ;;  %vm6714_vm14 = vcmp.ge.f32.partialorder %v6650_v51, 0.0  ;;  %v6778_v3 = vmul.f32 0.1, %v6650_v51  ;;  %vm6715_vm13 = vcmp.ge.f32.partialorder %v6651_v21, 0.0 }
 0x455   : > { %v6779_v20 = vmul.f32 0.1, %v6651_v21  ;;  %v6652_v32 = vadd.f32 %v10249_v18, %v6576_v1  ;;  %v6577_v62 = vmul.f32 %v10236_v29, %v6373_v5  ;;  %v6374_v0 = vadd.f32 %v6254_v54, %v5812_v19  ;;  %v6258_v6 = vpop.f32.mrf.mxu1  ;;  %v10454_v5 = vpop.f32.mrf.mxu0 }
 0x456   : > { %v5814_v61 = vadd.f32 %v10197_v48, %v11221_v8  ;;  %v5815_v12 = vadd.f32 %v10205_v50, %v11222_v36  ;;  %6969 = vst [vmem:[%s10272_s12 + $0xb0] sm:$0xff] %v6905_v60  ;;  %v6842_v59 = vsel %vm6714_vm14, %v6650_v51, %v6778_v3  ;;  %v6375_v53 = vadd.f32 %v6258_v6, %v5813_v49  ;;  %v8186_v3 = vld [vmem:[%s8602_s10 + $0xd0] sm:$0xff] }
 0x457   : > { %v6906_v31 = vadd.f32 %v8183_v10, %v6842_v59  ;;  %v6843_v37 = vsel %vm6715_vm13, %v6651_v21, %v6779_v20  ;;  %vm6716_vm11 = vcmp.ge.f32.partialorder %v6652_v32, 0.0  ;;  %v6780_v30 = vmul.f32 0.1, %v6652_v32  ;;  %v6260_v33 = vpop.f32.mrf.mxu1  ;;  %v8185_v21 = vld [vmem:[%s8602_s10 + $0xc8] sm:$0xff]  ;;  %v10463_v10 = vpop.f32.mrf.mxu0 }
 0x458   : > { %v6907_v11 = vadd.f32 %v8184_v4, %v6843_v37  ;;  %v6653_v48 = vadd.f32 %v10240_v22, %v6577_v62  ;;  %v6578_v50 = vmul.f32 %v10242_v55, %v6374_v0  ;;  %v6579_v14 = vmul.f32 %v10236_v29, %v6375_v53 }
 0x459   : > { %v5816_v16 = vadd.f32 %v10213_v39, %v10096_v45  ;;  %v5817_v15 = vadd.f32 %v10231_v27, %v11223_v56  ;;  %6970 = vst [vmem:[%s10272_s12 + $0xb8] sm:$0xff] %v6906_v31  ;;  %v6844_v52 = vsel %vm6716_vm11, %v6652_v32, %v6780_v30  ;;  %v6376_v35 = vadd.f32 %v6260_v33, %v5814_v61  ;;  %v6262_v51 = vpop.f32.mrf.mxu1  ;;  %v8187_v61 = vld [vmem:[%s8602_s10 + $0xd8] sm:$0xff]  ;;  %v8188_v31 = vld [vmem:[%s8602_s10 + $0xe0] sm:$0xff] }
 0x45a   : > { %6971 = vst [vmem:[%s10272_s12 + $0xc0] sm:$0xff] %v6907_v11  ;;  %v6908_v1 = vadd.f32 %v8185_v21, %v6844_v52  ;;  %vm6717_vm3 = vcmp.ge.f32.partialorder %v6653_v48, 0.0  ;;  %v6781_v40 = vmul.f32 0.1, %v6653_v48  ;;  %v6654_v19 = vadd.f32 %v10249_v18, %v6578_v50  ;;  %v11224_v11 = vld [vmem:[#allocation65_spill] sm:$0xff] }
 0x45b   : > { %v5818_v49 = vadd.f32 %v10246_v7, %v10104_v2  ;;  %v6655_v45 = vadd.f32 %v10240_v22, %v6579_v14  ;;  %v6580_v39 = vmul.f32 %v10242_v55, %v6376_v35  ;;  %v6377_v27 = vadd.f32 %v6262_v51, %v5815_v12  ;;  %v6264_v25 = vpop.f32.mrf.mxu1 }
 0x45c   : > { %6972 = vst [vmem:[%s10272_s12 + $0xc8] sm:$0xff] %v6908_v1  ;;  %v6845_v54 = vsel %vm6717_vm3, %v6653_v48, %v6781_v40  ;;  %vm6718_vm9 = vcmp.ge.f32.partialorder %v6654_v19, 0.0  ;;  %v6782_v38 = vmul.f32 0.1, %v6654_v19  ;;  %v6378_v60 = vadd.f32 %v6264_v25, %v5816_v16 }
 0x45d   : > { %v6909_v20 = vadd.f32 %v8186_v3, %v6845_v54  ;;  %vm6719_vm1 = vcmp.ge.f32.partialorder %v6655_v45, 0.0  ;;  %v6783_v2 = vmul.f32 0.1, %v6655_v45  ;;  %v6656_v7 = vadd.f32 %v10249_v18, %v6580_v39  ;;  %v6268_v32 = vpop.f32.mrf.mxu1  ;;  %v8191_v3 = vld [vmem:[%s8602_s10 + $0xf8] sm:$0xff] }
 0x45e   : > { %v6846_v62 = vsel %vm6718_vm9, %v6654_v19, %v6782_v38  ;;  %v6581_v0 = vmul.f32 %v10236_v29, %v6377_v27  ;;  %v6582_v6 = vmul.f32 %v10242_v55, %v6378_v60  ;;  %v6379_v8 = vadd.f32 %v6268_v32, %v5817_v15  ;;  %v8189_v15 = vld [vmem:[%s8602_s10 + $0xe8] sm:$0xff]  ;;  %v8190_v27 = vld [vmem:[%s8602_s10 + $0xf0] sm:$0xff] }
 0x45f   : > { %6973 = vst [vmem:[%s10272_s12 + $0xd0] sm:$0xff] %v6909_v20  ;;  %v6910_v36 = vadd.f32 %v8187_v61, %v6846_v62  ;;  %v6847_v12 = vsel %vm6719_vm1, %v6655_v45, %v6783_v2  ;;  %vm6720_vm7 = vcmp.ge.f32.partialorder %v6656_v7, 0.0  ;;  %v6784_v59 = vmul.f32 0.1, %v6656_v7  ;;  %v6270_v53 = vpop.f32.mrf.mxu1  ;;  %v11226_v2 = vld [vmem:[#allocation66_spill] sm:$0xff]  ;;  %v11227_v32 = vld [vmem:[#allocation67_spill] sm:$0xff] }
 0x460   : > { %v6911_v37 = vadd.f32 %v8188_v31, %v6847_v12  ;;  %v6657_v30 = vadd.f32 %v10240_v22, %v6581_v0  ;;  %v6658_v33 = vadd.f32 %v10249_v18, %v6582_v6  ;;  %v6583_v4 = vmul.f32 %v10236_v29, %v6379_v8  ;;  %v11228_v31 = vld [vmem:[#allocation18_spill] sm:$0xff] }
 0x461   : > { %v5819_v48 = vadd.f32 %v10255_v58, %v11224_v11  ;;  %v5820_v50 = vadd.f32 %v10268_v44, %v10112_v43  ;;  %6974 = vst [vmem:[%s10272_s12 + $0xd8] sm:$0xff] %v6910_v36  ;;  %v6848_v14 = vsel %vm6720_vm7, %v6656_v7, %v6784_v59  ;;  %v6380_v16 = vadd.f32 %v6270_v53, %v5818_v49  ;;  %v6272_v56 = vpop.f32.mrf.mxu1  ;;  %v11225_v44 = vld [vmem:[#allocation34_spill] sm:$0xff]  ;;  %v10482_v49 = vpop.f32.mrf.mxu0  ;;  %v8192_v36 = vld [vmem:[%s8602_s10 + $0x100] sm:$0xff] }
 0x462   : > { %6975 = vst [vmem:[%s10272_s12 + $0xe0] sm:$0xff] %v6911_v37  ;;  %v6912_v52 = vadd.f32 %v8189_v15, %v6848_v14  ;;  %vm6721_vm2 = vcmp.ge.f32.partialorder %v6657_v30, 0.0  ;;  %v6785_v35 = vmul.f32 0.1, %v6657_v30  ;;  %vm6722_vm8 = vcmp.ge.f32.partialorder %v6658_v33, 0.0 }
 0x463   : > { %v6786_v51 = vmul.f32 0.1, %v6658_v33  ;;  %v6659_v21 = vadd.f32 %v10240_v22, %v6583_v4  ;;  %v6584_v58 = vmul.f32 %v10242_v55, %v6380_v16  ;;  %v6381_v1 = vadd.f32 %v6272_v56, %v5819_v48  ;;  %v6274_v43 = vpop.f32.mrf.mxu1  ;;  %v10495_v61 = vpop.f32.mrf.mxu0 }
 0x464   : > { %v5821_v40 = vadd.f32 %v10286_v23, %v11225_v44  ;;  %v5822_v19 = vadd.f32 %v10298_v46, %v10120_v57  ;;  %6976 = vst [vmem:[%s10272_s12 + $0xe8] sm:$0xff] %v6912_v52  ;;  %v6849_v45 = vsel %vm6721_vm2, %v6657_v30, %v6785_v35  ;;  %v6382_v39 = vadd.f32 %v6274_v43, %v5820_v50  ;;  %v8193_v50 = vld [vmem:[%s8602_s10 + $0x108] sm:$0xff] }
 0x465   : > { %v6913_v25 = vadd.f32 %v8190_v27, %v6849_v45  ;;  %v6850_v54 = vsel %vm6722_vm8, %v6658_v33, %v6786_v51  ;;  %vm6723_vm12 = vcmp.ge.f32.partialorder %v6659_v21, 0.0  ;;  %v6787_v38 = vmul.f32 0.1, %v6659_v21  ;;  %v6278_v60 = vpop.f32.mrf.mxu1  ;;  %v10507_v15 = vpop.f32.mrf.mxu0 }
 0x466   : > { %v6914_v20 = vadd.f32 %v8191_v3, %v6850_v54  ;;  %v6660_v23 = vadd.f32 %v10249_v18, %v6584_v58  ;;  %v6585_v57 = vmul.f32 %v10236_v29, %v6381_v1  ;;  %v6586_v46 = vmul.f32 %v10242_v55, %v6382_v39  ;;  %v8194_v58 = vld [vmem:[%s8602_s10 + $0x110] sm:$0xff] }
 0x467   : > { %v5823_v7 = vadd.f32 %v10311_v63, %v11226_v2  ;;  %v5824_v62 = vadd.f32 %v10326_v17, %v11227_v32  ;;  %6977 = vst [vmem:[%s10272_s12 + $0xf0] sm:$0xff] %v6913_v25  ;;  %v6851_v0 = vsel %vm6723_vm12, %v6659_v21, %v6787_v38  ;;  %v6383_v6 = vadd.f32 %v6278_v60, %v5821_v40  ;;  %v6280_v8 = vpop.f32.mrf.mxu1  ;;  %v11229_v54 = vld [vmem:[#allocation35_spill] sm:$0xff]  ;;  %v11230_v60 = vld [vmem:[#allocation68_spill] sm:$0xff] }
 0x468   : > { %6978 = vst [vmem:[%s10272_s12 + $0xf8] sm:$0xff] %v6914_v20  ;;  %v6915_v12 = vadd.f32 %v8192_v36, %v6851_v0  ;;  %vm6724_vm0 = vcmp.ge.f32.partialorder %v6660_v23, 0.0  ;;  %v6788_v59 = vmul.f32 0.1, %v6660_v23  ;;  %v6661_v53 = vadd.f32 %v10240_v22, %v6585_v57  ;;  %v8196_v2 = vld [vmem:[%s8602_s10 + $0x120] sm:$0xff] }
 0x469   : > { %v5825_v63 = vadd.f32 %v10338_v34, %v11228_v31  ;;  %v6662_v17 = vadd.f32 %v10249_v18, %v6586_v46  ;;  %v6587_v37 = vmul.f32 %v10236_v29, %v6383_v6  ;;  %v6384_v30 = vadd.f32 %v6280_v8, %v5822_v19  ;;  %v6282_v33 = vpop.f32.mrf.mxu1  ;;  %v8195_v19 = vld [vmem:[%s8602_s10 + $0x118] sm:$0xff]  ;;  %v10522_v46 = vpop.f32.mrf.mxu0 }
 0x46a   : > { %6979 = vst [vmem:[%s10272_s12 + $0x100] sm:$0xff] %v6915_v12  ;;  %v6852_v4 = vsel %vm6724_vm0, %v6660_v23, %v6788_v59  ;;  %vm6725_vm6 = vcmp.ge.f32.partialorder %v6661_v53, 0.0  ;;  %v6789_v11 = vmul.f32 0.1, %v6661_v53  ;;  %v6385_v48 = vadd.f32 %v6282_v33, %v5823_v7  ;;  %v11231_v8 = vld [vmem:[#allocation36_spill] sm:$0xff]  ;;  %v11232_v12 = vld [vmem:[#allocation37_spill] sm:$0xff] }
 0x46b   : > { %v6916_v14 = vadd.f32 %v8193_v50, %v6852_v4  ;;  %vm6726_vm15 = vcmp.ge.f32.partialorder %v6662_v17, 0.0  ;;  %v6790_v16 = vmul.f32 0.1, %v6662_v17  ;;  %v6663_v34 = vadd.f32 %v10240_v22, %v6587_v37  ;;  %v6284_v56 = vpop.f32.mrf.mxu1  ;;  %v10534_v4 = vpop.f32.mrf.mxu0 }
 0x46c   : > { %v6853_v52 = vsel %vm6725_vm6, %v6661_v53, %v6789_v11  ;;  %v6588_v35 = vmul.f32 %v10242_v55, %v6384_v30  ;;  %v6589_v51 = vmul.f32 %v10236_v29, %v6385_v48  ;;  %v6386_v21 = vadd.f32 %v6284_v56, %v5824_v62  ;;  %v8198_v11 = vld [vmem:[%s8602_s10 + $0x130] sm:$0xff] }
 0x46d   : > { %6980 = vst [vmem:[%s10272_s12 + $0x108] sm:$0xff] %v6916_v14  ;;  %v6917_v1 = vadd.f32 %v8194_v58, %v6853_v52  ;;  %v6854_v43 = vsel %vm6726_vm15, %v6662_v17, %v6790_v16  ;;  %vm6727_vm10 = vcmp.ge.f32.partialorder %v6663_v34, 0.0  ;;  %v6791_v44 = vmul.f32 0.1, %v6663_v34  ;;  %v6288_v40 = vpop.f32.mrf.mxu1  ;;  %v11233_v14 = vld [vmem:[#allocation38_spill] sm:$0xff] }
 0x46e   : > { %v6918_v45 = vadd.f32 %v8195_v19, %v6854_v43  ;;  %v6664_v39 = vadd.f32 %v10249_v18, %v6588_v35  ;;  %v6665_v27 = vadd.f32 %v10240_v22, %v6589_v51  ;;  %v6590_v25 = vmul.f32 %v10242_v55, %v6386_v21  ;;  %v8199_v21 = vld [vmem:[%s8602_s10 + $0x138] sm:$0xff] }
 0x46f   : > { %v5826_v38 = vadd.f32 %v10356_v24, %v11229_v54  ;;  %v5827_v3 = vadd.f32 %v10365_v42, %v11230_v60  ;;  %6981 = vst [vmem:[%s10272_s12 + $0x110] sm:$0xff] %v6917_v1  ;;  %v6855_v20 = vsel %vm6727_vm10, %v6663_v34, %v6791_v44  ;;  %v6387_v23 = vadd.f32 %v6288_v40, %v5825_v63  ;;  %v6290_v57 = vpop.f32.mrf.mxu1  ;;  %v8197_v63 = vld [vmem:[%s8602_s10 + $0x128] sm:$0xff] }
 0x470   : > { %6982 = vst [vmem:[%s10272_s12 + $0x118] sm:$0xff] %v6918_v45  ;;  %v6919_v7 = vadd.f32 %v8196_v2, %v6855_v20  ;;  %vm6728_vm5 = vcmp.ge.f32.partialorder %v6664_v39, 0.0  ;;  %v6792_v32 = vmul.f32 0.1, %v6664_v39  ;;  %vm6729_vm4 = vcmp.ge.f32.partialorder %v6665_v27, 0.0  ;;  %v11234_v34 = vld [vmem:[#allocation69_spill] sm:$0xff] }
 0x471   : > { %v6793_v62 = vmul.f32 0.1, %v6665_v27  ;;  %v6666_v24 = vadd.f32 %v10249_v18, %v6590_v25  ;;  %v6591_v42 = vmul.f32 %v10236_v29, %v6387_v23  ;;  %v6388_v0 = vadd.f32 %v6290_v57, %v5826_v38  ;;  %v6292_v6 = vpop.f32.mrf.mxu1  ;;  %v11235_v44 = vld [vmem:[#allocation70_spill] sm:$0xff]  ;;  %v8200_v38 = vld [vmem:[%s8602_s10 + $0x140] sm:$0xff] }
 0x472   : > { %v5828_v36 = vadd.f32 %v10384_v47, %v11231_v8  ;;  %v5829_v59 = vadd.f32 %v10397_v9, %v11232_v12  ;;  %6983 = vst [vmem:[%s10272_s12 + $0x120] sm:$0xff] %v6919_v7  ;;  %v6856_v53 = vsel %vm6728_vm5, %v6664_v39, %v6792_v32  ;;  %v6389_v31 = vadd.f32 %v6292_v6, %v5827_v3  ;;  %v10552_v39 = vpop.f32.mrf.mxu0  ;;  %v8201_v32 = vld [vmem:[%s8602_s10 + $0x148] sm:$0xff]  ;;  %v8202_v8 = vld [vmem:[%s8602_s10 + $0x150] sm:$0xff] }
 0x473   : > { %v6920_v17 = vadd.f32 %v8197_v63, %v6856_v53  ;;  %v6857_v37 = vsel %vm6729_vm4, %v6665_v27, %v6793_v62  ;;  %vm6730_vm14 = vcmp.ge.f32.partialorder %v6666_v24, 0.0  ;;  %v6794_v30 = vmul.f32 0.1, %v6666_v24  ;;  %v6294_v33 = vpop.f32.mrf.mxu1 }
 0x474   : > { %v6921_v48 = vadd.f32 %v8198_v11, %v6857_v37  ;;  %v6667_v47 = vadd.f32 %v10240_v22, %v6591_v42  ;;  %v6592_v9 = vmul.f32 %v10242_v55, %v6388_v0  ;;  %v6593_v50 = vmul.f32 %v10236_v29, %v6389_v31  ;;  %v10561_v6 = vpop.f32.mrf.mxu0  ;;  %v11236_v31 = vld [vmem:[#allocation39_spill] sm:$0xff] }
 0x475   : > { %v5830_v16 = vadd.f32 %v10409_v13, %v11233_v14  ;;  %v5831_v56 = vadd.f32 %v10424_v26, %v11234_v34  ;;  %6984 = vst [vmem:[%s10272_s12 + $0x128] sm:$0xff] %v6920_v17  ;;  %v6858_v52 = vsel %vm6730_vm14, %v6666_v24, %v6794_v30  ;;  %v6390_v35 = vadd.f32 %v6294_v33, %v5828_v36  ;;  %v6298_v51 = vpop.f32.mrf.mxu1  ;;  %v11237_v17 = vld [vmem:[#allocation19_spill] sm:$0xff] }
 0x476   : > { %6985 = vst [vmem:[%s10272_s12 + $0x130] sm:$0xff] %v6921_v48  ;;  %v6922_v58 = vadd.f32 %v8199_v21, %v6858_v52  ;;  %vm6731_vm13 = vcmp.ge.f32.partialorder %v6667_v47, 0.0  ;;  %v6795_v1 = vmul.f32 0.1, %v6667_v47  ;;  %v6668_v43 = vadd.f32 %v10249_v18, %v6592_v9  ;;  %v8203_v48 = vld [vmem:[%s8602_s10 + $0x158] sm:$0xff] }
 0x477   : > { %v5832_v40 = vadd.f32 %v10436_v41, %v11235_v44  ;;  %v6669_v13 = vadd.f32 %v10240_v22, %v6593_v50  ;;  %v6594_v26 = vmul.f32 %v10242_v55, %v6390_v35  ;;  %v6391_v19 = vadd.f32 %v6298_v51, %v5829_v59  ;;  %v6300_v45 = vpop.f32.mrf.mxu1  ;;  %v11238_v34 = vld [vmem:[#allocation71_spill] sm:$0xff]  ;;  %v10580_v35 = vpop.f32.mrf.mxu0 }
 0x478   : > { %6986 = vst [vmem:[%s10272_s12 + $0x138] sm:$0xff] %v6922_v58  ;;  %v6859_v27 = vsel %vm6731_vm13, %v6667_v47, %v6795_v1  ;;  %vm6732_vm11 = vcmp.ge.f32.partialorder %v6668_v43, 0.0  ;;  %v6796_v25 = vmul.f32 0.1, %v6668_v43  ;;  %v6392_v54 = vadd.f32 %v6300_v45, %v5830_v16  ;;  %v8204_v58 = vld [vmem:[%s8602_s10 + $0x160] sm:$0xff] }
 0x479   : > { %v6923_v60 = vadd.f32 %v8200_v38, %v6859_v27  ;;  %vm6733_vm3 = vcmp.ge.f32.partialorder %v6669_v13, 0.0  ;;  %v6797_v41 = vmul.f32 0.1, %v6669_v13  ;;  %v6670_v3 = vadd.f32 %v10249_v18, %v6594_v26  ;;  %v6302_v20 = vpop.f32.mrf.mxu1  ;;  %v11240_v27 = vld [vmem:[#allocation72_spill] sm:$0xff] }
 0x47a   : > { %v6860_v23 = vsel %vm6732_vm11, %v6668_v43, %v6796_v25  ;;  %v6595_v57 = vmul.f32 %v10236_v29, %v6391_v19  ;;  %v6596_v2 = vmul.f32 %v10242_v55, %v6392_v54  ;;  %v6393_v7 = vadd.f32 %v6302_v20, %v5831_v56  ;;  %v11239_v19 = vld [vmem:[#allocation40_spill] sm:$0xff] }
 0x47b   : > { %6987 = vst [vmem:[%s10272_s12 + $0x140] sm:$0xff] %v6923_v60  ;;  %v6924_v62 = vadd.f32 %v8201_v32, %v6860_v23  ;;  %v6861_v24 = vsel %vm6733_vm3, %v6669_v13, %v6797_v41  ;;  %vm6734_vm9 = vcmp.ge.f32.partialorder %v6670_v3, 0.0  ;;  %v6798_v42 = vmul.f32 0.1, %v6670_v3  ;;  %v6304_v0 = vpop.f32.mrf.mxu1  ;;  %v8205_v13 = vld [vmem:[%s8602_s10 + $0x168] sm:$0xff]  ;;  %v5770_v41 = vpop.f32.mrf.mxu0 }
 0x47c   : > { %v6925_v36 = vadd.f32 %v8202_v8, %v6861_v24  ;;  %v6671_v12 = vadd.f32 %v10240_v22, %v6595_v57  ;;  %v6672_v59 = vadd.f32 %v10249_v18, %v6596_v2  ;;  %v6597_v53 = vmul.f32 %v10236_v29, %v6393_v7  ;;  %v11241_v2 = vld [vmem:[#allocation73_spill] sm:$0xff]  ;;  %v8207_v8 = vld [vmem:[%s8602_s10 + $0x178] sm:$0xff] }
 0x47d   : > { %v5833_v63 = vadd.f32 %v10454_v5, %v11236_v31  ;;  %v5834_v37 = vadd.f32 %v10463_v10, %v11237_v17  ;;  %6988 = vst [vmem:[%s10272_s12 + $0x148] sm:$0xff] %v6924_v62  ;;  %v6862_v30 = vsel %vm6734_vm9, %v6670_v3, %v6798_v42  ;;  %v6394_v33 = vadd.f32 %v6304_v0, %v5832_v40  ;;  %v6308_v11 = vpop.f32.mrf.mxu1  ;;  %v8206_v3 = vld [vmem:[%s8602_s10 + $0x170] sm:$0xff] }
 0x47e   : > { %6989 = vst [vmem:[%s10272_s12 + $0x150] sm:$0xff] %v6925_v36  ;;  %v6926_v47 = vadd.f32 %v8203_v48, %v6862_v30  ;;  %vm6735_vm1 = vcmp.ge.f32.partialorder %v6671_v12, 0.0  ;;  %v6799_v9 = vmul.f32 0.1, %v6671_v12  ;;  %vm6736_vm7 = vcmp.ge.f32.partialorder %v6672_v59, 0.0  ;;  %v8208_v30 = vld [vmem:[%s8602_s10 + $0x180] sm:$0xff] }
 0x47f   : > { %v6800_v50 = vmul.f32 0.1, %v6672_v59  ;;  %v6673_v14 = vadd.f32 %v10240_v22, %v6597_v53  ;;  %v6598_v5 = vmul.f32 %v10242_v55, %v6394_v33  ;;  %v6395_v16 = vadd.f32 %v6308_v11, %v5833_v63  ;;  %v6310_v10 = vpop.f32.mrf.mxu1  ;;  %v5772_v53 = vpop.f32.mrf.mxu0 }
 0x480   : > { %v5835_v56 = vadd.f32 %v10482_v49, %v11238_v34  ;;  %v5836_v52 = vadd.f32 %v10495_v61, %v10176_v28  ;;  %6990 = vst [vmem:[%s10272_s12 + $0x158] sm:$0xff] %v6926_v47  ;;  %v6863_v51 = vsel %vm6735_vm1, %v6671_v12, %v6799_v9  ;;  %v6396_v21 = vadd.f32 %v6310_v10, %v5834_v37  ;;  %v11242_v34 = vld [vmem:[#allocation20_spill] sm:$0xff] }
 0x481   : > { %v6927_v1 = vadd.f32 %v8204_v58, %v6863_v51  ;;  %v6864_v43 = vsel %vm6736_vm7, %v6672_v59, %v6800_v50  ;;  %vm6737_vm2 = vcmp.ge.f32.partialorder %v6673_v14, 0.0  ;;  %v6801_v44 = vmul.f32 0.1, %v6673_v14  ;;  %v6312_v40 = vpop.f32.mrf.mxu1  ;;  %v5776_v9 = vpop.f32.mrf.mxu0  ;;  %v8209_v50 = vld [vmem:[%s8602_s10 + $0x188] sm:$0xff] }
 0x482   : > { %v6928_v26 = vadd.f32 %v8205_v13, %v6864_v43  ;;  %v6674_v49 = vadd.f32 %v10249_v18, %v6598_v5  ;;  %v6599_v28 = vmul.f32 %v10236_v29, %v6395_v16  ;;  %v6600_v61 = vmul.f32 %v10242_v55, %v6396_v21  ;;  %v8210_v43 = vld [vmem:[%s8602_s10 + $0x190] sm:$0xff] }
 0x483   : > { %v5837_v45 = vadd.f32 %v10507_v15, %v11239_v19  ;;  %v5838_v25 = vadd.f32 %v10522_v46, %v11240_v27  ;;  %6991 = vst [vmem:[%s10272_s12 + $0x160] sm:$0xff] %v6927_v1  ;;  %v6865_v54 = vsel %vm6737_vm2, %v6673_v14, %v6801_v44  ;;  %v6397_v38 = vadd.f32 %v6312_v40, %v5835_v56  ;;  %v6314_v60 = vpop.f32.mrf.mxu1  ;;  %v11245_v19 = vld [vmem:[#allocation43_spill] sm:$0xff]  ;;  %v5778_v27 = vpop.f32.mrf.mxu0 }
 0x484   : > { %6992 = vst [vmem:[%s10272_s12 + $0x168] sm:$0xff] %v6928_v26  ;;  %v6929_v20 = vadd.f32 %v8206_v3, %v6865_v54  ;;  %vm6738_vm8 = vcmp.ge.f32.partialorder %v6674_v49, 0.0  ;;  %v6802_v23 = vmul.f32 0.1, %v6674_v49  ;;  %v6675_v57 = vadd.f32 %v10240_v22, %v6599_v28  ;;  %v11244_v28 = vld [vmem:[#allocation42_spill] sm:$0xff] }
 0x485   : > { %v5839_v15 = vadd.f32 %v10534_v4, %v11241_v2  ;;  %v6676_v7 = vadd.f32 %v10249_v18, %v6600_v61  ;;  %v6601_v46 = vmul.f32 %v10236_v29, %v6397_v38  ;;  %v6398_v32 = vadd.f32 %v6314_v60, %v5836_v52  ;;  %v6318_v62 = vpop.f32.mrf.mxu1  ;;  %v11243_v52 = vld [vmem:[#allocation41_spill] sm:$0xff]  ;;  %v8211_v38 = vld [vmem:[%s8602_s10 + $0x198] sm:$0xff] }
 0x486   : > { %6993 = vst [vmem:[%s10272_s12 + $0x170] sm:$0xff] %v6929_v20  ;;  %v6866_v24 = vsel %vm6738_vm8, %v6674_v49, %v6802_v23  ;;  %vm6739_vm12 = vcmp.ge.f32.partialorder %v6675_v57, 0.0  ;;  %v6803_v42 = vmul.f32 0.1, %v6675_v57  ;;  %v6399_v0 = vadd.f32 %v6318_v62, %v5837_v45 }
 0x487   : > { %v6930_v36 = vadd.f32 %v8207_v8, %v6866_v24  ;;  %vm6740_vm0 = vcmp.ge.f32.partialorder %v6676_v7, 0.0  ;;  %v6804_v12 = vmul.f32 0.1, %v6676_v7  ;;  %v6677_v4 = vadd.f32 %v10240_v22, %v6601_v46  ;;  %v6320_v59 = vpop.f32.mrf.mxu1  ;;  %v5780_v8 = vpop.f32.mrf.mxu0 }
 0x488   : > { %v6867_v31 = vsel %vm6739_vm12, %v6675_v57, %v6803_v42  ;;  %v6602_v63 = vmul.f32 %v10242_v55, %v6398_v32  ;;  %v6603_v17 = vmul.f32 %v10236_v29, %v6399_v0  ;;  %v6400_v37 = vadd.f32 %v6320_v59, %v5838_v25  ;;  %v8212_v57 = vld [vmem:[%s8602_s10 + $0x1a0] sm:$0xff] }
 0x489   : > { %6994 = vst [vmem:[%s10272_s12 + $0x178] sm:$0xff] %v6930_v36  ;;  %v6931_v33 = vadd.f32 %v8208_v30, %v6867_v31  ;;  %v6868_v11 = vsel %vm6740_vm0, %v6676_v7, %v6804_v12  ;;  %vm6741_vm6 = vcmp.ge.f32.partialorder %v6677_v4, 0.0  ;;  %v6805_v48 = vmul.f32 0.1, %v6677_v4  ;;  %v6322_v47 = vpop.f32.mrf.mxu1  ;;  %v11246_v7 = vld [vmem:[#allocation44_spill] sm:$0xff]  ;;  %v11247_v32 = vld [vmem:[#allocation45_spill] sm:$0xff] }
 0x48a   : > { %v6932_v14 = vadd.f32 %v8209_v50, %v6868_v11  ;;  %v6678_v5 = vadd.f32 %v10249_v18, %v6602_v63  ;;  %v6679_v16 = vadd.f32 %v10240_v22, %v6603_v17  ;;  %v6604_v10 = vmul.f32 %v10242_v55, %v6400_v37  ;;  %v8213_v36 = vld [vmem:[%s8602_s10 + $0x1a8] sm:$0xff] }
 0x48b   : > { %v5840_v56 = vadd.f32 %v10552_v39, %v11242_v34  ;;  %v5841_v51 = vadd.f32 %v10561_v6, %v11243_v52  ;;  %6995 = vst [vmem:[%s10272_s12 + $0x180] sm:$0xff] %v6931_v33  ;;  %v6869_v21 = vsel %vm6741_vm6, %v6677_v4, %v6805_v48  ;;  %v6401_v58 = vadd.f32 %v6322_v47, %v5839_v15  ;;  %v6324_v1 = vpop.f32.mrf.mxu1  ;;  %v11248_v31 = vld [vmem:[#allocation74_spill] sm:$0xff] }
 0x48c   : > { %6996 = vst [vmem:[%s10272_s12 + $0x188] sm:$0xff] %v6932_v14  ;;  %v6933_v44 = vadd.f32 %v8210_v43, %v6869_v21  ;;  %vm6742_vm15 = vcmp.ge.f32.partialorder %v6678_v5, 0.0  ;;  %v6806_v40 = vmul.f32 0.1, %v6678_v5  ;;  %vm6743_vm10 = vcmp.ge.f32.partialorder %v6679_v16, 0.0  ;;  %v8214_v47 = vld [vmem:[%s8602_s10 + $0x1b0] sm:$0xff] }
 0x48d   : > { %v6807_v13 = vmul.f32 0.1, %v6679_v16  ;;  %v6680_v26 = vadd.f32 %v10249_v18, %v6604_v10  ;;  %v6605_v39 = vmul.f32 %v10236_v29, %v6401_v58  ;;  %v6402_v49 = vadd.f32 %v6324_v1, %v5840_v56  ;;  %v6328_v6 = vpop.f32.mrf.mxu1 }
 0x48e   : > { %v5842_v61 = vadd.f32 %v10580_v35, %v11244_v28  ;;  %v5843_v45 = vadd.f32 %v5770_v41, %v11245_v19  ;;  %6997 = vst [vmem:[%s10272_s12 + $0x190] sm:$0xff] %v6933_v44  ;;  %v6870_v25 = vsel %vm6742_vm15, %v6678_v5, %v6806_v40  ;;  %v6403_v54 = vadd.f32 %v6328_v6, %v5841_v51  ;;  %v8215_v51 = vld [vmem:[%s8602_s10 + $0x1b8] sm:$0xff]  ;;  %v8216_v44 = vld [vmem:[%s8602_s10 + $0x1c0] sm:$0xff] }
 0x48f   : > { %v6934_v60 = vadd.f32 %v8211_v38, %v6870_v25  ;;  %v6871_v3 = vsel %vm6743_vm10, %v6679_v16, %v6807_v13  ;;  %vm6744_vm5 = vcmp.ge.f32.partialorder %v6680_v26, 0.0  ;;  %v6808_v20 = vmul.f32 0.1, %v6680_v26  ;;  %v6330_v23 = vpop.f32.mrf.mxu1  ;;  %v5782_v16 = vpop.f32.mrf.mxu0  ;;  %v11250_v28 = vld [vmem:[#allocation47_spill] sm:$0xff]  ;;  %v8217_v25 = vld [vmem:[%s8602_s10 + $0x1c8] sm:$0xff] }
 0x490   : > { %v6935_v2 = vadd.f32 %v8212_v57, %v6871_v3  ;;  %v6681_v15 = vadd.f32 %v10240_v22, %v6605_v39  ;;  %v6606_v35 = vmul.f32 %v10242_v55, %v6402_v49  ;;  %v6607_v41 = vmul.f32 %v10236_v29, %v6403_v54  ;;  %v11249_v49 = vld [vmem:[#allocation21_spill] sm:$0xff] }
 0x491   : > { %v5844_v46 = vadd.f32 %v5772_v53, %v11246_v7  ;;  %v5845_v62 = vadd.f32 %v5776_v9, %v11247_v32  ;;  %6998 = vst [vmem:[%s10272_s12 + $0x198] sm:$0xff] %v6934_v60  ;;  %v6872_v24 = vsel %vm6744_vm5, %v6680_v26, %v6808_v20  ;;  %v6404_v42 = vadd.f32 %v6330_v23, %v5842_v61  ;;  %v6332_v0 = vpop.f32.mrf.mxu1  ;;  %v8219_v32 = vld [vmem:[%s8602_s10 + $0x1d8] sm:$0xff] }
 0x492   : > { %6999 = vst [vmem:[%s10272_s12 + $0x1a0] sm:$0xff] %v6935_v2  ;;  %v6936_v12 = vadd.f32 %v8213_v36, %v6872_v24  ;;  %vm6745_vm4 = vcmp.ge.f32.partialorder %v6681_v15, 0.0  ;;  %v6809_v4 = vmul.f32 0.1, %v6681_v15  ;;  %v6682_v59 = vadd.f32 %v10249_v18, %v6606_v35  ;;  %v8218_v35 = vld [vmem:[%s8602_s10 + $0x1d0] sm:$0xff]  ;;  %v8220_v36 = vld [vmem:[%s8602_s10 + $0x1e0] sm:$0xff] }
 0x493   : > { %v5846_v63 = vadd.f32 %v5778_v27, %v11248_v31  ;;  %v6683_v53 = vadd.f32 %v10240_v22, %v6607_v41  ;;  %v6608_v17 = vmul.f32 %v10242_v55, %v6404_v42  ;;  %v6405_v37 = vadd.f32 %v6332_v0, %v5843_v45  ;;  %v6334_v30 = vpop.f32.mrf.mxu1 }
 0x494   : > { %7000 = vst [vmem:[%s10272_s12 + $0x1a8] sm:$0xff] %v6936_v12  ;;  %v6873_v33 = vsel %vm6745_vm4, %v6681_v15, %v6809_v4  ;;  %vm6746_vm14 = vcmp.ge.f32.partialorder %v6682_v59, 0.0  ;;  %v6810_v11 = vmul.f32 0.1, %v6682_v59  ;;  %v6406_v48 = vadd.f32 %v6334_v30, %v5844_v46 }
 0x495   : > { %v6937_v9 = vadd.f32 %v8214_v47, %v6873_v33  ;;  %vm6747_vm13 = vcmp.ge.f32.partialorder %v6683_v53, 0.0  ;;  %v6811_v50 = vmul.f32 0.1, %v6683_v53  ;;  %v6684_v14 = vadd.f32 %v10249_v18, %v6608_v17  ;;  %v6338_v5 = vpop.f32.mrf.mxu1  ;;  %v8223_v33 = vld [vmem:[%s8602_s10 + $0x1f8] sm:$0xff] }
 0x496   : > { %v6874_v10 = vsel %vm6746_vm14, %v6682_v59, %v6810_v11  ;;  %v6609_v34 = vmul.f32 %v10236_v29, %v6405_v37  ;;  %v6610_v56 = vmul.f32 %v10242_v55, %v6406_v48  ;;  %v6407_v52 = vadd.f32 %v6338_v5, %v5845_v62 }
 0x497   : > { %7001 = vst [vmem:[%s10272_s12 + $0x1b0] sm:$0xff] %v6937_v9  ;;  %v6938_v21 = vadd.f32 %v8215_v51, %v6874_v10  ;;  %v6875_v58 = vsel %vm6747_vm13, %v6683_v53, %v6811_v50  ;;  %vm6748_vm11 = vcmp.ge.f32.partialorder %v6684_v14, 0.0  ;;  %v6812_v1 = vmul.f32 0.1, %v6684_v14  ;;  %v6340_v43 = vpop.f32.mrf.mxu1 }
 0x498   : > { %v6939_v40 = vadd.f32 %v8216_v44, %v6875_v58  ;;  %v6685_v13 = vadd.f32 %v10240_v22, %v6609_v34  ;;  %v6686_v26 = vadd.f32 %v10249_v18, %v6610_v56  ;;  %v6611_v39 = vmul.f32 %v10236_v29, %v6407_v52 }
 0x499   : > { %v5847_v6 = vadd.f32 %v5780_v8, %v11249_v49  ;;  %v5848_v61 = vadd.f32 %v5782_v16, %v11250_v28  ;;  %7002 = vst [vmem:[%s10272_s12 + $0x1b8] sm:$0xff] %v6938_v21  ;;  %v6876_v19 = vsel %vm6748_vm11, %v6684_v14, %v6812_v1  ;;  %v6408_v45 = vadd.f32 %v6340_v43, %v5846_v63  ;;  %v6342_v27 = vpop.f32.mrf.mxu1 }
 0x49a   : > { %7003 = vst [vmem:[%s10272_s12 + $0x1c0] sm:$0xff] %v6939_v40  ;;  %v6940_v54 = vadd.f32 %v8217_v25, %v6876_v19  ;;  %vm6749_vm3 = vcmp.ge.f32.partialorder %v6685_v13, 0.0  ;;  %v6813_v38 = vmul.f32 0.1, %v6685_v13  ;;  %vm6750_vm9 = vcmp.ge.f32.partialorder %v6686_v26, 0.0 }
 0x49b   : > { %v6814_v60 = vmul.f32 0.1, %v6686_v26  ;;  %v6687_v3 = vadd.f32 %v10240_v22, %v6611_v39  ;;  %v6612_v20 = vmul.f32 %v10242_v55, %v6408_v45  ;;  %v6409_v23 = vadd.f32 %v6342_v27, %v5847_v6  ;;  %v6344_v57 = vpop.f32.mrf.mxu1 }
 0x49c   : > { %7004 = vst [vmem:[%s10272_s12 + $0x1c8] sm:$0xff] %v6940_v54  ;;  %v6877_v2 = vsel %vm6749_vm3, %v6685_v13, %v6813_v38  ;;  %v6410_v15 = vadd.f32 %v6344_v57, %v5848_v61 }
 0x49d   : > { %v6941_v41 = vadd.f32 %v8218_v35, %v6877_v2  ;;  %v6878_v7 = vsel %vm6750_vm9, %v6686_v26, %v6814_v60  ;;  %vm6751_vm1 = vcmp.ge.f32.partialorder %v6687_v3, 0.0  ;;  %v6815_v46 = vmul.f32 0.1, %v6687_v3 }
 0x49e   : > { %v6942_v62 = vadd.f32 %v8219_v32, %v6878_v7  ;;  %v6688_v24 = vadd.f32 %v10249_v18, %v6612_v20  ;;  %v6613_v42 = vmul.f32 %v10236_v29, %v6409_v23  ;;  %v6614_v0 = vmul.f32 %v10242_v55, %v6410_v15  ;;  %v8221_v55 = vld [vmem:[%s8602_s10 + $0x1e8] sm:$0xff] }
 0x49f   : > { %7005 = vst [vmem:[%s10272_s12 + $0x1d0] sm:$0xff] %v6941_v41  ;;  %v6879_v8 = vsel %vm6751_vm1, %v6687_v3, %v6815_v46 }
 0x4a0   : > { %7006 = vst [vmem:[%s10272_s12 + $0x1d8] sm:$0xff] %v6942_v62  ;;  %v6943_v12 = vadd.f32 %v8220_v36, %v6879_v8  ;;  %vm6752_vm7 = vcmp.ge.f32.partialorder %v6688_v24, 0.0  ;;  %v6816_v4 = vmul.f32 0.1, %v6688_v24  ;;  %v6689_v59 = vadd.f32 %v10240_v22, %v6613_v42  ;;  %v8222_v22 = vld [vmem:[%s8602_s10 + $0x1f0] sm:$0xff] }
 0x4a1   : > { %v6690_v31 = vadd.f32 %v10249_v18, %v6614_v0 }
 0x4a2   : > { %7007 = vst [vmem:[%s10272_s12 + $0x1e0] sm:$0xff] %v6943_v12  ;;  %v6880_v63 = vsel %vm6752_vm7, %v6688_v24, %v6816_v4  ;;  %vm6753_vm2 = vcmp.ge.f32.partialorder %v6689_v59, 0.0  ;;  %v6817_v29 = vmul.f32 0.1, %v6689_v59 }
 0x4a3   : > { %v6944_v53 = vadd.f32 %v8221_v55, %v6880_v63  ;;  %vm6754_vm8 = vcmp.ge.f32.partialorder %v6690_v31, 0.0  ;;  %v6818_v17 = vmul.f32 0.1, %v6690_v31 }
 0x4a4   : > { %v6881_v37 = vsel %vm6753_vm2, %v6689_v59, %v6817_v29 }
 0x4a5   : > { %7008 = vst [vmem:[%s10272_s12 + $0x1e8] sm:$0xff] %v6944_v53  ;;  %v6945_v30 = vadd.f32 %v8222_v22, %v6881_v37  ;;  %v6882_v18 = vsel %vm6754_vm8, %v6690_v31, %v6818_v17 }
 0x4a6   : > { %v6946_v11 = vadd.f32 %v8223_v33, %v6882_v18 }
 0x4a7   : > { %7009 = vst [vmem:[%s10272_s12 + $0x1f0] sm:$0xff] %v6945_v30 }
 0x4a8   : > { %7010 = vst [vmem:[%s10272_s12 + $0x1f8] sm:$0xff] %v6946_v11 }
 0x4a9   : > { %8343 = shalt.err (!%p8340_p9)
}
 0x4aa   : > { %s8344_s10 = scalar_lea.hbm %s10676_s1, 8192  ;;  %s8348_s17 = scalar_lea.hbm %s10731_s7, 16384 }
 0x4ab   : > { %p8345_p1 = scmp.ne.s32.totalorder %s10676_s1, %s8344_s10  ;;  %p8349_p11 = scmp.lt.s32.totalorder %s10676_s1, %s10731_s7 }
 0x4ac   : > { %p8350_p13 = scmp.lt.s32.totalorder %s8348_s17, %s8344_s10 }
 0x4ad   : > { %p8346_p8 = pnand %p8345_p1, %p11251_p6 }
 0x4ae   : > { %p8351_p2 = por %p8350_p13, %p8349_p11 }
 0x4af   : > { %p8347_p10 = pneg %p8346_p8 }
 0x4b1   : > { %p8352_p4 = pnand %p8351_p2, %p8347_p10 }
 0x4b3   : > { %8355 = shalt.err (!%p8352_p4)
}
 0x4b4   : > { %s8419_s19 = smov 256   ;;  %s8420_s23 = smov 16  }
 0x4b5   : > { %7853 = dma.vmem_to_hbm [thread:$0]  (%p11251_p6), %s10678_s20, 8192, %s10676_s1, %s7012_s28, %s8419_s19, %s8419_s19, %s8420_s23  }
 0x4b6 PF: > { %s7040_s29 = sand.u32 1, %s8390_s24   ;;  %p11252_p12 = scmp.ne.s32.totalorder %s10805_s8, 0 }
 0x4b7   : > { %p11253_p0 = scmp.ge.s32.totalorder %s8402_s27, 2  ;;  %s7041_s30 = scalar_lea.sflag [#allocation6], %s7040_s29 }
 0x4b9   : > { %p7870_p5 = pnand %p11253_p0, %p11252_p12 }
 0x4bb   : > { %p7871_p3 = pneg %p7870_p5 }
 0x4bd   : > { %8385 = dma.done.wait (%p7871_p3), %s7041_s30, 8192  }
 0x4be   : > { %8387 = vsyncadd (%p7871_p3), %s7041_s30, 4294959104  ;;  %p22_p7 = scmp.ge.s32.totalorder %s8541_s18, 4   ;;  %s11254_s24 = smov %s8394_s25 }
 0x4bf   : > { %s11255_s25 = smov %s8398_s26  ;;  %s11256_s26 = smov %s8551_s21 }
 0x4c0   : > { %s11257_s27 = smov %s8541_s18  ;;  %24 = sbr.rel (!%p22_p7) target bundleno = 9 (0x9), region = 113 }
 0x4c5   :  { %7046 = vsyncpa [#allocation5], 1 }
 0x4c6   :  { %7048 = vsyncpa [#allocation5 + $0x1], 1 }
 0x4c7   :  { %7049 = vsyncpa [#allocation8], 1 }
 0x4c8   :  { %7050 = vsyncpa [#allocation11], 1 }
 0x4c9   :  { %7051 = vsyncpa [#allocation6], 1 }
 0x4ca   :  { %7053 = vsyncpa [#allocation6 + $0x1], 1 }

</bundles_post_ra>
